<compile_context>
chip_gen: v7x
topology: tpu7x:2x2x1
jax: 0.10.0
libtpu: 0.0.40
codegen_flags: <defaults>
</compile_context>

<pallas_src>
import math
from functools import lru_cache, partial

import jax
import jax.numpy as jnp
from jax.experimental import pallas as pl
from jax.experimental.pallas import tpu as pltpu

_LN_10000 = math.log(10000.0)
_TARGET_TILE_BYTES = 2 << 20  # ~2 MiB f32 output tile (x2 once double-buffered)


def _round_up(n, m):
    return ((n + m - 1) // m) * m


def _pe_kernel(inv_freq_ref, o_ref, *, tile_rows):
    """One row-tile of the positional-encoding table.

    inv_freq_ref: (1, d_pad) f32 per-column constants
        inv_freq[c] = exp(-(2*floor(c/2)) * ln(10000) / d_model)   (0 in padding)
    o_ref: (tile_rows, d_pad) f32
        o[p, c] = sin(p_global * inv_freq[c])   for even c
                = cos(p_global * inv_freq[c])   for odd  c
    """
    row0 = (pl.program_id(0) * tile_rows).astype(jnp.float32)
    pos = jax.lax.broadcasted_iota(jnp.int32, o_ref.shape, 0).astype(jnp.float32) + row0
    arg = pos * inv_freq_ref[...]                      # (tile_rows, d_pad)
    lane = jax.lax.broadcasted_iota(jnp.int32, o_ref.shape, 1)
    is_odd = (lane & 1) == 1
    o_ref[...] = jnp.where(is_odd, jnp.cos(arg), jnp.sin(arg))


@lru_cache(maxsize=None)
def _pe_table(max_len, d_model):
    """Build (and cache) the full [1, max_len, d_model] f32 table once per shape."""
    rows = _round_up(max_len, 8)          # sublane-aligned
    d_pad = _round_up(d_model, 128)       # lane-dense output (unmasked stores)

    # Byte-capped row tile: bounds VMEM on every generation and gives enough grid
    # steps for output-writeback pipelining.  Force >= 2 steps when possible so
    # both v7x TensorCores get a share of the (parallel) row axis.
    tile_rows = min(rows, _round_up(max(8, _TARGET_TILE_BYTES // (4 * d_pad)), 8))
    if tile_rows == rows and rows >= 16:
        tile_rows = _round_up(pl.cdiv(rows, 2), 8)
    n_tiles = pl.cdiv(rows, tile_rows)

    # Per-column constants, computed once at table-build time (not in-kernel).
    col = jnp.arange(d_pad)
    k2 = ((col // 2) * 2).astype(jnp.float32)
    inv_freq = jnp.exp(k2 * (-_LN_10000 / d_model))
    inv_freq = jnp.where(col < d_model, inv_freq, 0.0)[None, :].astype(jnp.float32)

    out = pl.pallas_call(
        partial(_pe_kernel, tile_rows=tile_rows),
        out_shape=jax.ShapeDtypeStruct((rows, d_pad), jnp.float32),
        grid=(n_tiles,),
        in_specs=[pl.BlockSpec((1, d_pad), lambda i: (0, 0))],
        out_specs=pl.BlockSpec((tile_rows, d_pad), lambda i: (i, 0)),
        compiler_params=pltpu.CompilerParams(
            dimension_semantics=("parallel",)
        ),
    )(inv_freq)

    if rows == max_len and d_pad == d_model:
        pe = out.reshape(1, max_len, d_model)                    # no-copy reshape
    else:
        pe = out[:max_len, :d_model].reshape(1, max_len, d_model)  # one-time slice
    return jax.block_until_ready(pe)


@lru_cache(maxsize=None)
def _pe_table_as(max_len, d_model, dtype):
    pe = _pe_table(max_len, d_model)
    if dtype == jnp.float32:
        return pe
    # Optional lower-precision cached copy: halves per-forward HBM read of the
    # table when downstream activations are bf16.
    return jax.block_until_ready(pe.astype(dtype))


def positional_encoding(x, d_model, max_len=512, dtype=jnp.float32):
    """Equivalent of PositionalEncoding(d_model, max_len).forward(x).

    Args:
      x: array of shape [batch, seq_len, d_model] (only seq_len is used).
    Returns:
      array of shape [1, seq_len, d_model] (float32 by default, PyTorch parity).
    """
    seq_len = x.shape[1]
    assert seq_len <= max_len, "seq_len exceeds max_len"
    assert x.shape[2] == d_model, "embedding dim mismatch"
    assert d_model % 2 == 0, "d_model must be even (as in the PyTorch module)"
    pe = _pe_table_as(max_len, d_model, dtype)   # cached buffer, built once
    return pe[:, :seq_len]


def _reference_pe(seq_len, d_model):
    """Plain-JAX mirror of the PyTorch buffer construction, for verification."""
    position = jnp.arange(seq_len, dtype=jnp.float32)[:, None]
    div_term = jnp.exp(
        jnp.arange(0, d_model, 2, dtype=jnp.float32) * (-_LN_10000 / d_model)
    )
    pe = jnp.zeros((1, seq_len, d_model), dtype=jnp.float32)
    pe = pe.at[0, :, 0::2].set(jnp.sin(position * div_term))
    pe = pe.at[0, :, 1::2].set(jnp.cos(position * div_term))
    return pe


if __name__ == "__main__":
    key = jax.random.PRNGKey(0)
    batch, seq_len, d_model, max_len = 2, 8, 32, 512
    x = jax.random.normal(key, (batch, seq_len, d_model), dtype=jnp.float32)

    out = positional_encoding(x, d_model=d_model, max_len=max_len)
    out = jax.block_until_ready(out)

    assert out.shape == (1, seq_len, d_model)
    assert out.dtype == jnp.float32

    ref = _reference_pe(seq_len, d_model)
    assert jnp.allclose(out, ref, atol=1e-5, rtol=1e-5)

    # Full-length check: exercises the 128-lane padding path and the multi-tile
    # grid.  Loose tolerance only for sin/cos implementation differences at
    # large arguments (positions up to max_len-1).
    full = _pe_table(max_len, d_model)
    full_ref = _reference_pe(max_len, d_model)
    assert full.shape == (1, max_len, d_model)
    assert jnp.allclose(full, full_ref, atol=2e-3, rtol=0.0)

    # Second call: hits the lru_cache (same buffer, no kernel relaunch).
    out2 = positional_encoding(x, d_model=d_model, max_len=max_len)
    assert jnp.allclose(out2, ref, atol=1e-5, rtol=1e-5)

    print("KERNEL_OK")
</pallas_src>

<mosaic_0001>
module attributes {stable_mosaic.version = 11 : i64} {
  func.func @_pe_kernel(%arg0: i32, %arg1: memref<1x128xf32, #tpu.memory_space<vmem>>, %arg2: memref<256x128xf32, #tpu.memory_space<vmem>>) attributes {dimension_semantics = [#tpu.dimension_semantics<parallel>], iteration_bounds = array<i64: 2>, scalar_prefetch = 0 : i64, scratch_operands = 0 : i64, tpu.core_type = #tpu.core_type<tc>, window_params = [{pipeline_mode = #tpu.pipeline_mode<synchronous>, transform_indices = @transform_0, window_bounds = array<i64: 1, 128>}, {transform_indices = @transform_1, window_bounds = array<i64: 256, 128>}]} {
    %c256_i32 = arith.constant 256 : i32
    %0 = arith.muli %arg0, %c256_i32 : i32
    %1 = arith.sitofp %0 : i32 to f32
    %2 = tpu.iota {dimensions = array<i32: 0>} : vector<256x128xi32>
    %3 = arith.sitofp %2 : vector<256x128xi32> to vector<256x128xf32>
    %4 = vector.broadcast %1 : f32 to vector<256x128xf32>
    %5 = arith.addf %3, %4 : vector<256x128xf32>
    %c0 = arith.constant 0 : index
    %c0_0 = arith.constant 0 : index
    %6 = vector.load %arg1[%c0, %c0_0] : memref<1x128xf32, #tpu.memory_space<vmem>>, vector<1x128xf32>
    %7 = vector.broadcast %6 : vector<1x128xf32> to vector<256x128xf32>
    %8 = arith.mulf %5, %7 : vector<256x128xf32>
    %9 = tpu.iota {dimensions = array<i32: 1>} : vector<256x128xi32>
    %c1_i32 = arith.constant 1 : i32
    %10 = vector.broadcast %c1_i32 : i32 to vector<256x128xi32>
    %11 = arith.andi %9, %10 : vector<256x128xi32>
    %c1_i32_1 = arith.constant 1 : i32
    %12 = vector.broadcast %c1_i32_1 : i32 to vector<256x128xi32>
    %13 = arith.cmpi eq, %11, %12 : vector<256x128xi32>
    %14 = math.cos %8 : vector<256x128xf32>
    %15 = math.sin %8 : vector<256x128xf32>
    %16 = arith.select %13, %14, %15 : vector<256x128xi1>, vector<256x128xf32>
    %c0_2 = arith.constant 0 : index
    %c0_3 = arith.constant 0 : index
    %17 = vector.load %arg2[%c0_2, %c0_3] : memref<256x128xf32, #tpu.memory_space<vmem>>, vector<256x128xf32>
    tpu.vector_store %arg2[%c0_2, %c0_3], %16 {strides = array<i32>} : memref<256x128xf32, #tpu.memory_space<vmem>>, vector<256x128xf32>,
    return
  }
  func.func @transform_0(%arg0: i32) -> (i32, i32) {
    %c0_i32 = arith.constant 0 : i32
    %c0_i32_0 = arith.constant 0 : i32
    %c0_i32_1 = arith.constant 0 : i32
    return %c0_i32, %c0_i32_0 : i32, i32
  }
  func.func @transform_1(%arg0: i32) -> (i32, i32) {
    %c0_i32 = arith.constant 0 : i32
    %c0_i32_0 = arith.constant 0 : i32
    return %arg0, %c0_i32 : i32, i32
  }
}

</mosaic_0001>

<bundles_post_ra>
// kernel: tpu_custom_call.1
= control target key start
LH: loop header
LB: loop body
LE: loop exit
PB: predicated region body
PF: predicated region fallthrough
CT: control target
= control target key end

     0   :  { %6 = vsyncpa [#allocation3], 0  ;;  %s12810_s0 = inlined_call_operand.hbm [shape: f32[1,128], index: 0, kind: input, shape index: {}]   ;;  %s12811_s1 = inlined_call_operand.hbm [shape: f32[512,128], index: 1, kind: output, shape index: {}]  }
   0x1   :  { %7 = vsyncpa [#allocation4], 0 }
   0x2   :  { %9 = vsyncpa [#allocation4 + $0x1], 0  ;;  %s7717_s6 = smov 0   ;;  %s7719_s7 = smov 0  }
   0x3   :  { %s7721_s8 = smov 0   ;;  %s7723_s9 = smov 0  }
   0x4 LB: > { %s7738_s10 = sadd.s32 4294967295, %s7695_s9   ;;  %s7016_s11 = sadd.s32 4294967294, %s7695_s9   ;;  %s7695_s9 = sphi %s7723_s9, %s13726_s9   ;;  %s7691_s8 = sphi %s7721_s8, %s13725_s8   ;;  %s7687_s7 = sphi %s7719_s7, %s13724_s7   ;;  %s7683_s6 = sphi %s7717_s6, %s13723_s6  }
   0x5   : > { %s7742_s12 = sadd.s32 1, %s7695_s9   ;;  %s43_s13 = sadd.s32 1, %s7691_s8 }
   0x6   : > { %s40_s14 = ssub.s32 %s7695_s9, %s7742_s12  ;;  %p53_p0 = scmp.ne.s32.totalorder %s7691_s8, %s7687_s7 }
   0x7   : > { %p41_p1 = scmp.eq.s32.totalorder %s40_s14, 0  ;;  %p54_p2 = scmp.eq.s32.totalorder %s7738_s10, 1 }
   0x8   : > { %p59_p3 = scmp.ne.s32.totalorder %s7687_s7, %s7683_s6  ;;  %p60_p4 = scmp.eq.s32.totalorder %s7016_s11, 1 }
   0x9   : > { %s7753_s15 = scalar_select %p41_p1, %s7691_s8, %s43_s13  }
   0xa   : > { %p7755_p5 = por %p54_p2, %p53_p0  ;;  %p7759_p6 = por %p60_p4, %p59_p3 }
   0xb   : > { %p7017_p7 = scmp.ge.s32.totalorder %s7695_s9, 1  ;;  %p67_p8 = scmp.lt.s32.totalorder %s7695_s9, 3 }
   0xc   : > { %s13121_s16 = scalar_select %p7755_p5, 1, 0 }
   0xd   : > { %s13122_s17 = scalar_select %p7759_p6, 1, 0 }
   0xe   : > { %p12812_p9 = scmp.eq.s32.totalorder %s7738_s10, 0  ;;  %p7766_p10 = pnand %p7017_p7, %p67_p8 }
   0xf   : > { %s7697_s19 = smov [#allocation2]   ;;  %s7601_s24 = scalar_lea.hbm %s12810_s0, 16 }
  0x10   : > { %s13123_s18 = scalar_select %p7766_p10, 1, 0 }
  0x11   : > { %s80_s20 = sshll.u32 %s7697_s19, 4  ;;  %p7420_p11 = pneg %p7766_p10  ;;  %s81_s20 = int_to_ptr.vmem [resolvable:$true] %s80_s20 }
  0x12   : > { %p7602_p13 = scmp.ne.s32.totalorder %s12810_s0, %s7601_s24  ;;  %p7608_p3 = scmp.lt.u32.totalorder %s7601_s24, %s12810_s0 }
  0x13   : > { %p7774_p12 = pnand %p12812_p9, %p7420_p11 }
  0x15   : > { %p7603_p0 = pneg %p7774_p12 }
  0x17   : > { %p7604_p1 = pnand %p7603_p0, %p7602_p13 }
  0x19   : > { %p7605_p2 = pneg %p7604_p1 }
  0x1b   : > { %p7610_p4 = pnand %p7608_p3, %p7605_p2 }
  0x1d   : > { %7613 = shalt.err (!%p7610_p4)
}
  0x1e   : > { %s7614_s29 = scalar_lea.vmem %s81_s20, 16  ;;  %s7621_s30 = scalar_lea.vmem %s81_s20, 32 }
  0x1f   : > { %p7615_p7 = scmp.ne.s32.totalorder %s81_s20, %s7614_s29  ;;  %p7622_p9 = scmp.lt.s32.totalorder %s81_s20, %s81_s20 }
  0x20   : > { %p7623_p6 = scmp.lt.s32.totalorder %s7621_s30, %s7614_s29 }
  0x21   : > { %p7617_p8 = pnand %p7615_p7, %p7603_p0 }
  0x22   : > { %p7624_p5 = por %p7623_p6, %p7622_p9 }
  0x23   : > { %p7618_p11 = pneg %p7617_p8 }
  0x25   : > { %p7625_p10 = pnand %p7624_p5, %p7618_p11 }
  0x27   : > { %7628 = shalt.err (!%p7625_p10)
}
  0x28   : > { %7423 = dma.hbm_to_vmem [thread:$0]  (!%p7774_p12), %s12810_s0, 16, %s81_s20, [#allocation3]  }
  0x29   : > { %p13125_p13 = scmp.ne.s32.totalorder %s13123_s18, 0 }
  0x2b   : > { %93 = sbr.rel (%p13125_p13) target bundleno = 1004 (0x3ec), region = 24 }
  0x32   : > { %p13126_p1 = scmp.eq.s32.totalorder %s7738_s10, 0 }
  0x34   : > { %7674 = dma.done.wait (%p13126_p1), [#allocation3], 16   ;;  %p13127_p0 = pmov %p13126_p1 }
  0x35   : > { %v111_v0 = vlaneseq  ;;  %s7022_s4 = sshll.u32 %s7738_s10, 8  ;;  %v7809_v8 = vld [vmem:[#allocation2] ss:$0 sm:$0xff]  ;;  %v12827_v46 = vmov 2102212464   ;;  %s105_s11 = sand.u32 1, %s7687_s7  }
  0x36   : > { %7676 = vsyncadd (%p13127_p0), [#allocation3], 4294967280  ;;  %s110_s5 = scvt.s32.f32 %s7022_s4  ;;  %v12823_v48 = vmov 920167782   ;;  %v12821_v53 = vmov 1326507024  }
  0x37   : > { %v7800_v1 = vshrl.u32 %v111_v0, 7  ;;  %v7820_v22 = vand.u32 127, %v111_v0  ;;  %v12825_v56 = vmov 683565275   ;;  %v12818_v58 = vmov 2475754826  }
  0x38   : > { %v7805_v5 = vstv %s110_s5  ;;  %v12816_v61 = vmov 2131351028   ;;  %s7021_s13 = sshll.u32 %s105_s11, 8  ;;  %s7285_s18 = sshll.u32 %s7738_s10, 12 }
  0x39   : > { %v113_v2 = vadd.s32 8, %v7800_v1  ;;  %v144_v3 = vcvt.s32.f32 %v7800_v1  ;;  %v114_v19 = vadd.s32 16, %v7800_v1  ;;  %13130 = vst [vmem:[#allocation10_spill] sm:$0xff] %v7820_v22  ;;  %v7823_v24 = vadd.s32 24, %v7800_v1  ;;  %s12587_s14 = scalar_lea.vmem [#allocation5], %s7021_s13  ;;  %s12735_s21 = scalar_lea.hbm %s12811_s1, %s7285_s18 }
  0x3a   : > { %v7826_v25 = vadd.s32 32, %v7800_v1  ;;  %v7829_v26 = vadd.s32 40, %v7800_v1  ;;  %v7832_v27 = vadd.s32 48, %v7800_v1  ;;  %v7835_v28 = vadd.s32 56, %v7800_v1  ;;  %s6954_s19 = sshll.u32 %s12587_s14, 4  ;;  %s12769_s22 = scalar_lea.sflag [#allocation4], %s105_s11  ;;  %s12737_s19 = int_to_ptr.vmem [resolvable:$true] %s6954_s19 }
  0x3b   : > { %v145_v4 = vcvt.s32.f32 %v113_v2  ;;  %v177_v6 = vadd.f32 %v7805_v5, %v144_v3  ;;  %v146_v23 = vcvt.s32.f32 %v114_v19  ;;  %v7838_v29 = vadd.s32 64, %v7800_v1  ;;  %s7629_s23 = scalar_lea.vmem %s12737_s19, 4096  ;;  %p13721_p6 = scmp.ne.s32.totalorder %s13121_s16, 0 }
  0x3c   : > { %v7843_v32 = vadd.s32 72, %v7800_v1  ;;  %v7846_v33 = vadd.s32 80, %v7800_v1  ;;  %v7849_v34 = vadd.s32 88, %v7800_v1  ;;  %v7852_v35 = vadd.s32 96, %v7800_v1  ;;  %p7630_p5 = scmp.ne.s32.totalorder %s12737_s19, %s7629_s23  ;;  %s7704_s24 = smov [#allocation5]  }
  0x3d   : > { %v178_v7 = vadd.f32 %v7805_v5, %v145_v4  ;;  %v7812_v9 = vmul.f32 %v7809_v8, %v177_v6  ;;  %v7855_v36 = vadd.s32 104, %v7800_v1  ;;  %v7858_v37 = vadd.s32 112, %v7800_v1  ;;  %s7633_s25 = sshll.u32 %s7704_s24, 4  ;;  %s7634_s25 = int_to_ptr.vmem [resolvable:$false] %s7633_s25 }
  0x3e   : > { %v7861_v38 = vadd.s32 120, %v7800_v1  ;;  %v179_v39 = vadd.f32 %v7805_v5, %v146_v23  ;;  %v7865_v40 = vadd.s32 128, %v7800_v1  ;;  %v7868_v41 = vadd.s32 136, %v7800_v1  ;;  %p7631_p9 = pnand %p7630_p5, %p13721_p6  ;;  %s7635_s26 = scalar_lea.vmem %s7634_s25, 8192 }
  0x3f   : > { %13128 = vst [vmem:[#allocation8_spill] sm:$0xff] %v7812_v9  ;;  %v7815_v10 = vmul.f32 %v7809_v8, %v178_v7  ;;  %v255_v11 = vand.u32 2139095040, %v7812_v9  ;;  %v7871_v42 = vadd.s32 144, %v7800_v1  ;;  %v7874_v44 = vadd.s32 152, %v7800_v1  ;;  %p7636_p12 = scmp.lt.s32.totalorder %s12737_s19, %s7634_s25  ;;  %p7637_p2 = scmp.lt.s32.totalorder %s7635_s26, %s7629_s23 }
  0x40   : > { %v7877_v45 = vadd.s32 160, %v7800_v1  ;;  %v12815_v50 = vand.u32 2147483647, %v7812_v9  ;;  %v7889_v55 = vmul.f32 %v7809_v8, %v179_v39  ;;  %v7903_v3 = vadd.s32 168, %v7800_v1  ;;  %p7632_p10 = pneg %p7631_p9 }
  0x41   : > { %13129 = vst [vmem:[#allocation9_spill] sm:$0xff] %v7815_v10  ;;  %v358_v12 = vand.u32 2139095040, %v7815_v10  ;;  %v256_v13 = vshrl.u32 %v255_v11, 23  ;;  %v7906_v4 = vadd.s32 176, %v7800_v1  ;;  %v147_v6 = vcvt.s32.f32 %v7823_v24  ;;  %p7638_p3 = por %p7637_p2, %p7636_p12 }
  0x42   : > { %13131 = vst [vmem:[#allocation11_spill] sm:$0xff] %v7889_v55  ;;  %v259_v11 = vand.u32 8388607, %v12815_v50  ;;  %v13143_v22 = vmov 2102212464   ;;  %v13144_v9 = vcvt.s32.f32 %v7832_v27  ;;  %v13149_v27 = vcvt.s32.f32 %v7838_v29 }
  0x43   : > { %v359_v14 = vshrl.u32 %v358_v12, 23  ;;  %v7024_v15 = vadd.s32 4294967169, %v256_v13  ;;  %v12820_v13 = vand.u32 2147483647, %v7815_v10  ;;  %p7639_p4 = pnand %p7638_p3, %p7632_p10 }
  0x45   : > { %v7028_v16 = vadd.s32 4294967169, %v359_v14  ;;  %v262_v17 = vadd.s32 1, %v7024_v15 }
  0x47   : > { %vm263_vm0 = vcmp.gt.s32.totalorder %v262_v17, 0  ;;  %v365_v18 = vadd.s32 1, %v7028_v16  ;;  %v461_v16 = vand.u32 2139095040, %v7889_v55 }
  0x48   : > { %v264_v20 = vsel %vm263_vm0, %v262_v17, 0 }
  0x49   : > { %v266_v21 = vand.u32 31, %v264_v20  ;;  %vm366_vm1 = vcmp.gt.s32.totalorder %v365_v18, 0  ;;  %v7883_v51 = vshrl.u32 %v264_v20, 5 }
  0x4a   : > { %v367_v31 = vsel %vm366_vm1, %v365_v18, 0 }
  0x4b   : > { %v7840_v30 = vsub.s32 32, %v266_v21  ;;  %v369_v43 = vand.u32 31, %v367_v31  ;;  %v278_v47 = vshll.u32 %v12827_v46, %v266_v21  ;;  %v281_v52 = vshll.u32 %v12823_v48, %v266_v21 }
  0x4c   : > { %v269_v57 = vshll.u32 %v12825_v56, %v266_v21  ;;  %v272_v60 = vshll.u32 %v12818_v58, %v266_v21  ;;  %v275_v63 = vshll.u32 %v12816_v61, %v266_v21  ;;  %vm287_vm2 = vcmp.lt.s32.totalorder %v7883_v51, 4 }
  0x4d   : > { %v279_v49 = vshrl.u32 %v12823_v48, %v7840_v30  ;;  %v282_v54 = vshrl.u32 %v12821_v53, %v7840_v30  ;;  %v270_v59 = vshrl.u32 %v12818_v58, %v7840_v30  ;;  %v273_v62 = vshrl.u32 %v12816_v61, %v7840_v30 }
  0x4e   : > { %v276_v0 = vshrl.u32 %v12827_v46, %v7840_v30  ;;  %v7900_v2 = vsub.s32 32, %v369_v43  ;;  %vm284_vm3 = vcmp.lt.s32.totalorder %v7883_v51, 1  ;;  %v7916_v15 = vshrl.u32 %v367_v31, 5 }
  0x4f   : > { %v280_v7 = vor.u32 %v279_v49, %v278_v47  ;;  %v283_v12 = vor.u32 %v282_v54, %v281_v52  ;;  %v7913_v14 = vor.u32 %v270_v59, %v269_v57  ;;  %v7919_v17 = vor.u32 %v273_v62, %v272_v60 }
  0x50   : > { %v277_v18 = vor.u32 %v276_v0, %v275_v63  ;;  %v381_v19 = vshll.u32 %v12827_v46, %v369_v43  ;;  %v382_v20 = vshrl.u32 %v12823_v48, %v7900_v2  ;;  %vm286_vm4 = vcmp.lt.s32.totalorder %v7883_v51, 3 }
  0x51   : > { %v293_v21 = vsel %vm287_vm2, %v280_v7, 920167782  ;;  %v384_v23 = vshll.u32 %v12823_v48, %v369_v43  ;;  %v385_v24 = vshrl.u32 %v12821_v53, %v7900_v2  ;;  %v260_v31 = vor.u32 8388608, %v259_v11 }
  0x52   : > { %v297_v39 = vsel %vm287_vm2, %v283_v12, 1326507024  ;;  %v372_v47 = vshll.u32 %v12825_v56, %v369_v43  ;;  %v375_v49 = vshll.u32 %v12818_v58, %v369_v43  ;;  %v373_v52 = vshrl.u32 %v12818_v58, %v7900_v2 }
  0x53   : > { %v376_v54 = vshrl.u32 %v12816_v61, %v7900_v2  ;;  %v378_v57 = vshll.u32 %v12816_v61, %v369_v43  ;;  %v379_v59 = vshrl.u32 %v12827_v46, %v7900_v2  ;;  %vm285_vm5 = vcmp.lt.s32.totalorder %v7883_v51, 2 }
  0x54   : > { %v292_v60 = vsel %vm284_vm3, %v7913_v14, %v7919_v17  ;;  %v294_v62 = vsel %vm286_vm4, %v277_v18, %v293_v21  ;;  %v383_v63 = vor.u32 %v382_v20, %v381_v19  ;;  %v362_v0 = vand.u32 8388607, %v12820_v13 }
  0x55   : > { %v386_v11 = vor.u32 %v385_v24, %v384_v23  ;;  %vm390_vm6 = vcmp.lt.s32.totalorder %v7916_v15, 4  ;;  %v462_v43 = vshrl.u32 %v461_v16, 23  ;;  %v180_v12 = vadd.f32 %v7805_v5, %v147_v6 }
  0x56   : > { %v296_v50 = vsel %vm284_vm3, %v7919_v17, %v277_v18  ;;  %v298_v61 = vsel %vm286_vm4, %v280_v7, %v297_v39  ;;  %v7957_v58 = vshll.u32 %v260_v31, 8  ;;  %v295_v19 = vsel %vm285_vm5, %v292_v60, %v294_v62 }
  0x57   : > { %v374_v20 = vor.u32 %v373_v52, %v372_v47  ;;  %v377_v21 = vor.u32 %v376_v54, %v375_v49  ;;  %v380_v23 = vor.u32 %v379_v59, %v378_v57  ;;  %v7962_v24 = vadd.s32 184, %v7800_v1 }
  0x58   : > { %vm387_vm7 = vcmp.lt.s32.totalorder %v7916_v15, 1  ;;  %vm389_vm8 = vcmp.lt.s32.totalorder %v7916_v15, 3  ;;  %v396_v6 = vsel %vm390_vm6, %v383_v63, 920167782  ;;  %v299_v7 = vsel %vm285_vm5, %v296_v50, %v298_v61 }
  0x59   : > { %v363_v16 = vor.u32 8388608, %v362_v0  ;;  %v400_v31 = vsel %vm390_vm6, %v386_v11, 1326507024  ;;  %v7032_v39 = vadd.s32 4294967169, %v462_v43  ;;  %v7973_v47 = vadd.s32 192, %v7800_v1 }
  0x5a   : > { %v7976_v49 = vmul.f32 %v7809_v8, %v180_v12  ;;  %v7979_v52 = vmul.u32.u64.low %v7957_v58, %v295_v19  ;;  %v7980_v54 = vmul.u32.u64.high %v7957_v58, %v295_v19, %v7979_v52  ;;  %v268_v57 = vshrl.u32 %v12825_v56, %v7840_v30 }
  0x5b   : > { %vm388_vm9 = vcmp.lt.s32.totalorder %v7916_v15, 2  ;;  %v395_v50 = vsel %vm387_vm7, %v374_v20, %v377_v21  ;;  %v397_v61 = vsel %vm389_vm8, %v380_v23, %v396_v6  ;;  %v399_v62 = vsel %vm387_vm7, %v377_v21, %v380_v23 }
  0x5c   : > { %13132 = vst [vmem:[#allocation12_spill] sm:$0xff] %v7976_v49  ;;  %13133 = vst [vmem:[#allocation13_spill] sm:$0xff] %v7979_v52  ;;  %v7991_v59 = vmul.u32.u64.low %v7957_v58, %v299_v7  ;;  %v7992_v60 = vmul.u32.u64.high %v7957_v58, %v299_v7, %v7991_v59  ;;  %v401_v0 = vsel %vm389_vm8, %v383_v63, %v400_v31  ;;  %v7999_v30 = vadd.s32 200, %v7800_v1 }
  0x5d   : > { %v289_v11 = vsel %vm287_vm2, %v277_v18, 2102212464  ;;  %v8003_v43 = vshll.u32 %v363_v16, 8  ;;  %v468_v12 = vadd.s32 1, %v7032_v39  ;;  %v8006_v19 = vadd.s32 208, %v7800_v1 }
  0x5e   : > { %13134 = vst [vmem:[#allocation14_spill] sm:$0xff] %v7992_v60  ;;  %v8009_v6 = vadd.s32 216, %v7800_v1  ;;  %v8012_v7 = vadd.s32 224, %v7800_v1  ;;  %v398_v63 = vsel %vm388_vm9, %v395_v50, %v397_v61  ;;  %v8017_v31 = vadd.s32 232, %v7800_v1 }
  0x5f   : > { %v8020_v18 = vadd.s32 240, %v7800_v1  ;;  %v8023_v16 = vadd.s32 248, %v7800_v1  ;;  %v402_v39 = vsel %vm388_vm9, %v399_v62, %v401_v0  ;;  %v288_v13 = vsel %vm284_vm3, %v268_v57, %v7913_v14 }
  0x60   : > { %v290_v50 = vsel %vm286_vm4, %v7919_v17, %v289_v11  ;;  %v564_v61 = vand.u32 2139095040, %v7976_v49  ;;  %v8037_v1 = vmul.u32.u64.low %v8003_v43, %v398_v63  ;;  %v8038_v48 = vmul.u32.u64.high %v8003_v43, %v398_v63, %v8037_v1 }
  0x61   : > { %vm469_vm10 = vcmp.gt.s32.totalorder %v468_v12, 0  ;;  %v371_v0 = vshrl.u32 %v12825_v56, %v7900_v2  ;;  %v8045_v14 = vmul.u32.u64.low %v8003_v43, %v402_v39  ;;  %v8046_v57 = vmul.u32.u64.high %v8003_v43, %v402_v39, %v8045_v14 }
  0x62   : > { %13135 = vst [vmem:[#allocation15_spill] sm:$0xff] %v8037_v1  ;;  %v291_v11 = vsel %vm285_vm5, %v288_v13, %v290_v50  ;;  %v310_v53 = vadd.s32 1, %v7980_v54  ;;  %v392_v63 = vsel %vm390_vm6, %v380_v23, 2102212464  ;;  %vm309_vm11 = vc.u32 %v7992_v60, %v7979_v52 }
  0x63   : > { %13136 = vst [vmem:[#allocation16_spill] sm:$0xff] %v8046_v57  ;;  %v470_v2 = vsel %vm469_vm10, %v468_v12, 0  ;;  %v565_v62 = vshrl.u32 %v564_v61, 23  ;;  %v307_v50 = vmul.u32 %v7957_v58, %v291_v11  ;;  %v391_v23 = vsel %vm387_vm7, %v371_v0, %v374_v20 }
  0x64   : > { %v393_v59 = vsel %vm389_vm8, %v377_v21, %v392_v63  ;;  %v311_v14 = vsel %vm309_vm11, %v310_v53, %v7980_v54  ;;  %v472_v39 = vand.u32 31, %v470_v2  ;;  %v413_v0 = vadd.s32 1, %v8038_v48 }
  0x65   : > { %v7036_v58 = vadd.s32 4294967169, %v565_v62  ;;  %v394_v21 = vsel %vm388_vm9, %v391_v23, %v393_v59  ;;  %v8080_v54 = vadd.s32 %v311_v14, %v307_v50  ;;  %vm412_vm12 = vc.u32 %v8046_v57, %v8037_v1 }
  0x66   : > { %v8087_v13 = vsub.s32 32, %v472_v39  ;;  %v410_v23 = vmul.u32 %v8003_v43, %v394_v21  ;;  %v414_v62 = vsel %vm412_vm12, %v413_v0, %v8038_v48  ;;  %v8099_v15 = vshrl.u32 %v470_v2, 5 }
  0x67   : > { %v571_v53 = vadd.s32 1, %v7036_v58  ;;  %v313_v20 = vadd.s32 536870912, %v8080_v54  ;;  %v484_v43 = vshll.u32 %v12827_v46, %v472_v39  ;;  %v13137_v58 = vmov 920167782  }
  0x68   : > { %v485_v21 = vshrl.u32 %v13137_v58, %v8087_v13  ;;  %v8104_v50 = vadd.s32 %v414_v62, %v410_v23  ;;  %v475_v63 = vshll.u32 %v12825_v56, %v472_v39  ;;  %v487_v48 = vshll.u32 %v13137_v58, %v472_v39 }
  0x69   : > { %vm572_vm13 = vcmp.gt.s32.totalorder %v571_v53, 0  ;;  %v13138_v0 = vmov 1326507024   ;;  %v13139_v59 = vmov 2475754826   ;;  %v13142_v23 = vcvt.s32.f32 %v7829_v26 }
  0x6a   : > { %v573_v14 = vsel %vm572_vm13, %v571_v53, 0  ;;  %v488_v11 = vshrl.u32 %v13138_v0, %v8087_v13  ;;  %v476_v17 = vshrl.u32 %v13139_v59, %v8087_v13  ;;  %v478_v2 = vshll.u32 %v13139_v59, %v472_v39 }
  0x6b   : > { %v13140_v61 = vmov 2131351028   ;;  %v575_v51 = vand.u32 31, %v573_v14  ;;  %v13141_v53 = vcvt.s32.f32 %v7826_v25  ;;  %v8121_v56 = vadd.f32 %v7805_v5, %v13142_v23 }
  0x6c   : > { %v479_v12 = vshrl.u32 %v13140_v61, %v8087_v13  ;;  %v481_v46 = vshll.u32 %v13140_v61, %v472_v39  ;;  %v482_v10 = vshrl.u32 %v13143_v22, %v8087_v13  ;;  %v8129_v1 = vadd.f32 %v7805_v5, %v13144_v9 }
  0x6d   : > { %v181_v62 = vadd.f32 %v7805_v5, %v13141_v53  ;;  %v13145_v57 = vcvt.s32.f32 %v7835_v28  ;;  %v13147_v26 = vand.u32 2147483647, %v7889_v55  ;;  %v486_v23 = vor.u32 %v485_v21, %v484_v43 }
  0x6e   : > { %v8138_v52 = vshrl.u32 %v313_v20, 30  ;;  %v416_v39 = vadd.s32 536870912, %v8104_v50  ;;  %v489_v60 = vor.u32 %v488_v11, %v487_v48  ;;  %vm493_vm14 = vcmp.lt.s32.totalorder %v8099_v15, 4 }
  0x6f   : > { %v8134_v25 = vadd.f32 %v7805_v5, %v13145_v57  ;;  %v465_v53 = vand.u32 8388607, %v13147_v26  ;;  %v8145_v9 = vadd.f32 %v7805_v5, %v13149_v27  ;;  %v8147_v28 = vor.u32 %v476_v17, %v475_v63 }
  0x70   : > { %13148 = vst [vmem:[#allocation18_spill] sm:$0xff] %v8138_v52  ;;  %v8149_v57 = vor.u32 %v479_v12, %v478_v2  ;;  %v13151_v43 = vcvt.s32.f32 %v7843_v32  ;;  %v13153_v11 = vcvt.s32.f32 %v7846_v33  ;;  %v483_v29 = vor.u32 %v482_v10, %v481_v46 }
  0x71   : > { %13146 = vst [vmem:[#allocation17_spill] sm:$0xff] %v8134_v25  ;;  %13150 = vst [vmem:[#allocation19_spill] sm:$0xff] %v8145_v9  ;;  %v8151_v25 = vsub.s32 32, %v575_v51  ;;  %vm490_vm15 = vcmp.lt.s32.totalorder %v8099_v15, 1  ;;  %v8165_v17 = vmul.f32 %v7809_v8, %v181_v62  ;;  %vm492_vm0 = vcmp.lt.s32.totalorder %v8099_v15, 3 }
  0x72   : > { %v8156_v20 = vadd.f32 %v7805_v5, %v13151_v43  ;;  %v8161_v21 = vadd.f32 %v7805_v5, %v13153_v11  ;;  %v499_v12 = vsel %vm493_vm14, %v486_v23, 920167782  ;;  %v315_v63 = vshll.u32 %v8138_v52, 30 }
  0x73   : > { %13155 = vst [vmem:[#allocation22_spill] sm:$0xff] %v8165_v17  ;;  %v8172_v48 = vshrl.u32 %v416_v39, 30  ;;  %v466_v33 = vor.u32 8388608, %v465_v53  ;;  %v503_v10 = vsel %vm493_vm14, %v489_v60, 1326507024  ;;  %vm491_vm1 = vcmp.lt.s32.totalorder %v8099_v15, 2 }
  0x74   : > { %13152 = vst [vmem:[#allocation20_spill] sm:$0xff] %v8156_v20  ;;  %13154 = vst [vmem:[#allocation21_spill] sm:$0xff] %v8161_v21  ;;  %v498_v46 = vsel %vm490_vm15, %v8147_v28, %v8149_v57  ;;  %v587_v2 = vshll.u32 %v13143_v22, %v575_v51  ;;  %v588_v62 = vshrl.u32 %v13137_v58, %v8151_v25  ;;  %v8186_v39 = vshrl.u32 %v573_v14, 5 }
  0x75   : > { %13156 = vst [vmem:[#allocation23_spill] sm:$0xff] %v8172_v48  ;;  %v500_v26 = vsel %vm492_vm0, %v483_v29, %v499_v12  ;;  %v590_v53 = vshll.u32 %v13137_v58, %v575_v51  ;;  %v591_v60 = vshrl.u32 %v13138_v0, %v8151_v25  ;;  %v502_v27 = vsel %vm490_vm15, %v8149_v57, %v483_v29 }
  0x76   : > { %v504_v43 = vsel %vm492_vm0, %v486_v23, %v503_v10  ;;  %v13157_v11 = vmov 683565275   ;;  %v581_v55 = vshll.u32 %v13139_v59, %v575_v51  ;;  %v579_v14 = vshrl.u32 %v13139_v59, %v8151_v25 }
  0x77   : > { %v578_v32 = vshll.u32 %v13157_v11, %v575_v51  ;;  %v582_v12 = vshrl.u32 %v13140_v61, %v8151_v25  ;;  %v584_v52 = vshll.u32 %v13140_v61, %v575_v51  ;;  %v585_v0 = vshrl.u32 %v13143_v22, %v8151_v25 }
  0x78   : > { %v13158_v58 = vcvt.s32.f32 %v7849_v34  ;;  %v13159_v23 = vcvt.s32.f32 %v7852_v35  ;;  %v418_v59 = vshll.u32 %v8172_v48, 30  ;;  %v589_v20 = vor.u32 %v588_v62, %v587_v2 }
  0x79   : > { %v8217_v9 = vsub.s32 %v8080_v54, %v315_v63  ;;  %v13160_v51 = vand.u32 2147483647, %v7976_v49  ;;  %v592_v22 = vor.u32 %v591_v60, %v590_v53  ;;  %vm596_vm2 = vcmp.lt.s32.totalorder %v8186_v39, 4  ;;  %v13206_v49 = vld [vmem:[#allocation16_spill] sm:$0xff] }
  0x7a   : > { %v8208_v21 = vadd.f32 %v7805_v5, %v13158_v58  ;;  %v8213_v10 = vadd.f32 %v7805_v5, %v13159_v23  ;;  %v13161_v34 = vcvt.s32.f32 %v7855_v36  ;;  %v501_v35 = vsel %vm491_vm1, %v498_v46, %v500_v26 }
  0x7b   : > { %v568_v61 = vand.u32 8388607, %v13160_v51  ;;  %v505_v2 = vsel %vm491_vm1, %v502_v27, %v504_v43  ;;  %v8231_v62 = vshll.u32 %v466_v33, 8  ;;  %v8233_v54 = vor.u32 %v579_v14, %v578_v32 }
  0x7c   : > { %v8225_v58 = vadd.f32 %v7805_v5, %v13161_v34  ;;  %v8235_v63 = vor.u32 %v582_v12, %v581_v55  ;;  %v586_v53 = vor.u32 %v585_v0, %v584_v52  ;;  %v667_v60 = vand.u32 2139095040, %v8165_v17 }
  0x7d   : > { %v8239_v36 = vsub.s32 %v8104_v50, %v418_v59  ;;  %vm593_vm3 = vcmp.lt.s32.totalorder %v8186_v39, 1  ;;  %vm595_vm4 = vcmp.lt.s32.totalorder %v8186_v39, 3  ;;  %v602_v46 = vsel %vm596_vm2, %v589_v20, 920167782 }
  0x7e   : > { %v318_v33 = vsub.s32 0, %v8217_v9  ;;  %v474_v32 = vshrl.u32 %v13157_v11, %v8087_v13  ;;  %v569_v55 = vor.u32 8388608, %v568_v61  ;;  %v606_v52 = vsel %vm596_vm2, %v592_v22, 1326507024 }
  0x7f   : > { %v8251_v0 = vmul.u32.u64.low %v8231_v62, %v505_v2  ;;  %v8252_v59 = vmul.u32.u64.high %v8231_v62, %v505_v2, %v8251_v0  ;;  %v8255_v50 = vmul.u32.u64.low %v8231_v62, %v501_v35  ;;  %v8256_v26 = vmul.u32.u64.high %v8231_v62, %v501_v35, %v8255_v50 }
  0x80   : > { %vm594_vm5 = vcmp.lt.s32.totalorder %v8186_v39, 2  ;;  %v601_v13 = vsel %vm593_vm3, %v8233_v54, %v8235_v63  ;;  %v603_v61 = vsel %vm595_vm4, %v586_v53, %v602_v46  ;;  %v668_v22 = vshrl.u32 %v667_v60, 23 }
  0x81   : > { %13162 = vst [vmem:[#allocation24_spill] sm:$0xff] %v8255_v50  ;;  %v421_v27 = vsub.s32 0, %v8239_v36  ;;  %v495_v43 = vsel %vm493_vm14, %v483_v29, 2102212464  ;;  %v605_v14 = vsel %vm593_vm3, %v8235_v63, %v586_v53  ;;  %v607_v12 = vsel %vm595_vm4, %v589_v20, %v606_v52 }
  0x82   : > { %v13163_v23 = vcvt.s32.f32 %v7858_v37  ;;  %v7025_v34 = vmin.u32 %v318_v33, %v8217_v9  ;;  %v8280_v35 = vshll.u32 %v569_v55, 8  ;;  %v7040_v2 = vadd.s32 4294967169, %v668_v22 }
  0x83   : > { %v13164_v60 = vcvt.s32.f32 %v7861_v38  ;;  %v13165_v46 = vcvt.s32.f32 %v7865_v40  ;;  %v13166_v37 = vcvt.s32.f32 %v7868_v41  ;;  %v604_v33 = vsel %vm594_vm5, %v601_v13, %v603_v61 }
  0x84   : > { %v8277_v51 = vadd.f32 %v7805_v5, %v13163_v23  ;;  %v494_v38 = vsel %vm490_vm15, %v474_v32, %v8147_v28  ;;  %v496_v55 = vsel %vm492_vm0, %v8149_v57, %v495_v43  ;;  %v608_v40 = vsel %vm594_vm5, %v605_v14, %v607_v12 }
  0x85   : > { %v8285_v29 = vadd.f32 %v7805_v5, %v13164_v60  ;;  %v8290_v0 = vadd.f32 %v7805_v5, %v13165_v46  ;;  %v8295_v20 = vadd.f32 %v7805_v5, %v13166_v37  ;;  %v674_v52 = vadd.s32 1, %v7040_v2 }
  0x86   : > { %v13167_v41 = vcvt.s32.f32 %v7871_v42  ;;  %v13168_v23 = vcvt.s32.f32 %v7874_v44  ;;  %v13169_v28 = vcvt.s32.f32 %v7877_v45  ;;  %v7029_v57 = vmin.u32 %v421_v27, %v8239_v36 }
  0x87   : > { %v320_v61 = vclz %v7025_v34  ;;  %v8324_v43 = vmul.u32.u64.low %v8280_v35, %v604_v33  ;;  %v8325_v14 = vmul.u32.u64.high %v8280_v35, %v604_v33, %v8324_v43  ;;  %vm675_vm6 = vcmp.gt.s32.totalorder %v674_v52, 0 }
  0x88   : > { %v8310_v22 = vadd.f32 %v7805_v5, %v13167_v41  ;;  %v8315_v13 = vadd.f32 %v7805_v5, %v13168_v23  ;;  %v8320_v32 = vadd.f32 %v7805_v5, %v13169_v28  ;;  %v497_v42 = vsel %vm491_vm1, %v494_v38, %v496_v55 }
  0x89   : > { %13170 = vst [vmem:[#allocation25_spill] sm:$0xff] %v8324_v43  ;;  %v516_v44 = vadd.s32 1, %v8256_v26  ;;  %v8332_v12 = vmul.u32.u64.low %v8280_v35, %v608_v40  ;;  %v8333_v45 = vmul.u32.u64.high %v8280_v35, %v608_v40, %v8332_v12  ;;  %v13172_v2 = vcvt.s32.f32 %v7903_v3 }
  0x8a   : > { %vm515_vm7 = vc.u32 %v8252_v59, %v8255_v50  ;;  %v577_v34 = vshrl.u32 %v13157_v11, %v8151_v25  ;;  %v676_v60 = vsel %vm675_vm6, %v674_v52, 0  ;;  %v13173_v15 = vcvt.s32.f32 %v7906_v4 }
  0x8b   : > { %13171 = vst [vmem:[#allocation26_spill] sm:$0xff] %v8333_v45  ;;  %v8338_v27 = vadd.f32 %v7805_v5, %v13172_v2  ;;  %v13174_v37 = vcvt.s32.f32 %v7962_v24  ;;  %v423_v3 = vclz %v7029_v57  ;;  %v598_v38 = vsel %vm596_vm2, %v586_v53, 2102212464 }
  0x8c   : > { %v8347_v46 = vadd.f32 %v7805_v5, %v13173_v15  ;;  %v13175_v55 = vcvt.s32.f32 %v7973_v47  ;;  %v13176_v25 = vcvt.s32.f32 %v7999_v30  ;;  %v7026_v52 = vadd.s32 4294967294, %v320_v61  ;;  %v13191_v15 = vld [vmem:[#allocation19_spill] sm:$0xff] }
  0x8d   : > { %v8352_v33 = vadd.f32 %v7805_v5, %v13174_v37  ;;  %v513_v24 = vmul.u32 %v8231_v62, %v497_v42  ;;  %v13177_v41 = vcvt.s32.f32 %v8006_v19  ;;  %v13178_v53 = vcvt.s32.f32 %v8009_v6  ;;  %v13193_v37 = vld [vmem:[#allocation20_spill] sm:$0xff] }
  0x8e   : > { %v8359_v40 = vadd.f32 %v7805_v5, %v13175_v55  ;;  %v8364_v4 = vadd.f32 %v7805_v5, %v13176_v25  ;;  %v517_v28 = vsel %vm515_vm7, %v516_v44, %v8256_v26  ;;  %v678_v57 = vand.u32 31, %v676_v60 }
  0x8f   : > { %v8370_v23 = vadd.f32 %v7805_v5, %v13177_v41  ;;  %v8375_v47 = vadd.f32 %v7805_v5, %v13178_v53  ;;  %v13179_v30 = vcvt.s32.f32 %v8012_v7  ;;  %v8385_v62 = vmul.f32 %v7809_v8, %v8121_v56  ;;  %v13199_v41 = vld [vmem:[#allocation13_spill] sm:$0xff] }
  0x90   : > { %v597_v19 = vsel %vm593_vm3, %v577_v34, %v8233_v54  ;;  %v599_v6 = vsel %vm595_vm4, %v8235_v63, %v598_v38  ;;  %v13182_v26 = vcvt.s32.f32 %v8017_v31  ;;  %v13184_v7 = vcvt.s32.f32 %v8020_v18  ;;  %v13189_v34 = vld [vmem:[#allocation17_spill] sm:$0xff] }
  0x91   : > { %v8381_v12 = vadd.f32 %v7805_v5, %v13179_v30  ;;  %13181 = vst [vmem:[#allocation28_spill] sm:$0xff] %v8385_v62  ;;  %v13186_v56 = vcvt.s32.f32 %v8023_v16  ;;  %v7030_v54 = vadd.s32 4294967294, %v423_v3  ;;  %v8410_v2 = vmul.f32 %v7809_v8, %v8129_v1  ;;  %v13195_v38 = vld [vmem:[#allocation21_spill] sm:$0xff] }
  0x92   : > { %v8396_v61 = vadd.f32 %v7805_v5, %v13182_v26  ;;  %v8401_v42 = vadd.f32 %v7805_v5, %v13184_v7  ;;  %vm7027_vm8 = vcmp.lt.s32.totalorder %v7026_v52, 0  ;;  %v8412_v31 = vadd.s32 %v517_v28, %v513_v24  ;;  %v13198_v24 = vld [vmem:[#allocation14_spill] sm:$0xff] }
  0x93   : > { %13180 = vst [vmem:[#allocation27_spill] sm:$0xff] %v8381_v12  ;;  %v8406_v44 = vadd.f32 %v7805_v5, %v13186_v56  ;;  %13188 = vst [vmem:[#allocation32_spill] sm:$0xff] %v8410_v2  ;;  %v619_v63 = vadd.s32 1, %v8325_v14  ;;  %v8417_v18 = vmul.f32 %v7809_v8, %v13189_v34  ;;  %v600_v16 = vsel %vm594_vm5, %v597_v19, %v599_v6 }
  0x94   : > { %13183 = vst [vmem:[#allocation29_spill] sm:$0xff] %v8396_v61  ;;  %13185 = vst [vmem:[#allocation30_spill] sm:$0xff] %v8401_v42  ;;  %vm618_vm9 = vc.u32 %v8333_v45, %v8324_v43  ;;  %v8423_v5 = vsub.s32 32, %v678_v57  ;;  %v8427_v1 = vmul.f32 %v7809_v8, %v13191_v15  ;;  %v8431_v3 = vmul.f32 %v7809_v8, %v13193_v37 }
  0x95   : > { %13187 = vst [vmem:[#allocation31_spill] sm:$0xff] %v8406_v44  ;;  %13190 = vst [vmem:[#allocation17_spill] sm:$0xff] %v8417_v18  ;;  %v8435_v55 = vmul.f32 %v7809_v8, %v13195_v38  ;;  %v770_v39 = vand.u32 2139095040, %v8385_v62  ;;  %v8440_v25 = vmul.f32 %v7809_v8, %v8208_v21  ;;  %v308_v53 = vadd.s32 %v13199_v41, %v13198_v24  ;;  %v13207_v44 = vld [vmem:[#allocation15_spill] sm:$0xff] }
  0x96   : > { %13192 = vst [vmem:[#allocation19_spill] sm:$0xff] %v8427_v1  ;;  %13194 = vst [vmem:[#allocation20_spill] sm:$0xff] %v8431_v3  ;;  %v8444_v28 = vsel %vm7027_vm8, 0, %v7026_v52  ;;  %vm7031_vm10 = vcmp.lt.s32.totalorder %v7030_v54, 0  ;;  %v519_v30 = vadd.s32 536870912, %v8412_v31  ;;  %v616_v19 = vmul.u32 %v8280_v35, %v600_v16 }
  0x97   : > { %13196 = vst [vmem:[#allocation21_spill] sm:$0xff] %v8435_v55  ;;  %13197 = vst [vmem:[#allocation33_spill] sm:$0xff] %v8440_v25  ;;  %v620_v6 = vsel %vm618_vm9, %v619_v63, %v8325_v14  ;;  %v13200_v7 = vmov 2102212464   ;;  %v13201_v34 = vmov 920167782   ;;  %v681_v14 = vshll.u32 %v13157_v11, %v678_v57 }
  0x98   : > { %v690_v56 = vshll.u32 %v13200_v7, %v678_v57  ;;  %v691_v21 = vshrl.u32 %v13201_v34, %v8423_v5  ;;  %v693_v15 = vshll.u32 %v13201_v34, %v678_v57  ;;  %v13202_v37 = vmov 1326507024  }
  0x99   : > { %v694_v52 = vshrl.u32 %v13202_v37, %v8423_v5  ;;  %v328_v38 = vsub.s32 4294967266, %v8444_v28  ;;  %v8457_v24 = vsel %vm7031_vm10, 0, %v7030_v54  ;;  %v8459_v41 = vshrl.u32 %v676_v60, 5 }
  0x9a   : > { %v771_v35 = vshrl.u32 %v770_v39, 23  ;;  %v13203_v63 = vmov 2475754826   ;;  %v13204_v25 = vmov 2131351028   ;;  %v8467_v3 = vshrl.u32 %v519_v30, 30 }
  0x9b   : > { %v682_v16 = vshrl.u32 %v13203_v63, %v8423_v5  ;;  %v684_v26 = vshll.u32 %v13203_v63, %v678_v57  ;;  %v685_v55 = vshrl.u32 %v13204_v25, %v8423_v5  ;;  %v8469_v1 = vadd.s32 %v620_v6, %v616_v19 }
  0x9c   : > { %13205 = vst [vmem:[#allocation14_spill] sm:$0xff] %v8467_v3  ;;  %v687_v54 = vshll.u32 %v13204_v25, %v678_v57  ;;  %v688_v60 = vshrl.u32 %v13200_v7, %v8423_v5  ;;  %v324_v39 = vsub.s32 32, %v8444_v28  ;;  %v411_v42 = vadd.s32 %v13207_v44, %v13206_v49 }
  0x9d   : > { %v692_v61 = vor.u32 %v691_v21, %v690_v56  ;;  %v695_v48 = vor.u32 %v694_v52, %v693_v15  ;;  %v329_v12 = vadd.s32 127, %v328_v38  ;;  %v13208_v43 = vand.u32 2147483647, %v8165_v17 }
  0x9e   : > { %vm699_vm11 = vcmp.lt.s32.totalorder %v8459_v41, 4  ;;  %v7044_v30 = vadd.s32 4294967169, %v771_v35  ;;  %v325_v57 = vshll.u32 %v8217_v9, %v8444_v28  ;;  %v431_v19 = vsub.s32 4294967266, %v8457_v24 }
  0x9f   : > { %v671_v45 = vand.u32 8388607, %v13208_v43  ;;  %v683_v6 = vor.u32 %v682_v16, %v681_v14  ;;  %v8483_v18 = vor.u32 %v685_v55, %v684_v26  ;;  %v521_v50 = vshll.u32 %v8467_v3, 30 }
  0xa0   : > { %v622_v49 = vadd.s32 536870912, %v8469_v1  ;;  %v689_v44 = vor.u32 %v688_v60, %v687_v54  ;;  %vm696_vm12 = vcmp.lt.s32.totalorder %v8459_v41, 1  ;;  %vm698_vm13 = vcmp.lt.s32.totalorder %v8459_v41, 3 }
  0xa1   : > { %v705_v43 = vsel %vm699_vm11, %v692_v61, 920167782  ;;  %v709_v9 = vsel %vm699_vm11, %v695_v48, 1326507024  ;;  %v777_v28 = vadd.s32 1, %v7044_v30  ;;  %v326_v56 = vshrl.u32 %v308_v53, %v324_v39 }
  0xa2   : > { %v330_v21 = vshll.u32 %v329_v12, 23  ;;  %v427_v55 = vsub.s32 32, %v8457_v24  ;;  %v672_v26 = vor.u32 8388608, %v671_v45  ;;  %v432_v15 = vadd.s32 127, %v431_v19 }
  0xa3   : > { %vm697_vm14 = vcmp.lt.s32.totalorder %v8459_v41, 2  ;;  %v704_v52 = vsel %vm696_vm12, %v683_v6, %v8483_v18  ;;  %vm778_vm15 = vcmp.gt.s32.totalorder %v777_v28, 0  ;;  %v706_v38 = vsel %vm698_vm13, %v689_v44, %v705_v43 }
  0xa4   : > { %v708_v48 = vsel %vm696_vm12, %v8483_v18, %v689_v44  ;;  %v710_v12 = vsel %vm698_vm13, %v692_v61, %v709_v9  ;;  %v779_v53 = vsel %vm778_vm15, %v777_v28, 0  ;;  %v8507_v45 = vmul.f32 %v7809_v8, %v8213_v10 }
  0xa5   : > { %v8511_v35 = vmul.f32 %v7809_v8, %v8225_v58  ;;  %v8514_v14 = vsub.s32 %v8412_v31, %v521_v50  ;;  %v8516_v16 = vshrl.u32 %v622_v49, 30  ;;  %v8520_v54 = vmul.f32 %v7809_v8, %v8277_v51 }
  0xa6   : > { %13209 = vst [vmem:[#allocation13_spill] sm:$0xff] %v8507_v45  ;;  %v8524_v61 = vmul.f32 %v7809_v8, %v8285_v29  ;;  %v8526_v60 = vshll.u32 %v672_v26, 8  ;;  %v781_v10 = vand.u32 31, %v779_v53  ;;  %v8528_v39 = vor.u32 %v326_v56, %v325_v57 }
  0xa7   : > { %13210 = vst [vmem:[#allocation16_spill] sm:$0xff] %v8511_v35  ;;  %13211 = vst [vmem:[#allocation15_spill] sm:$0xff] %v8516_v16  ;;  %v8530_v58 = vor.u32 4788187, %v330_v21  ;;  %v707_v50 = vsel %vm697_vm14, %v704_v52, %v706_v38  ;;  %v711_v31 = vsel %vm697_vm14, %v708_v48, %v710_v12  ;;  %v428_v51 = vshll.u32 %v8239_v36, %v8457_v24 }
  0xa8   : > { %13212 = vst [vmem:[#allocation34_spill] sm:$0xff] %v8520_v54  ;;  %13213 = vst [vmem:[#allocation35_spill] sm:$0xff] %v8524_v61  ;;  %v429_v30 = vshrl.u32 %v411_v42, %v427_v55  ;;  %v433_v19 = vshll.u32 %v432_v15, 23  ;;  %v8538_v29 = vsub.s32 32, %v781_v10  ;;  %v524_v49 = vsub.s32 0, %v8514_v14 }
  0xa9   : > { %v624_v57 = vshll.u32 %v8516_v16, 30  ;;  %v680_v43 = vshrl.u32 %v13157_v11, %v8423_v5  ;;  %v8546_v28 = vmul.u32.u64.low %v8526_v60, %v711_v31  ;;  %v8547_v56 = vmul.u32.u64.high %v8526_v60, %v711_v31, %v8546_v28 }
  0xaa   : > { %v8550_v21 = vmul.u32.u64.low %v8526_v60, %v707_v50  ;;  %v8551_v36 = vmul.u32.u64.high %v8526_v60, %v707_v50, %v8550_v21  ;;  %v8554_v42 = vshrl.u32 %v779_v53, 5  ;;  %v784_v24 = vshll.u32 %v13157_v11, %v781_v10 }
  0xab   : > { %v793_v55 = vshll.u32 %v13200_v7, %v781_v10  ;;  %v794_v5 = vshrl.u32 %v13201_v34, %v8538_v29  ;;  %v785_v26 = vshrl.u32 %v13203_v63, %v8538_v29  ;;  %v787_v15 = vshll.u32 %v13203_v63, %v781_v10 }
  0xac   : > { %v788_v52 = vshrl.u32 %v13204_v25, %v8538_v29  ;;  %v796_v38 = vshll.u32 %v13201_v34, %v781_v10  ;;  %v701_v48 = vsel %vm699_vm11, %v689_v44, 2102212464  ;;  %v790_v12 = vshll.u32 %v13204_v25, %v781_v10 }
  0xad   : > { %v791_v53 = vshrl.u32 %v13200_v7, %v8538_v29  ;;  %v797_v50 = vshrl.u32 %v13202_v37, %v8538_v29  ;;  %v334_v31 = vcvt.s32.f32 %v8528_v39  ;;  %v430_v28 = vor.u32 %v429_v30, %v428_v51 }
  0xae   : > { %v7033_v9 = vmin.u32 %v524_v49, %v8514_v14  ;;  %v13214_v61 = vand.u32 2147483647, %v8385_v62  ;;  %v434_v35 = vor.u32 4788187, %v433_v19  ;;  %v700_v44 = vsel %vm696_vm12, %v680_v43, %v683_v6 }
  0xaf   : > { %v795_v45 = vor.u32 %v794_v5, %v793_v55  ;;  %v798_v10 = vor.u32 %v797_v50, %v796_v38  ;;  %v702_v17 = vsel %vm698_vm13, %v8483_v18, %v701_v48  ;;  %v786_v16 = vor.u32 %v785_v26, %v784_v24 }
  0xb0   : > { %v774_v54 = vand.u32 8388607, %v13214_v61  ;;  %v789_v3 = vor.u32 %v788_v52, %v787_v15  ;;  %vm802_vm0 = vcmp.lt.s32.totalorder %v8554_v42, 4  ;;  %v332_v39 = vand.u32 2147483647, %v8530_v58 }
  0xb1   : > { %v8585_v51 = vsub.s32 %v8469_v1, %v624_v57  ;;  %v792_v61 = vor.u32 %v791_v53, %v790_v12  ;;  %vm799_vm1 = vcmp.lt.s32.totalorder %v8554_v42, 1  ;;  %v437_v30 = vcvt.s32.f32 %v430_v28 }
  0xb2   : > { %v526_v6 = vclz %v7033_v9  ;;  %v775_v19 = vor.u32 8388608, %v774_v54  ;;  %vm801_vm2 = vcmp.lt.s32.totalorder %v8554_v42, 3  ;;  %v703_v18 = vsel %vm697_vm14, %v700_v44, %v702_v17 }
  0xb3   : > { %v722_v49 = vadd.s32 1, %v8551_v36  ;;  %v808_v43 = vsel %vm802_vm0, %v795_v45, 920167782  ;;  %v812_v1 = vsel %vm802_vm0, %v798_v10, 1326507024  ;;  %vm721_vm3 = vc.u32 %v8547_v56, %v8550_v21 }
  0xb4   : > { %v435_v58 = vand.u32 2147483647, %v434_v35  ;;  %vm800_vm4 = vcmp.lt.s32.totalorder %v8554_v42, 2  ;;  %v807_v54 = vsel %vm799_vm1, %v786_v16, %v789_v3  ;;  %v627_v41 = vsub.s32 0, %v8585_v51 }
  0xb5   : > { %v809_v17 = vsel %vm801_vm2, %v792_v61, %v808_v43  ;;  %v811_v57 = vsel %vm799_vm1, %v789_v3, %v792_v61  ;;  %v813_v9 = vsel %vm801_vm2, %v795_v45, %v812_v1  ;;  %v8610_v35 = vmul.f32 %v7809_v8, %v8290_v0  ;;  %v13224_v43 = vld [vmem:[#allocation9_spill] sm:$0xff] }
  0xb6   : > { %v719_v24 = vmul.u32 %v8526_v60, %v703_v18  ;;  %v8613_v55 = vshll.u32 %v775_v19, 8  ;;  %v873_v5 = vand.u32 2139095040, %v8410_v2  ;;  %v8618_v26 = vmul.f32 %v7809_v8, %v8295_v20 }
  0xb7   : > { %13215 = vst [vmem:[#allocation36_spill] sm:$0xff] %v8610_v35  ;;  %v7034_v15 = vadd.s32 4294967294, %v526_v6  ;;  %v723_v52 = vsel %vm721_vm3, %v722_v49, %v8551_v36  ;;  %v810_v45 = vsel %vm800_vm4, %v807_v54, %v809_v17  ;;  %v8625_v0 = vmul.f32 %v7809_v8, %v8310_v22  ;;  %v8678_v54 = vld [vmem:[#allocation2] ss:$0 sm:$0xff] }
  0xb8   : > { %13216 = vst [vmem:[#allocation37_spill] sm:$0xff] %v8618_v26  ;;  %v8629_v60 = vmul.f32 %v7809_v8, %v8315_v13  ;;  %v814_v38 = vsel %vm800_vm4, %v811_v57, %v813_v9  ;;  %v874_v48 = vshrl.u32 %v873_v5, 23  ;;  %v8635_v20 = vmul.f32 %v7809_v8, %v8320_v32 }
  0xb9   : > { %13217 = vst [vmem:[#allocation38_spill] sm:$0xff] %v8625_v0  ;;  %v335_v36 = vmul.f32 %v334_v31, %v332_v39  ;;  %v438_v12 = vmul.f32 %v437_v30, %v435_v58  ;;  %v7037_v53 = vmin.u32 %v627_v41, %v8585_v51  ;;  %v8638_v50 = vadd.s32 %v723_v52, %v719_v24 }
  0xba   : > { %13218 = vst [vmem:[#allocation39_spill] sm:$0xff] %v8629_v60  ;;  %13219 = vst [vmem:[#allocation40_spill] sm:$0xff] %v8635_v20  ;;  %v8641_v22 = vmul.u32.u64.low %v8613_v55, %v810_v45  ;;  %v8642_v28 = vmul.u32.u64.high %v8613_v55, %v810_v45, %v8641_v22  ;;  %v7048_v13 = vadd.s32 4294967169, %v874_v48  ;;  %vm7035_vm5 = vcmp.lt.s32.totalorder %v7034_v15, 0 }
  0xbb   : > { %v783_v44 = vshrl.u32 %v13157_v11, %v8538_v29  ;;  %v8648_v10 = vmul.u32.u64.low %v8613_v55, %v814_v38  ;;  %v8649_v32 = vmul.u32.u64.high %v8613_v55, %v814_v38, %v8648_v10  ;;  %v8653_v31 = vmul.f32 %v7809_v8, %v8338_v27  ;;  %v13223_v29 = vld [vmem:[#allocation8_spill] sm:$0xff] }
  0xbc   : > { %v8657_v39 = vmul.f32 %v7809_v8, %v8347_v46  ;;  %v8661_v30 = vmul.f32 %v7809_v8, %v8352_v33  ;;  %v804_v6 = vsel %vm802_vm0, %v792_v61, 2102212464  ;;  %vm254_vm6 = vcmp.lt.s32.totalorder %v13223_v29, 0  ;;  %v13235_v38 = vld [vmem:[#allocation24_spill] sm:$0xff] }
  0xbd   : > { %13220 = vst [vmem:[#allocation41_spill] sm:$0xff] %v8653_v31  ;;  %v336_v19 = vxor.u32 2147483648, %v335_v36  ;;  %v439_v18 = vxor.u32 2147483648, %v438_v12  ;;  %v880_v49 = vadd.s32 1, %v7048_v13  ;;  %vm357_vm7 = vcmp.lt.s32.totalorder %v13224_v43, 0 }
  0xbe   : > { %13221 = vst [vmem:[#allocation42_spill] sm:$0xff] %v8657_v39  ;;  %13222 = vst [vmem:[#allocation43_spill] sm:$0xff] %v8661_v30  ;;  %v8667_v27 = vsel %vm7035_vm5, 0, %v7034_v15  ;;  %v629_v1 = vclz %v7037_v53  ;;  %v725_v46 = vadd.s32 536870912, %v8638_v50  ;;  %v8672_v58 = vmul.f32 %v7809_v8, %v8359_v40  ;;  %v13268_v30 = vld [vmem:[#allocation15_spill] sm:$0xff] }
  0xbf   : > { %v803_v33 = vsel %vm799_vm1, %v783_v44, %v786_v16  ;;  %v805_v61 = vsel %vm801_vm2, %v789_v3, %v804_v6  ;;  %vm881_vm8 = vcmp.gt.s32.totalorder %v880_v49, 0  ;;  %v8682_v41 = vmul.f32 %v8678_v54, %v8364_v4 }
  0xc0   : > { %13225 = vst [vmem:[#allocation44_spill] sm:$0xff] %v8672_v58  ;;  %v8686_v17 = vmul.f32 %v8678_v54, %v8370_v23  ;;  %v13228_v8 = vand.u32 2147483647, %v13223_v29  ;;  %v13231_v16 = vand.u32 2147483647, %v13224_v43  ;;  %v337_v4 = vsel %vm254_vm6, %v336_v19, %v335_v36 }
  0xc1   : > { %13226 = vst [vmem:[#allocation45_spill] sm:$0xff] %v8682_v41  ;;  %v440_v57 = vsel %vm357_vm7, %v439_v18, %v438_v12  ;;  %v534_v23 = vsub.s32 4294967266, %v8667_v27  ;;  %v882_v9 = vsel %vm881_vm8, %v880_v49, 0  ;;  %v7038_v24 = vadd.s32 4294967294, %v629_v1 }
  0xc2   : > { %13227 = vst [vmem:[#allocation46_spill] sm:$0xff] %v8686_v17  ;;  %vm8690_vm9 = vcmp.le.f32.partialorder %v13228_v8, 0.7853982  ;;  %vm8696_vm10 = vcmp.le.f32.partialorder %v13231_v16, 0.7853982  ;;  %v8705_v5 = vshrl.u32 %v725_v46, 30  ;;  %v806_v15 = vsel %vm800_vm4, %v803_v33, %v805_v61 }
  0xc3   : > { %v825_v52 = vadd.s32 1, %v8642_v28  ;;  %v8712_v45 = vmul.f32 %v8678_v54, %v8375_v47  ;;  %v514_v48 = vadd.s32 %v13235_v38, %v8252_v59  ;;  %vm824_vm11 = vc.u32 %v8649_v32, %v8641_v22 }
  0xc4   : > { %v884_v36 = vand.u32 31, %v882_v9  ;;  %v340_v12 = vsel %vm8690_vm9, %v13223_v29, %v337_v4  ;;  %v8724_v42 = vsel %vm8696_vm10, %v13224_v43, %v440_v57  ;;  %v530_v53 = vsub.s32 32, %v8667_v27  ;;  %v13236_v4 = vld [vmem:[#allocation17_spill] sm:$0xff] }
  0xc5   : > { %13234 = vst [vmem:[#allocation47_spill] sm:$0xff] %v8712_v45  ;;  %v12869_v47 = vand.u32 2147483647, %v8410_v2  ;;  %v531_v59 = vshll.u32 %v8514_v14, %v8667_v27  ;;  %v535_v13 = vadd.s32 127, %v534_v23  ;;  %v822_v44 = vmul.u32 %v8613_v55, %v806_v15  ;;  %v13237_v15 = vld [vmem:[#allocation26_spill] sm:$0xff] }
  0xc6   : > { %v8731_v10 = vsub.s32 32, %v884_v36  ;;  %vm7039_vm12 = vcmp.lt.s32.totalorder %v7038_v24, 0  ;;  %v727_v6 = vshll.u32 %v8705_v5, 30  ;;  %v826_v19 = vsel %vm824_vm11, %v825_v52, %v8642_v28  ;;  %v13238_v52 = vld [vmem:[#allocation25_spill] sm:$0xff] }
  0xc7   : > { %v887_v18 = vshll.u32 %v13157_v11, %v884_v36  ;;  %v890_v1 = vshll.u32 %v13203_v63, %v884_v36  ;;  %v896_v27 = vshll.u32 %v13200_v7, %v884_v36  ;;  %v877_v55 = vand.u32 8388607, %v12869_v47 }
  0xc8   : > { %v888_v49 = vshrl.u32 %v13203_v63, %v8731_v10  ;;  %v891_v14 = vshrl.u32 %v13204_v25, %v8731_v10  ;;  %v8744_v46 = vshrl.u32 %v882_v9, 5  ;;  %v893_v33 = vshll.u32 %v13204_v25, %v884_v36 }
  0xc9   : > { %v894_v28 = vshrl.u32 %v13200_v7, %v8731_v10  ;;  %v532_v61 = vshrl.u32 %v514_v48, %v530_v53  ;;  %v8749_v8 = vadd.s32 %v826_v19, %v822_v44  ;;  %v897_v16 = vshrl.u32 %v13201_v34, %v8731_v10 }
  0xca   : > { %v976_v57 = vand.u32 2139095040, %v13236_v4  ;;  %v536_v23 = vshll.u32 %v535_v13, 23  ;;  %v617_v38 = vadd.s32 %v13238_v52, %v13237_v15  ;;  %v632_v9 = vsel %vm7039_vm12, 0, %v7038_v24 }
  0xcb   : > { %v899_v47 = vshll.u32 %v13201_v34, %v884_v36  ;;  %v8759_v45 = vsub.s32 %v8638_v50, %v727_v6  ;;  %v889_v17 = vor.u32 %v888_v49, %v887_v18  ;;  %v892_v48 = vor.u32 %v891_v14, %v890_v1 }
  0xcc   : > { %v898_v53 = vor.u32 %v897_v16, %v896_v27  ;;  %v878_v44 = vor.u32 8388608, %v877_v55  ;;  %v895_v19 = vor.u32 %v894_v28, %v893_v33  ;;  %v900_v41 = vshrl.u32 %v13202_v37, %v8731_v10  ;;  %v13239_v16 = vld [vmem:[#allocation18_spill] sm:$0xff] }
  0xcd   : > { %vm902_vm13 = vcmp.lt.s32.totalorder %v8744_v46, 1  ;;  %v828_v13 = vadd.s32 536870912, %v8749_v8  ;;  %vm904_vm14 = vcmp.lt.s32.totalorder %v8744_v46, 3  ;;  %vm905_vm15 = vcmp.lt.s32.totalorder %v8744_v46, 4 }
  0xce   : > { %v977_v24 = vshrl.u32 %v976_v57, 23  ;;  %v533_v36 = vor.u32 %v532_v61, %v531_v59  ;;  %v537_v50 = vor.u32 4788187, %v536_v23  ;;  %v637_v6 = vsub.s32 4294967266, %v632_v9 }
  0xcf   : > { %v901_v18 = vor.u32 %v900_v41, %v899_v47  ;;  %v633_v49 = vsub.s32 32, %v632_v9  ;;  %vm903_vm0 = vcmp.lt.s32.totalorder %v8744_v46, 2  ;;  %v910_v1 = vsel %vm902_vm13, %v889_v17, %v892_v48 }
  0xd0   : > { %v911_v14 = vsel %vm905_vm15, %v898_v53, 920167782  ;;  %v730_v27 = vsub.s32 0, %v8759_v45  ;;  %v914_v59 = vsel %vm902_vm13, %v892_v48, %v895_v19  ;;  %v8779_v47 = vshrl.u32 %v828_v13, 30 }
  0xd1   : > { %v912_v55 = vsel %vm904_vm14, %v895_v19, %v911_v14  ;;  %v915_v41 = vsel %vm905_vm15, %v901_v18, 1326507024  ;;  %v8783_v28 = vshll.u32 %v878_v44, 8  ;;  %v7052_v61 = vadd.s32 4294967169, %v977_v24 }
  0xd2   : > { %v916_v33 = vsel %vm904_vm14, %v898_v53, %v915_v41  ;;  %v338_v57 = vsub.s32 4, %v13239_v16  ;;  %7472 = vcosq.f32 %v340_v12  ;;  %v638_v23 = vadd.s32 127, %v637_v6 }
  0xd3   : > { %v913_v15 = vsel %vm903_vm0, %v910_v1, %v912_v55  ;;  %7474 = vsinq.f32 %v340_v12  ;;  %v538_v52 = vand.u32 2147483647, %v537_v50  ;;  %v540_v14 = vcvt.s32.f32 %v533_v36 }
  0xd4   : > { %v917_v13 = vsel %vm903_vm0, %v914_v59, %v916_v33  ;;  %7476 = vcosq.f32 %v8724_v42  ;;  %v634_v53 = vshll.u32 %v8585_v51, %v632_v9  ;;  %v635_v44 = vshrl.u32 %v617_v38, %v633_v49  ;;  %v13240_v51 = vld [vmem:[#allocation27_spill] sm:$0xff]  ;;  %v13243_v33 = vld [vmem:[#allocation29_spill] sm:$0xff] }
  0xd5   : > { %v7041_v24 = vmin.u32 %v730_v27, %v8759_v45  ;;  %v830_v18 = vshll.u32 %v8779_v47, 30  ;;  %v8795_v6 = vmul.u32.u64.low %v8783_v28, %v913_v15  ;;  %v8796_v41 = vmul.u32.u64.high %v8783_v28, %v913_v15, %v8795_v6  ;;  %v13242_v9 = vld [vmem:[#allocation23_spill] sm:$0xff] }
  0xd6   : > { %v983_v12 = vadd.s32 1, %v7052_v61  ;;  %v639_v50 = vshll.u32 %v638_v23, 23  ;;  %v886_v36 = vshrl.u32 %v13157_v11, %v8731_v10  ;;  %v8807_v38 = vmul.f32 %v8678_v54, %v13240_v51  ;;  %v13245_v23 = vld [vmem:[#allocation30_spill] sm:$0xff]  ;;  %v13247_v15 = vld [vmem:[#allocation31_spill] sm:$0xff] }
  0xd7   : > { %v8802_v1 = vmul.u32.u64.low %v8783_v28, %v917_v13  ;;  %v8803_v55 = vmul.u32.u64.high %v8783_v28, %v917_v13, %v8802_v1  ;;  %v441_v49 = vsub.s32 4, %v13242_v9  ;;  %v541_v27 = vmul.f32 %v540_v14, %v538_v52 }
  0xd8   : > { %13241 = vst [vmem:[#allocation24_spill] sm:$0xff] %v8807_v38  ;;  %v907_v59 = vsel %vm905_vm15, %v895_v19, 2102212464  ;;  %v8814_v61 = vmul.f32 %v8678_v54, %v13243_v33  ;;  %v8818_v10 = vmul.f32 %v8678_v54, %v13245_v23  ;;  %v8822_v13 = vmul.f32 %v8678_v54, %v13247_v15 }
  0xd9   : > { %v339_v1 = vsel %vm254_vm6, %v338_v57, %v13239_v16  ;;  %7478 = vsinq.f32 %v8724_v42  ;;  %v732_v52 = vclz %v7041_v24  ;;  %v8829_v19 = vsub.s32 %v8749_v8, %v830_v18 }
  0xda   : > { %13244 = vst [vmem:[#allocation26_spill] sm:$0xff] %v8814_v61  ;;  %13246 = vst [vmem:[#allocation25_spill] sm:$0xff] %v8818_v10  ;;  %vm984_vm1 = vcmp.gt.s32.totalorder %v983_v12, 0  ;;  %v636_v14 = vor.u32 %v635_v44, %v634_v53  ;;  %v640_v51 = vor.u32 4788187, %v639_v50  ;;  %v906_v33 = vsel %vm902_vm13, %v886_v36, %v889_v17  ;;  %v13252_v17 = vld [vmem:[#allocation11_spill] sm:$0xff] }
  0xdb   : > { %13248 = vst [vmem:[#allocation18_spill] sm:$0xff] %v8822_v13  ;;  %v908_v54 = vsel %vm904_vm14, %v892_v48, %v907_v59  ;;  %v8838_v16 = vsel %vm8690_vm9, 0, %v339_v1  ;;  %v442_v42 = vsel %vm357_vm7, %v441_v49, %v13242_v9  ;;  %v542_v8 = vxor.u32 2147483648, %v541_v27  ;;  %v13253_v44 = vld [vmem:[#allocation14_spill] sm:$0xff] }
  0xdc   : > { %13250 = vst [vmem:[#allocation27_spill] sm:$0xff] %v8838_v16  ;;  %v8843_v57 = vpop.eup %7472  ;;  %v8846_v53 = vand.u32 3, %v8838_v16  ;;  %vm460_vm2 = vcmp.lt.s32.totalorder %v13252_v17, 0  ;;  %v544_v48 = vsub.s32 4, %v13253_v44  ;;  %v985_v24 = vsel %vm984_vm1, %v983_v12, 0 }
  0xdd   : > { %13251 = vst [vmem:[#allocation23_spill] sm:$0xff] %v8843_v57  ;;  %v8850_v18 = vpop.eup %7474  ;;  %v7042_v40 = vadd.s32 4294967294, %v732_v52  ;;  %v833_v50 = vsub.s32 0, %v8829_v19  ;;  %v909_v36 = vsel %vm903_vm0, %v906_v33, %v908_v54  ;;  %v928_v9 = vadd.s32 1, %v8796_v41 }
  0xde   : > { %13254 = vst [vmem:[#allocation29_spill] sm:$0xff] %v8850_v18  ;;  %v8856_v49 = vpop.eup %7476  ;;  %v8860_v59 = vsel %vm8696_vm10, 0, %v442_v42  ;;  %v641_v1 = vand.u32 2147483647, %v640_v51  ;;  %v643_v15 = vcvt.s32.f32 %v636_v14  ;;  %vm927_vm3 = vc.u32 %v8803_v55, %v8795_v6 }
  0xdf   : > { %13255 = vst [vmem:[#allocation30_spill] sm:$0xff] %v8856_v49  ;;  %13256 = vst [vmem:[#allocation31_spill] sm:$0xff] %v8860_v59  ;;  %v8865_v12 = vand.u32 3, %v8860_v59  ;;  %v13257_v52 = vand.u32 2147483647, %v13252_v17  ;;  %v543_v33 = vsel %vm460_vm2, %v542_v8, %v541_v27  ;;  %v987_v3 = vand.u32 31, %v985_v24 }
  0xe0   : > { %vm350_vm5 = vcmp.eq.s32.totalorder %v8846_v53, 2  ;;  %v545_v51 = vsel %vm460_vm2, %v544_v48, %v13253_v44  ;;  %v925_v54 = vmul.u32 %v8783_v28, %v909_v36  ;;  %v12874_v42 = vxor.u32 2147483648, %v8850_v18  ;;  %v13262_v44 = vld [vmem:[#allocation12_spill] sm:$0xff] }
  0xe1   : > { %vm8869_vm4 = vcmp.le.f32.partialorder %v13257_v52, 0.7853982  ;;  %vm7043_vm6 = vcmp.lt.s32.totalorder %v7042_v40, 0  ;;  %v7045_v52 = vmin.u32 %v833_v50, %v8829_v19  ;;  %v929_v23 = vsel %vm927_vm3, %v928_v9, %v8796_v41 }
  0xe2   : > { %vm347_vm7 = vcmp.eq.s32.totalorder %v8846_v53, 0  ;;  %v12878_v27 = vxor.u32 2147483648, %v8856_v49  ;;  %v546_v8 = vsel %vm8869_vm4, %v13252_v17, %v543_v33  ;;  %v644_v14 = vmul.f32 %v643_v15, %v641_v1  ;;  %v13264_v33 = vld [vmem:[#allocation19_spill] sm:$0xff] }
  0xe3   : > { %v8889_v59 = vpop.eup %7478  ;;  %vm453_vm8 = vcmp.eq.s32.totalorder %v8865_v12, 2  ;;  %v8894_v28 = vsel %vm8869_vm4, 0, %v545_v51  ;;  %vm563_vm9 = vcmp.lt.s32.totalorder %v13262_v44, 0  ;;  %v8897_v41 = vsub.s32 32, %v987_v3 }
  0xe4   : > { %13260 = vst [vmem:[#allocation14_spill] sm:$0xff] %v8889_v59  ;;  %13261 = vst [vmem:[#allocation48_spill] sm:$0xff] %v8894_v28  ;;  %v13263_v48 = vxor.u32 2147483648, %v8843_v57  ;;  %v8907_v15 = vand.u32 3, %v8894_v28  ;;  %v8909_v36 = vsel %vm7043_vm6, 0, %v7042_v40  ;;  %v8911_v9 = vadd.s32 %v929_v23, %v925_v54 }
  0xe5   : > { %v8916_v1 = vsel %vm347_vm7, %v8843_v57, %v12874_v42  ;;  %7480 = vcosq.f32 %v546_v8  ;;  %v835_v46 = vclz %v7045_v52  ;;  %v1079_v51 = vand.u32 2139095040, %v13264_v33 }
  0xe6   : > { %v8904_v50 = vsel %vm350_vm5, %v13263_v48, %v8850_v18  ;;  %vm450_vm10 = vcmp.eq.s32.totalorder %v8865_v12, 0  ;;  %v8924_v40 = vsel %vm453_vm8, %v12878_v27, %v8889_v59  ;;  %7482 = vsinq.f32 %v546_v8 }
  0xe7   : > { %v13265_v23 = vand.u32 2147483647, %v13262_v44  ;;  %v645_v42 = vxor.u32 2147483648, %v644_v14  ;;  %v740_v52 = vsub.s32 4294967266, %v8909_v36  ;;  %v999_v57 = vshll.u32 %v13200_v7, %v987_v3 }
  0xe8   : > { %v1000_v48 = vshrl.u32 %v13201_v34, %v8897_v41  ;;  %v931_v27 = vadd.s32 536870912, %v8911_v9  ;;  %v8938_v18 = vshrl.u32 %v985_v24, 5  ;;  %v1002_v8 = vshll.u32 %v13201_v34, %v987_v3 }
  0xe9   : > { %vm8928_vm11 = vcmp.le.f32.partialorder %v13265_v23, 0.7853982  ;;  %v1003_v23 = vshrl.u32 %v13202_v37, %v8897_v41  ;;  %v7046_v16 = vadd.s32 4294967294, %v835_v46  ;;  %v990_v13 = vshll.u32 %v13157_v11, %v987_v3 }
  0xea   : > { %v993_v10 = vshll.u32 %v13203_v63, %v987_v3  ;;  %v1080_v28 = vshrl.u32 %v1079_v51, 23  ;;  %v991_v61 = vshrl.u32 %v13203_v63, %v8897_v41  ;;  %v994_v38 = vshrl.u32 %v13204_v25, %v8897_v41 }
  0xeb   : > { %v996_v24 = vshll.u32 %v13204_v25, %v987_v3  ;;  %v997_v58 = vshrl.u32 %v13200_v7, %v8897_v41  ;;  %v647_v39 = vsub.s32 4, %v13268_v30  ;;  %v720_v46 = vadd.s32 %v8550_v21, %v8547_v56 }
  0xec   : > { %v736_v31 = vsub.s32 32, %v8909_v36  ;;  %v1001_v20 = vor.u32 %v1000_v48, %v999_v57  ;;  %v8956_v51 = vshrl.u32 %v931_v27, 30  ;;  %v13269_v60 = vand.u32 2147483647, %v13236_v4 }
  0xed   : > { %v1004_v26 = vor.u32 %v1003_v23, %v1002_v8  ;;  %vm1008_vm12 = vcmp.lt.s32.totalorder %v8938_v18, 4  ;;  %v646_v3 = vsel %vm563_vm9, %v645_v42, %v644_v14  ;;  %v737_v35 = vshll.u32 %v8759_v45, %v8909_v36 }
  0xee   : > { %v980_v0 = vand.u32 8388607, %v13269_v60  ;;  %vm7047_vm13 = vcmp.lt.s32.totalorder %v7046_v16, 0  ;;  %v7056_v17 = vadd.s32 4294967169, %v1080_v28  ;;  %v741_v56 = vadd.s32 127, %v740_v52  ;;  %v13273_v28 = vld [vmem:[#allocation20_spill] sm:$0xff] }
  0xef   : > { %v8965_v21 = vor.u32 %v991_v61, %v990_v13  ;;  %v8967_v57 = vor.u32 %v994_v38, %v993_v10  ;;  %v998_v27 = vor.u32 %v997_v58, %v996_v24  ;;  %v8969_v48 = vpop.eup %7480  ;;  %v738_v60 = vshrl.u32 %v720_v46, %v736_v31 }
  0xf0   : > { %13270 = vst [vmem:[#allocation15_spill] sm:$0xff] %v8969_v48  ;;  %vm1005_vm14 = vcmp.lt.s32.totalorder %v8938_v18, 1  ;;  %vm1007_vm15 = vcmp.lt.s32.totalorder %v8938_v18, 3  ;;  %v1014_v14 = vsel %vm1008_vm12, %v1001_v20, 920167782  ;;  %v8975_v42 = vpop.eup %7482  ;;  %vm346_vm0 = vcmp.lt.s32.totalorder %v8846_v53, 2 }
  0xf1   : > { %13271 = vst [vmem:[#allocation49_spill] sm:$0xff] %v8975_v42  ;;  %v8978_v45 = vsel %vm7047_vm13, 0, %v7046_v16  ;;  %v933_v38 = vshll.u32 %v8956_v51, 30  ;;  %v981_v61 = vor.u32 8388608, %v980_v0  ;;  %v1018_v58 = vsel %vm1008_vm12, %v1004_v26, 1326507024 }
  0xf2   : > { %vm449_vm1 = vcmp.lt.s32.totalorder %v8865_v12, 2  ;;  %v13272_v31 = vxor.u32 2147483648, %v8889_v59  ;;  %vm556_vm2 = vcmp.eq.s32.totalorder %v8907_v15, 2  ;;  %v649_v13 = vsel %vm8928_vm11, %v13262_v44, %v646_v3 }
  0xf3   : > { %v1086_v16 = vadd.s32 1, %v7056_v17  ;;  %v1182_v0 = vand.u32 2139095040, %v13273_v28  ;;  %v742_v36 = vshll.u32 %v741_v56, 23  ;;  %vm1006_vm3 = vcmp.lt.s32.totalorder %v8938_v18, 2 }
  0xf4   : > { %v452_v10 = vsel %vm450_vm10, %v8856_v49, %v13272_v31  ;;  %v1013_v26 = vsel %vm1005_vm14, %v8965_v21, %v8967_v57  ;;  %v1015_v52 = vsel %vm1007_vm15, %v998_v27, %v1014_v14  ;;  %vm553_vm4 = vcmp.eq.s32.totalorder %v8907_v15, 0 }
  0xf5   : > { %v739_v8 = vor.u32 %v738_v60, %v737_v35  ;;  %v843_v23 = vsub.s32 4294967266, %v8978_v45  ;;  %v1017_v17 = vsel %vm1005_vm14, %v8967_v57, %v998_v27  ;;  %v1019_v24 = vsel %vm1007_vm15, %v1001_v20, %v1018_v58 }
  0xf6   : > { %vm344_vm5 = vweird.f32 %v13223_v29  ;;  %vm447_vm6 = vweird.f32 %v13224_v43  ;;  %v12896_v46 = vxor.u32 2147483648, %v8969_v48  ;;  %v648_v3 = vsel %vm563_vm9, %v647_v39, %v13268_v30 }
  0xf7   : > { %v9015_v35 = vsub.s32 %v8911_v9, %v933_v38  ;;  %v9017_v56 = vshll.u32 %v981_v61, 8  ;;  %7484 = vcosq.f32 %v649_v13  ;;  %v1016_v60 = vsel %vm1006_vm3, %v1013_v26, %v1015_v52  ;;  %v13274_v61 = vld [vmem:[#allocation22_spill] sm:$0xff] }
  0xf8   : > { %vm1087_vm7 = vcmp.gt.s32.totalorder %v1086_v16, 0  ;;  %v1183_v20 = vshrl.u32 %v1182_v0, 23  ;;  %vm552_vm8 = vcmp.lt.s32.totalorder %v8907_v15, 2  ;;  %v743_v14 = vor.u32 4788187, %v742_v36 }
  0xf9   : > { %v823_v58 = vadd.s32 %v8641_v22, %v8649_v32  ;;  %v839_v31 = vsub.s32 32, %v8978_v45  ;;  %v1020_v39 = vsel %vm1006_vm3, %v1017_v17, %v1019_v24  ;;  %7486 = vsinq.f32 %v649_v13 }
  0xfa   : > { %v746_v9 = vcvt.s32.f32 %v739_v8  ;;  %v844_v38 = vadd.s32 127, %v843_v23  ;;  %vm666_vm9 = vcmp.lt.s32.totalorder %v13274_v61, 0  ;;  %v936_v0 = vsub.s32 0, %v9015_v35 }
  0xfb   : > { %v9031_v26 = vmul.u32.u64.low %v9017_v56, %v1016_v60  ;;  %v9032_v36 = vmul.u32.u64.high %v9017_v56, %v1016_v60, %v9031_v26  ;;  %v1088_v22 = vsel %vm1087_vm7, %v1086_v16, 0  ;;  %v989_v32 = vshrl.u32 %v13157_v11, %v8897_v41 }
  0xfc   : > { %v9038_v52 = vmul.u32.u64.low %v9017_v56, %v1020_v39  ;;  %v9039_v17 = vmul.u32.u64.high %v9017_v56, %v1020_v39, %v9038_v52  ;;  %v7060_v13 = vadd.s32 4294967169, %v1183_v20  ;;  %v744_v8 = vand.u32 2147483647, %v743_v14 }
  0xfd   : > { %v840_v23 = vshll.u32 %v8829_v19, %v8978_v45  ;;  %v841_v24 = vshrl.u32 %v823_v58, %v839_v31  ;;  %v1010_v30 = vsel %vm1008_vm12, %v998_v27, 2102212464  ;;  %v353_v16 = vsel %vm346_vm0, %v8916_v1, %v8904_v50 }
  0xfe   : > { %v9051_v41 = vsel %vm8928_vm11, 0, %v648_v3  ;;  %v845_v60 = vshll.u32 %v844_v38, 23  ;;  %v1090_v39 = vand.u32 31, %v1088_v22  ;;  %v456_v20 = vsel %vm449_vm1, %v452_v10, %v8924_v40 }
  0xff   : > { %13275 = vst [vmem:[#allocation20_spill] sm:$0xff] %v9051_v41  ;;  %v558_v19 = vsel %vm556_vm2, %v12896_v46, %v8975_v42  ;;  %v9062_v27 = vand.u32 3, %v9051_v41  ;;  %v7049_v53 = vmin.u32 %v936_v0, %v9015_v35  ;;  %v750_v50 = vsub.s32 4, %v8705_v5 }
 0x100   : > { %v1009_v1 = vsel %vm1005_vm14, %v989_v32, %v8965_v21  ;;  %v1011_v12 = vsel %vm1007_vm15, %v8967_v57, %v1010_v30  ;;  %v1189_v40 = vadd.s32 1, %v7060_v13  ;;  %v13276_v54 = vxor.u32 2147483648, %v8975_v42 }
 0x101   : > { %v13277_v10 = vand.u32 2147483647, %v13274_v61  ;;  %v747_v14 = vmul.f32 %v746_v9, %v744_v8  ;;  %v842_v58 = vor.u32 %v841_v24, %v840_v23  ;;  %v12897_v21 = vand.u32 2147483647, %v13264_v33  ;;  %v9084_v31 = vpop.eup %7484 }
 0x102   : > { %v555_v45 = vsel %vm553_vm4, %v8969_v48, %v13276_v54  ;;  %13280 = vst [vmem:[#allocation50_spill] sm:$0xff] %v9084_v31  ;;  %v9088_v57 = vsel %vm344_vm5, nan, %v353_v16  ;;  %v9092_v30 = vsel %vm447_vm6, nan, %v456_v20  ;;  %v846_v38 = vor.u32 4788187, %v845_v60 }
 0x103   : > { %vm9079_vm10 = vcmp.le.f32.partialorder %v13277_v10, 0.7853982  ;;  %13281 = vst [vmem:[#allocation51_spill] sm:$0xff] %v9088_v57  ;;  %13282 = vst [vmem:[#allocation52_spill] sm:$0xff] %v9092_v30  ;;  %v9094_v0 = vsub.s32 32, %v1090_v39  ;;  %vm659_vm11 = vcmp.eq.s32.totalorder %v9062_v27, 2  ;;  %v938_v32 = vclz %v7049_v53  ;;  %v9100_v13 = vpop.eup %7486 }
 0x104   : > { %v1012_v9 = vsel %vm1006_vm3, %v1009_v1, %v1011_v12  ;;  %v1031_v52 = vadd.s32 1, %v9032_v36  ;;  %13283 = vst [vmem:[#allocation53_spill] sm:$0xff] %v9100_v13  ;;  %v9104_v8 = vsel %vm552_vm8, %v555_v45, %v558_v19  ;;  %v751_v23 = vsel %vm666_vm9, %v750_v50, %v8705_v5 }
 0x105   : > { %13284 = vst [vmem:[#allocation54_spill] sm:$0xff] %v9104_v8  ;;  %vm1030_vm12 = vc.u32 %v9039_v17, %v9031_v26  ;;  %vm1190_vm13 = vcmp.gt.s32.totalorder %v1189_v40, 0  ;;  %v12899_v24 = vxor.u32 2147483648, %v9084_v31  ;;  %v748_v18 = vxor.u32 2147483648, %v747_v14 }
 0x106   : > { %v849_v16 = vcvt.s32.f32 %v842_v58  ;;  %v1083_v60 = vand.u32 8388607, %v12897_v21  ;;  %vm769_vm14 = vcmp.lt.s32.totalorder %v8385_v62, 0  ;;  %v847_v15 = vand.u32 2147483647, %v846_v38 }
 0x107   : > { %v1028_v20 = vmul.u32 %v9017_v56, %v1012_v9  ;;  %v1102_v19 = vshll.u32 %v13200_v7, %v1090_v39  ;;  %v1103_v5 = vshrl.u32 %v13201_v34, %v9094_v0  ;;  %v7050_v53 = vadd.s32 4294967294, %v938_v32 }
 0x108   : > { %v1032_v50 = vsel %vm1030_vm12, %v1031_v52, %v9032_v36  ;;  %v9120_v1 = vshrl.u32 %v1088_v22, 5  ;;  %v1191_v12 = vsel %vm1190_vm13, %v1189_v40, 0  ;;  %v1093_v54 = vshll.u32 %v13157_v11, %v1090_v39 }
 0x109   : > { %v1094_v45 = vshrl.u32 %v13203_v63, %v9094_v0  ;;  %v1096_v10 = vshll.u32 %v13203_v63, %v1090_v39  ;;  %v1099_v56 = vshll.u32 %v13204_v25, %v1090_v39  ;;  %v1097_v58 = vshrl.u32 %v13204_v25, %v9094_v0 }
 0x10a   : > { %v1100_v38 = vshrl.u32 %v13200_v7, %v9094_v0  ;;  %v1105_v36 = vshll.u32 %v13201_v34, %v1090_v39  ;;  %v1106_v22 = vshrl.u32 %v13202_v37, %v9094_v0  ;;  %v9137_v32 = vsel %vm9079_vm10, 0, %v751_v23 }
 0x10b   : > { %13285 = vst [vmem:[#allocation55_spill] sm:$0xff] %v9137_v32  ;;  %v1104_v9 = vor.u32 %v1103_v5, %v1102_v19  ;;  %v1193_v52 = vand.u32 31, %v1191_v12  ;;  %v9144_v46 = vsel %vm659_vm11, %v12899_v24, %v9100_v13  ;;  %v749_v39 = vsel %vm666_vm9, %v748_v18, %v747_v14 }
 0x10c   : > { %v853_v21 = vsub.s32 4, %v8779_v47  ;;  %vm1111_vm15 = vcmp.lt.s32.totalorder %v9120_v1, 4  ;;  %v850_v40 = vmul.f32 %v849_v16, %v847_v15  ;;  %vm7051_vm0 = vcmp.lt.s32.totalorder %v7050_v53, 0 }
 0x10d   : > { %v9150_v23 = vadd.s32 %v1032_v50, %v1028_v20  ;;  %v1084_v19 = vor.u32 8388608, %v1083_v60  ;;  %v9152_v5 = vor.u32 %v1094_v45, %v1093_v54  ;;  %v9154_v30 = vor.u32 %v1097_v58, %v1096_v10 }
 0x10e   : > { %v1101_v57 = vor.u32 %v1100_v38, %v1099_v56  ;;  %v1107_v43 = vor.u32 %v1106_v22, %v1105_v36  ;;  %vm1108_vm1 = vcmp.lt.s32.totalorder %v9120_v1, 1  ;;  %vm1110_vm2 = vcmp.lt.s32.totalorder %v9120_v1, 3 }
 0x10f   : > { %v1117_v14 = vsel %vm1111_vm15, %v1104_v9, 920167782  ;;  %v9160_v18 = vsub.s32 32, %v1193_v52  ;;  %v9165_v16 = vsel %vm9079_vm10, %v13274_v61, %v749_v39  ;;  %v854_v60 = vsel %vm769_vm14, %v853_v21, %v8779_v47 }
 0x110   : > { %v926_v15 = vadd.s32 %v8795_v6, %v8803_v55  ;;  %v941_v20 = vsel %vm7051_vm0, 0, %v7050_v53  ;;  %v851_v50 = vxor.u32 2147483648, %v850_v40  ;;  %v9172_v45 = vshll.u32 %v1084_v19, 8 }
 0x111   : > { %v942_v54 = vsub.s32 32, %v941_v20  ;;  %vm1109_vm3 = vcmp.lt.s32.totalorder %v9120_v1, 2  ;;  %v1116_v3 = vsel %vm1108_vm1, %v9152_v5, %v9154_v30  ;;  %v1118_v47 = vsel %vm1110_vm2, %v1101_v57, %v1117_v14 }
 0x112   : > { %v1121_v6 = vsel %vm1111_vm15, %v1107_v43, 1326507024  ;;  %v946_v55 = vsub.s32 4294967266, %v941_v20  ;;  %v1034_v21 = vadd.s32 536870912, %v9150_v23  ;;  %v1205_v53 = vshll.u32 %v13200_v7, %v1193_v52 }
 0x113   : > { %v1206_v56 = vshrl.u32 %v13201_v34, %v9160_v18  ;;  %vm656_vm4 = vcmp.eq.s32.totalorder %v9062_v27, 0  ;;  %v1120_v58 = vsel %vm1108_vm1, %v9154_v30, %v1101_v57  ;;  %v9192_v38 = vshrl.u32 %v1191_v12, 5 }
 0x114   : > { %v1208_v36 = vshll.u32 %v13201_v34, %v1193_v52  ;;  %v1209_v43 = vshrl.u32 %v13202_v37, %v9160_v18  ;;  %v1119_v22 = vsel %vm1109_vm3, %v1116_v3, %v1118_v47  ;;  %v1122_v39 = vsel %vm1110_vm2, %v1104_v9, %v1121_v6 }
 0x115   : > { %v1196_v19 = vshll.u32 %v13157_v11, %v1193_v52  ;;  %v1199_v14 = vshll.u32 %v13203_v63, %v1193_v52  ;;  %v13286_v24 = vand.u32 2147483647, %v8385_v62  ;;  %v1197_v10 = vshrl.u32 %v13203_v63, %v9160_v18 }
 0x116   : > { %v1200_v48 = vshrl.u32 %v13204_v25, %v9160_v18  ;;  %v1202_v3 = vshll.u32 %v13204_v25, %v1193_v52  ;;  %v1203_v9 = vshrl.u32 %v13200_v7, %v9160_v18  ;;  %v852_v47 = vsel %vm769_vm14, %v851_v50, %v850_v40 }
 0x117   : > { %vm9205_vm7 = vcmp.le.f32.partialorder %v13286_v24, 0.7853982  ;;  %v943_v6 = vshll.u32 %v9015_v35, %v941_v20  ;;  %v944_v24 = vshrl.u32 %v926_v15, %v942_v54  ;;  %v1207_v42 = vor.u32 %v1206_v56, %v1205_v53 }
 0x118   : > { %v1123_v49 = vsel %vm1109_vm3, %v1120_v58, %v1122_v39  ;;  %v13289_v59 = vand.u32 2147483647, %v13273_v28  ;;  %v1210_v41 = vor.u32 %v1209_v43, %v1208_v36  ;;  %vm1214_vm8 = vcmp.lt.s32.totalorder %v9192_v38, 4 }
 0x119   : > { %v947_v52 = vadd.s32 127, %v946_v55  ;;  %v9224_v33 = vshrl.u32 %v1034_v21, 30  ;;  %v9227_v4 = vmul.u32.u64.low %v9172_v45, %v1119_v22  ;;  %v9228_v8 = vmul.u32.u64.high %v9172_v45, %v1119_v22, %v9227_v4 }
 0x11a   : > { %v1186_v29 = vand.u32 8388607, %v13289_v59  ;;  %v1198_v35 = vor.u32 %v1197_v10, %v1196_v19  ;;  %v1201_v40 = vor.u32 %v1200_v48, %v1199_v14  ;;  %v1204_v15 = vor.u32 %v1203_v9, %v1202_v3  ;;  %v13290_v48 = vld [vmem:[#allocation21_spill] sm:$0xff] }
 0x11b   : > { %vm1211_vm9 = vcmp.lt.s32.totalorder %v9192_v38, 1  ;;  %v9233_v20 = vmul.u32.u64.low %v9172_v45, %v1123_v49  ;;  %v9234_v50 = vmul.u32.u64.high %v9172_v45, %v1123_v49, %v9233_v20  ;;  %vm1213_vm10 = vcmp.lt.s32.totalorder %v9192_v38, 3 }
 0x11c   : > { %v1220_v59 = vsel %vm1214_vm8, %v1207_v42, 920167782  ;;  %v1092_v54 = vshrl.u32 %v13157_v11, %v9094_v0  ;;  %v1187_v55 = vor.u32 8388608, %v1186_v29  ;;  %v1224_v10 = vsel %vm1214_vm8, %v1210_v41, 1326507024 }
 0x11d   : > { %v1285_v21 = vand.u32 2139095040, %v13290_v48  ;;  %vm655_vm11 = vcmp.lt.s32.totalorder %v9062_v27, 2  ;;  %v945_v53 = vor.u32 %v944_v24, %v943_v6  ;;  %v948_v56 = vshll.u32 %v947_v52, 23 }
 0x11e   : > { %v1036_v49 = vshll.u32 %v9224_v33, 30  ;;  %v1113_v58 = vsel %vm1111_vm15, %v1101_v57, 2102212464  ;;  %vm1212_vm12 = vcmp.lt.s32.totalorder %v9192_v38, 2  ;;  %v1219_v0 = vsel %vm1211_vm9, %v1198_v35, %v1201_v40 }
 0x11f   : > { %v1221_v29 = vsel %vm1213_vm10, %v1204_v15, %v1220_v59  ;;  %v1286_v41 = vshrl.u32 %v1285_v21, 23  ;;  %v13291_v36 = vxor.u32 2147483648, %v9100_v13  ;;  %v9260_v22 = vsel %vm9205_vm7, 0, %v854_v60 }
 0x120   : > { %13292 = vst [vmem:[#allocation56_spill] sm:$0xff] %v9260_v22  ;;  %v1223_v57 = vsel %vm1211_vm9, %v1201_v40, %v1204_v15  ;;  %v1225_v39 = vsel %vm1213_vm10, %v1207_v42, %v1224_v10  ;;  %v1112_v19 = vsel %vm1108_vm1, %v1092_v54, %v9152_v5  ;;  %v1114_v14 = vsel %vm1110_vm2, %v9154_v30, %v1113_v58 }
 0x121   : > { %v658_v43 = vsel %vm656_vm4, %v9084_v31, %v13291_v36  ;;  %v9272_v3 = vshll.u32 %v1187_v55, 8  ;;  %v7064_v9 = vadd.s32 4294967169, %v1286_v41  ;;  %7488 = vcosq.f32 %v9165_v16  ;;  %v13293_v36 = vld [vmem:[#allocation33_spill] sm:$0xff] }
 0x122   : > { %v9278_v60 = vsel %vm9205_vm7, %v8385_v62, %v852_v47  ;;  %v949_v6 = vor.u32 4788187, %v948_v56  ;;  %v1222_v42 = vsel %vm1212_vm12, %v1219_v0, %v1221_v29  ;;  %v952_v24 = vcvt.s32.f32 %v945_v53 }
 0x123   : > { %v9283_v5 = vsub.s32 %v9150_v23, %v1036_v49  ;;  %v1226_v30 = vsel %vm1212_vm12, %v1223_v57, %v1225_v39  ;;  %v1292_v52 = vadd.s32 1, %v7064_v9  ;;  %v1115_v20 = vsel %vm1109_vm3, %v1112_v19, %v1114_v14 }
 0x124   : > { %vm1133_vm13 = vc.u32 %v9234_v50, %v9227_v4  ;;  %v1134_v12 = vadd.s32 1, %v9228_v8  ;;  %v1195_v47 = vshrl.u32 %v13157_v11, %v9160_v18  ;;  %v1216_v59 = vsel %vm1214_vm8, %v1204_v15, 2102212464 }
 0x125   : > { %v9297_v23 = vmul.u32.u64.low %v9272_v3, %v1222_v42  ;;  %v9298_v54 = vmul.u32.u64.high %v9272_v3, %v1222_v42, %v9297_v23  ;;  %vm1293_vm14 = vcmp.gt.s32.totalorder %v1292_v52, 0  ;;  %v950_v55 = vand.u32 2147483647, %v949_v6 }
 0x126   : > { %v9302_v1 = vmul.u32.u64.low %v9272_v3, %v1226_v30  ;;  %v9303_v10 = vmul.u32.u64.high %v9272_v3, %v1226_v30, %v9302_v1  ;;  %v1294_v21 = vsel %vm1293_vm14, %v1292_v52, 0  ;;  %v1039_v53 = vsub.s32 0, %v9283_v5 }
 0x127   : > { %v1131_v56 = vmul.u32 %v9172_v45, %v1115_v20  ;;  %v12912_v18 = vand.u32 2147483647, %v13290_v48  ;;  %v1296_v49 = vand.u32 31, %v1294_v21  ;;  %7490 = vsinq.f32 %v9165_v16 }
 0x128   : > { %v1135_v15 = vsel %vm1133_vm13, %v1134_v12, %v9228_v8  ;;  %v1215_v58 = vsel %vm1211_vm9, %v1195_v47, %v1198_v35  ;;  %v1217_v0 = vsel %vm1213_vm10, %v1201_v40, %v1216_v59  ;;  %v9317_v29 = vsel %vm655_vm11, %v658_v43, %v9144_v46 }
 0x129   : > { %v9320_v45 = vand.u32 3, %v9137_v32  ;;  %v9323_v41 = vand.u32 3, %v9260_v22  ;;  %v9325_v16 = vsub.s32 32, %v1296_v49  ;;  %7492 = vcosq.f32 %v9278_v60 }
 0x12a   : > { %v953_v8 = vmul.f32 %v952_v24, %v950_v55  ;;  %v956_v35 = vsub.s32 4, %v8956_v51  ;;  %v1388_v40 = vand.u32 2139095040, %v13293_v36  ;;  %v7053_v57 = vmin.u32 %v1039_v53, %v9283_v5 }
 0x12b   : > { %v9331_v27 = vadd.s32 %v1135_v15, %v1131_v56  ;;  %v1218_v46 = vsel %vm1212_vm12, %v1215_v58, %v1217_v0  ;;  %v1289_v43 = vand.u32 8388607, %v12912_v18  ;;  %v9337_v39 = vpop.eup %7488  ;;  %vm872_vm15 = vcmp.lt.s32.totalorder %v8410_v2, 0 }
 0x12c   : > { %13294 = vst [vmem:[#allocation57_spill] sm:$0xff] %v9337_v39  ;;  %v1299_v19 = vshll.u32 %v13157_v11, %v1296_v49  ;;  %v1300_v14 = vshrl.u32 %v13203_v63, %v9325_v16  ;;  %v1302_v9 = vshll.u32 %v13203_v63, %v1296_v49  ;;  %v1303_v6 = vshrl.u32 %v13204_v25, %v9325_v16 }
 0x12d   : > { %v1237_v38 = vadd.s32 1, %v9298_v54  ;;  %v9347_v42 = vshrl.u32 %v1294_v21, 5  ;;  %v1305_v24 = vshll.u32 %v13204_v25, %v1296_v49  ;;  %v1306_v30 = vshrl.u32 %v13200_v7, %v9325_v16 }
 0x12e   : > { %vm1236_vm0 = vc.u32 %v9303_v10, %v9297_v23  ;;  %v1308_v52 = vshll.u32 %v13200_v7, %v1296_v49  ;;  %v1309_v20 = vshrl.u32 %v13201_v34, %v9325_v16  ;;  %v1389_v12 = vshrl.u32 %v1388_v40, 23 }
 0x12f   : > { %vm759_vm1 = vcmp.eq.s32.totalorder %v9320_v45, 0  ;;  %vm762_vm2 = vcmp.eq.s32.totalorder %v9320_v45, 2  ;;  %v1041_v47 = vclz %v7053_v57  ;;  %v1137_v59 = vadd.s32 536870912, %v9331_v27 }
 0x130   : > { %v1234_v55 = vmul.u32 %v9272_v3, %v1218_v46  ;;  %v1290_v1 = vor.u32 8388608, %v1289_v43  ;;  %v13295_v21 = vand.u32 2147483647, %v8410_v2  ;;  %v1301_v56 = vor.u32 %v1300_v14, %v1299_v19 }
 0x131   : > { %v1304_v15 = vor.u32 %v1303_v6, %v1302_v9  ;;  %v1310_v58 = vor.u32 %v1309_v20, %v1308_v52  ;;  %v1311_v0 = vshll.u32 %v13201_v34, %v1296_v49  ;;  %v1238_v40 = vsel %vm1236_vm0, %v1237_v38, %v9298_v54  ;;  %v9372_v3 = vpop.eup %7490 }
 0x132   : > { %vm9363_vm3 = vcmp.le.f32.partialorder %v13295_v21, 0.7853982  ;;  %v1307_v18 = vor.u32 %v1306_v30, %v1305_v24  ;;  %v1312_v57 = vshrl.u32 %v13202_v37, %v9325_v16  ;;  %vm1314_vm4 = vcmp.lt.s32.totalorder %v9347_v42, 1  ;;  %13298 = vst [vmem:[#allocation58_spill] sm:$0xff] %v9372_v3 }
 0x133   : > { %vm758_vm7 = vcmp.lt.s32.totalorder %v9320_v45, 2  ;;  %7494 = vsinq.f32 %v9278_v60  ;;  %vm1316_vm8 = vcmp.lt.s32.totalorder %v9347_v42, 3  ;;  %vm1317_vm9 = vcmp.lt.s32.totalorder %v9347_v42, 4  ;;  %v9381_v19 = vpop.eup %7492 }
 0x134   : > { %v7068_v46 = vadd.s32 4294967169, %v1389_v12  ;;  %v954_v49 = vxor.u32 2147483648, %v953_v8  ;;  %v9378_v43 = vshrl.u32 %v1137_v59, 30  ;;  %v1313_v54 = vor.u32 %v1312_v57, %v1311_v0  ;;  %13299 = vst [vmem:[#allocation59_spill] sm:$0xff] %v9381_v19 }
 0x135   : > { %vm1315_vm10 = vcmp.lt.s32.totalorder %v9347_v42, 2  ;;  %v9383_v14 = vadd.s32 %v1238_v40, %v1234_v55  ;;  %v1322_v9 = vsel %vm1314_vm4, %v1301_v56, %v1304_v15  ;;  %v1323_v60 = vsel %vm1317_vm9, %v1310_v58, 920167782 }
 0x136   : > { %v9389_v6 = vshll.u32 %v1290_v1, 8  ;;  %v12914_v38 = vxor.u32 2147483648, %v9372_v3  ;;  %v12913_v24 = vxor.u32 2147483648, %v9337_v39  ;;  %v7054_v30 = vadd.s32 4294967294, %v1041_v47 }
 0x137   : > { %v1324_v52 = vsel %vm1316_vm8, %v1307_v18, %v1323_v60  ;;  %v1326_v12 = vsel %vm1314_vm4, %v1304_v15, %v1307_v18  ;;  %v1327_v59 = vsel %vm1317_vm9, %v1313_v54, 1326507024  ;;  %v1395_v55 = vadd.s32 1, %v7068_v46 }
 0x138   : > { %v1325_v20 = vsel %vm1315_vm10, %v1322_v9, %v1324_v52  ;;  %v955_v1 = vsel %vm872_vm15, %v954_v49, %v953_v8  ;;  %v957_v47 = vsel %vm872_vm15, %v956_v35, %v8956_v51  ;;  %v1139_v21 = vshll.u32 %v9378_v43, 30 }
 0x139   : > { %v1328_v0 = vsel %vm1316_vm8, %v1310_v58, %v1327_v59  ;;  %v1240_v40 = vadd.s32 536870912, %v9383_v14  ;;  %v9413_v54 = vmul.u32.u64.low %v9389_v6, %v1325_v20  ;;  %v9414_v46 = vmul.u32.u64.high %v9389_v6, %v1325_v20, %v9413_v54 }
 0x13a   : > { %v1329_v57 = vsel %vm1315_vm10, %v1326_v12, %v1328_v0  ;;  %vm7055_vm11 = vcmp.lt.s32.totalorder %v7054_v30, 0  ;;  %v1298_v8 = vshrl.u32 %v13157_v11, %v9325_v16  ;;  %v761_v58 = vsel %vm759_vm1, %v9337_v39, %v12914_v38 }
 0x13b   : > { %v9420_v51 = vmul.u32.u64.low %v9389_v6, %v1329_v57  ;;  %v9421_v35 = vmul.u32.u64.high %v9389_v6, %v1329_v57, %v9420_v51  ;;  %v764_v49 = vsel %vm762_vm2, %v12913_v24, %v9372_v3  ;;  %v1319_v9 = vsel %vm1317_vm9, %v1307_v18, 2102212464  ;;  %v13302_v3 = vld [vmem:[#allocation11_spill] sm:$0xff] }
 0x13c   : > { %vm1396_vm12 = vcmp.gt.s32.totalorder %v1395_v55, 0  ;;  %v958_v16 = vsel %vm9363_vm3, %v8410_v2, %v955_v1  ;;  %v9440_v60 = vsel %vm9363_vm3, 0, %v957_v47  ;;  %v9443_v52 = vsub.s32 %v9331_v27, %v1139_v21 }
 0x13d   : > { %13300 = vst [vmem:[#allocation60_spill] sm:$0xff] %v9440_v60  ;;  %v1397_v20 = vsel %vm1396_vm12, %v1395_v55, 0  ;;  %v9445_v12 = vpop.eup %7494  ;;  %v9447_v59 = vsel %vm7055_vm11, 0, %v7054_v30  ;;  %v9449_v0 = vshrl.u32 %v1240_v40, 30  ;;  %v12915_v18 = vand.u32 2147483647, %v13293_v36 }
 0x13e   : > { %13301 = vst [vmem:[#allocation61_spill] sm:$0xff] %v9445_v12  ;;  %v1399_v57 = vand.u32 31, %v1397_v20  ;;  %v9454_v1 = vsel %vm758_vm7, %v761_v58, %v764_v49  ;;  %v9457_v53 = vand.u32 3, %v9440_v60  ;;  %v1318_v27 = vsel %vm1314_vm4, %v1298_v8, %v1301_v56 }
 0x13f   : > { %v1320_v55 = vsel %vm1316_vm8, %v1304_v15, %v1319_v9  ;;  %7496 = vcosq.f32 %v958_v16  ;;  %v1029_v47 = vadd.s32 %v9031_v26, %v9039_v17  ;;  %v1049_v40 = vsub.s32 4294967266, %v9447_v59 }
 0x140   : > { %v9466_v21 = vsub.s32 32, %v1399_v57  ;;  %7498 = vsinq.f32 %v958_v16  ;;  %v1142_v51 = vsub.s32 0, %v9443_v52  ;;  %vm862_vm13 = vcmp.eq.s32.totalorder %v9323_v41, 0 }
 0x141   : > { %vm865_vm14 = vcmp.eq.s32.totalorder %v9323_v41, 2  ;;  %v1242_v56 = vshll.u32 %v9449_v0, 30  ;;  %v1321_v15 = vsel %vm1315_vm10, %v1318_v27, %v1320_v55  ;;  %v1340_v26 = vadd.s32 1, %v9414_v46 }
 0x142   : > { %v1392_v17 = vand.u32 8388607, %v12915_v18  ;;  %vm1339_vm15 = vc.u32 %v9421_v35, %v9413_v54  ;;  %v1402_v8 = vshll.u32 %v13157_v11, %v1399_v57  ;;  %v1403_v58 = vshrl.u32 %v13203_v63, %v9466_v21 }
 0x143   : > { %v1405_v49 = vshll.u32 %v13203_v63, %v1399_v57  ;;  %v1406_v9 = vshrl.u32 %v13204_v25, %v9466_v21  ;;  %v1408_v42 = vshll.u32 %v13204_v25, %v1399_v57  ;;  %v1409_v16 = vshrl.u32 %v13200_v7, %v9466_v21 }
 0x144   : > { %v1411_v27 = vshll.u32 %v13200_v7, %v1399_v57  ;;  %v1045_v55 = vsub.s32 32, %v9447_v59  ;;  %v1050_v24 = vadd.s32 127, %v1049_v40  ;;  %v7057_v38 = vmin.u32 %v1142_v51, %v9443_v52 }
 0x145   : > { %v9493_v18 = vshrl.u32 %v1397_v20, 5  ;;  %v9496_v30 = vsub.s32 %v9383_v14, %v1242_v56  ;;  %v1412_v45 = vshrl.u32 %v13201_v34, %v9466_v21  ;;  %v1414_v60 = vshll.u32 %v13201_v34, %v1399_v57 }
 0x146   : > { %v1415_v39 = vshrl.u32 %v13202_v37, %v9466_v21  ;;  %vm550_vm0 = vweird.f32 %v13302_v3  ;;  %v1337_v31 = vmul.u32 %v9389_v6, %v1321_v15  ;;  %v1341_v20 = vsel %vm1339_vm15, %v1340_v26, %v9414_v46 }
 0x147   : > { %v1393_v40 = vor.u32 8388608, %v1392_v17  ;;  %v1404_v14 = vor.u32 %v1403_v58, %v1402_v8  ;;  %vm653_vm1 = vweird.f32 %v13262_v44  ;;  %v1407_v51 = vor.u32 %v1406_v9, %v1405_v49 }
 0x148   : > { %v1410_v56 = vor.u32 %v1409_v16, %v1408_v42  ;;  %v1413_v13 = vor.u32 %v1412_v45, %v1411_v27  ;;  %v1416_v57 = vor.u32 %v1415_v39, %v1414_v60  ;;  %vm12962_vm2 = vweird.f32 %v13274_v61  ;;  %v13304_v45 = vld [vmem:[#allocation13_spill] sm:$0xff] }
 0x149   : > { %vm861_vm3 = vcmp.lt.s32.totalorder %v9323_v41, 2  ;;  %v1046_v6 = vshll.u32 %v9283_v5, %v9447_v59  ;;  %v1047_v15 = vshrl.u32 %v1029_v47, %v1045_v55  ;;  %v1051_v22 = vshll.u32 %v1050_v24, 23  ;;  %v9515_v46 = vpop.eup %7496 }
 0x14a   : > { %vm1417_vm4 = vcmp.lt.s32.totalorder %v9493_v18, 1  ;;  %13303 = vst [vmem:[#allocation62_spill] sm:$0xff] %v9515_v46  ;;  %v1144_v26 = vclz %v7057_v38  ;;  %v1245_v17 = vsub.s32 0, %v9496_v30  ;;  %vm1420_vm7 = vcmp.lt.s32.totalorder %v9493_v18, 4  ;;  %v9520_v60 = vpop.eup %7498 }
 0x14b   : > { %v1491_v39 = vand.u32 2139095040, %v13304_v45  ;;  %13305 = vst [vmem:[#allocation63_spill] sm:$0xff] %v9520_v60  ;;  %v9522_v8 = vadd.s32 %v1341_v20, %v1337_v31  ;;  %vm1418_vm8 = vcmp.lt.s32.totalorder %v9493_v18, 2  ;;  %vm1419_vm9 = vcmp.lt.s32.totalorder %v9493_v18, 3 }
 0x14c   : > { %v9526_v5 = vshll.u32 %v1393_v40, 8  ;;  %v1425_v24 = vsel %vm1417_vm4, %v1404_v14, %v1407_v51  ;;  %v1426_v38 = vsel %vm1420_vm7, %v1413_v13, 920167782  ;;  %v1429_v59 = vsel %vm1417_vm4, %v1407_v51, %v1410_v56 }
 0x14d   : > { %v1430_v47 = vsel %vm1420_vm7, %v1416_v57, 1326507024  ;;  %v13306_v31 = vxor.u32 2147483648, %v9445_v12  ;;  %v13307_v49 = vxor.u32 2147483648, %v9381_v19  ;;  %v1048_v42 = vor.u32 %v1047_v15, %v1046_v6 }
 0x14e   : > { %v1052_v16 = vor.u32 4788187, %v1051_v22  ;;  %v7061_v27 = vmin.u32 %v1245_v17, %v9496_v30  ;;  %v1427_v55 = vsel %vm1419_vm9, %v1410_v56, %v1426_v38  ;;  %v1431_v20 = vsel %vm1419_vm9, %v1413_v13, %v1430_v47  ;;  %v13308_v47 = vld [vmem:[#allocation54_spill] sm:$0xff] }
 0x14f   : > { %v864_v58 = vsel %vm862_vm13, %v9381_v19, %v13306_v31  ;;  %v867_v9 = vsel %vm865_vm14, %v13307_v49, %v9445_v12  ;;  %v1492_v40 = vshrl.u32 %v1491_v39, 23  ;;  %v7058_v57 = vadd.s32 4294967294, %v1144_v26 }
 0x150   : > { %v1343_v31 = vadd.s32 536870912, %v9522_v8  ;;  %v1428_v19 = vsel %vm1418_vm8, %v1425_v24, %v1427_v55  ;;  %v1432_v49 = vsel %vm1418_vm8, %v1429_v59, %v1431_v20  ;;  %v1053_v13 = vand.u32 2147483647, %v1052_v16 }
 0x151   : > { %v9557_v22 = vmul.u32.u64.low %v9526_v5, %v1432_v49  ;;  %v9558_v6 = vmul.u32.u64.high %v9526_v5, %v1432_v49, %v9557_v22  ;;  %v9561_v15 = vmul.u32.u64.low %v9526_v5, %v1428_v19  ;;  %v9562_v17 = vmul.u32.u64.high %v9526_v5, %v1428_v19, %v9561_v15 }
 0x152   : > { %v1055_v39 = vcvt.s32.f32 %v1048_v42  ;;  %v1401_v26 = vshrl.u32 %v13157_v11, %v9466_v21  ;;  %v7072_v38 = vadd.s32 4294967169, %v1492_v40  ;;  %v9570_v24 = vsel %vm550_vm0, nan, %v13308_v47  ;;  %v13311_v42 = vld [vmem:[#allocation17_spill] sm:$0xff] }
 0x153   : > { %13309 = vst [vmem:[#allocation54_spill] sm:$0xff] %v9570_v24  ;;  %v1059_v59 = vsub.s32 4, %v9224_v33  ;;  %v1247_v55 = vclz %v7061_v27  ;;  %v1422_v20 = vsel %vm1420_vm7, %v1410_v56, 2102212464  ;;  %v9578_v19 = vsel %vm653_vm1, nan, %v9317_v29 }
 0x154   : > { %13310 = vst [vmem:[#allocation64_spill] sm:$0xff] %v9578_v19  ;;  %vm975_vm10 = vcmp.lt.s32.totalorder %v13311_v42, 0  ;;  %v9581_v21 = vshrl.u32 %v1343_v31, 30  ;;  %v1498_v16 = vadd.s32 1, %v7072_v38  ;;  %v9586_v40 = vsel %vm12962_vm2, nan, %v9454_v1 }
 0x155   : > { %13312 = vst [vmem:[#allocation65_spill] sm:$0xff] %v9586_v40  ;;  %v9590_v27 = vsel %vm861_vm3, %v864_v58, %v867_v9  ;;  %vm968_vm11 = vcmp.eq.s32.totalorder %v9457_v53, 2  ;;  %vm7059_vm12 = vcmp.lt.s32.totalorder %v7058_v57, 0  ;;  %v12928_v29 = vxor.u32 2147483648, %v9515_v46 }
 0x156   : > { %v1056_v56 = vmul.f32 %v1055_v39, %v1053_v13  ;;  %v1421_v31 = vsel %vm1417_vm4, %v1401_v26, %v1404_v14  ;;  %v1423_v49 = vsel %vm1419_vm9, %v1407_v51, %v1422_v20  ;;  %v9601_v1 = vsel %vm975_vm10, %v1059_v59, %v9224_v33 }
 0x157   : > { %v7062_v41 = vadd.s32 4294967294, %v1247_v55  ;;  %v12929_v58 = vand.u32 2147483647, %v13304_v45  ;;  %vm1499_vm13 = vcmp.gt.s32.totalorder %v1498_v16, 0  ;;  %vm965_vm14 = vcmp.eq.s32.totalorder %v9457_v53, 0 }
 0x158   : > { %v13313_v9 = vand.u32 2147483647, %v13311_v42  ;;  %v1147_v14 = vsel %vm7059_vm12, 0, %v7058_v57  ;;  %v1345_v51 = vshll.u32 %v9581_v21, 30  ;;  %v1443_v13 = vadd.s32 1, %v9562_v17 }
 0x159   : > { %v1500_v39 = vsel %vm1499_vm13, %v1498_v16, 0  ;;  %v1132_v33 = vadd.s32 %v9227_v4, %v9234_v50  ;;  %v1424_v26 = vsel %vm1418_vm8, %v1421_v31, %v1423_v49  ;;  %vm1442_vm3 = vc.u32 %v9558_v6, %v9561_v15 }
 0x15a   : > { %vm9607_vm15 = vcmp.le.f32.partialorder %v13313_v9, 0.7853982  ;;  %v1502_v38 = vand.u32 31, %v1500_v39  ;;  %v9625_v57 = vsel %vm968_vm11, %v12928_v29, %v9520_v60  ;;  %v1057_v59 = vxor.u32 2147483648, %v1056_v56 }
 0x15b   : > { %v1148_v55 = vsub.s32 32, %v1147_v14  ;;  %v1152_v20 = vsub.s32 4294967266, %v1147_v14  ;;  %vm7063_vm4 = vcmp.lt.s32.totalorder %v7062_v41, 0  ;;  %v1495_v4 = vand.u32 8388607, %v12929_v58 }
 0x15c   : > { %v9629_v50 = vsub.s32 32, %v1502_v38  ;;  %v9632_v18 = vsub.s32 %v9522_v8, %v1345_v51  ;;  %v1440_v16 = vmul.u32 %v9526_v5, %v1424_v26  ;;  %v1444_v31 = vsel %vm1442_vm3, %v1443_v13, %v9562_v17 }
 0x15d   : > { %v1505_v49 = vshll.u32 %v13157_v11, %v1502_v38  ;;  %v1508_v29 = vshll.u32 %v13203_v63, %v1502_v38  ;;  %v1514_v58 = vshll.u32 %v13200_v7, %v1502_v38  ;;  %v9643_v40 = vshrl.u32 %v1500_v39, 5 }
 0x15e   : > { %v1506_v9 = vshrl.u32 %v13203_v63, %v9629_v50  ;;  %v1509_v47 = vshrl.u32 %v13204_v25, %v9629_v50  ;;  %v1511_v8 = vshll.u32 %v13204_v25, %v1502_v38  ;;  %v1512_v5 = vshrl.u32 %v13200_v7, %v9629_v50 }
 0x15f   : > { %v1515_v17 = vshrl.u32 %v13201_v34, %v9629_v50  ;;  %v1058_v51 = vsel %vm975_vm10, %v1057_v59, %v1056_v56  ;;  %v1149_v13 = vshll.u32 %v9443_v52, %v1147_v14  ;;  %v1517_v26 = vshll.u32 %v13201_v34, %v1502_v38  ;;  %v13317_v59 = vld [vmem:[#allocation16_spill] sm:$0xff] }
 0x160   : > { %v1518_v19 = vshrl.u32 %v13202_v37, %v9629_v50  ;;  %v1150_v39 = vshrl.u32 %v1132_v33, %v1148_v55  ;;  %v1153_v24 = vadd.s32 127, %v1152_v20  ;;  %v9657_v12 = vsel %vm7063_vm4, 0, %v7062_v41  ;;  %v13318_v20 = vld [vmem:[#allocation19_spill] sm:$0xff] }
 0x161   : > { %v1348_v61 = vsub.s32 0, %v9632_v18  ;;  %v9660_v44 = vadd.s32 %v1444_v31, %v1440_v16  ;;  %v1507_v3 = vor.u32 %v1506_v9, %v1505_v49  ;;  %v1510_v32 = vor.u32 %v1509_v47, %v1508_v29 }
 0x162   : > { %v1516_v45 = vor.u32 %v1515_v17, %v1514_v58  ;;  %vm964_vm7 = vcmp.lt.s32.totalorder %v9457_v53, 2  ;;  %v1496_v52 = vor.u32 8388608, %v1495_v4  ;;  %v1513_v56 = vor.u32 %v1512_v5, %v1511_v8 }
 0x163   : > { %vm1520_vm8 = vcmp.lt.s32.totalorder %v9643_v40, 1  ;;  %vm1523_vm9 = vcmp.lt.s32.totalorder %v9643_v40, 4  ;;  %vm12945_vm10 = vweird.f32 %v8385_v62  ;;  %v13316_v41 = vxor.u32 2147483648, %v9520_v60 }
 0x164   : > { %v9674_v29 = vsel %vm9607_vm15, %v13311_v42, %v1058_v51  ;;  %v1162_v58 = vsub.s32 4, %v9378_v43  ;;  %v1519_v33 = vor.u32 %v1518_v19, %v1517_v26  ;;  %v1154_v38 = vshll.u32 %v1153_v24, 23 }
 0x165   : > { %v967_v14 = vsel %vm965_vm14, %v9515_v46, %v13316_v41  ;;  %v1255_v47 = vsub.s32 4294967266, %v9657_v12  ;;  %vm1522_vm11 = vcmp.lt.s32.totalorder %v9643_v40, 3  ;;  %v1594_v55 = vand.u32 2139095040, %v13317_v59 }
 0x166   : > { %vm12944_vm12 = vweird.f32 %v8410_v2  ;;  %vm1078_vm13 = vcmp.lt.s32.totalorder %v13318_v20, 0  ;;  %v1446_v4 = vadd.s32 536870912, %v9660_v44  ;;  %vm1521_vm14 = vcmp.lt.s32.totalorder %v9643_v40, 2 }
 0x167   : > { %v1528_v16 = vsel %vm1520_vm8, %v1507_v3, %v1510_v32  ;;  %v1529_v24 = vsel %vm1523_vm9, %v1516_v45, 920167782  ;;  %v1151_v19 = vor.u32 %v1150_v39, %v1149_v13  ;;  %v7065_v31 = vmin.u32 %v1348_v61, %v9632_v18 }
 0x168   : > { %v1532_v49 = vsel %vm1520_vm8, %v1510_v32, %v1513_v56  ;;  %v9691_v9 = vshll.u32 %v1496_v52, 8  ;;  %7500 = vcosq.f32 %v9674_v29  ;;  %v1235_v8 = vadd.s32 %v9297_v23, %v9303_v10 }
 0x169   : > { %v1530_v5 = vsel %vm1522_vm11, %v1513_v56, %v1529_v24  ;;  %v1533_v17 = vsel %vm1523_vm9, %v1519_v33, 1326507024  ;;  %v13319_v51 = vand.u32 2147483647, %v13318_v20  ;;  %v1155_v13 = vor.u32 4788187, %v1154_v38 }
 0x16a   : > { %v1251_v26 = vsub.s32 32, %v9657_v12  ;;  %v1531_v39 = vsel %vm1521_vm14, %v1528_v16, %v1530_v5  ;;  %v1534_v23 = vsel %vm1522_vm11, %v1516_v45, %v1533_v17  ;;  %v1256_v10 = vadd.s32 127, %v1255_v47 }
 0x16b   : > { %vm9702_vm3 = vcmp.le.f32.partialorder %v13319_v51, 0.7853982  ;;  %v9711_v52 = vshrl.u32 %v1446_v4, 30  ;;  %v1535_v41 = vsel %vm1521_vm14, %v1532_v49, %v1534_v23  ;;  %v1595_v33 = vshrl.u32 %v1594_v55, 23 }
 0x16c   : > { %v1158_v24 = vcvt.s32.f32 %v1151_v19  ;;  %v1350_v51 = vclz %v7065_v31  ;;  %v9716_v46 = vmul.u32.u64.low %v9691_v9, %v1531_v39  ;;  %v9717_v38 = vmul.u32.u64.high %v9691_v9, %v1531_v39, %v9716_v46 }
 0x16d   : > { %v1504_v16 = vshrl.u32 %v13157_v11, %v9629_v50  ;;  %v9723_v5 = vmul.u32.u64.low %v9691_v9, %v1535_v41  ;;  %v9724_v45 = vmul.u32.u64.high %v9691_v9, %v1535_v41, %v9723_v5  ;;  %v7076_v47 = vadd.s32 4294967169, %v1595_v33 }
 0x16e   : > { %v1156_v4 = vand.u32 2147483647, %v1155_v13  ;;  %v1252_v49 = vshll.u32 %v9496_v30, %v9657_v12  ;;  %v1253_v55 = vshrl.u32 %v1235_v8, %v1251_v26  ;;  %v1525_v19 = vsel %vm1523_vm9, %v1513_v56, 2102212464 }
 0x16f   : > { %v971_v31 = vsel %vm964_vm7, %v967_v14, %v9625_v57  ;;  %v1257_v17 = vshll.u32 %v1256_v10, 23  ;;  %v1448_v50 = vshll.u32 %v9711_v52, 30  ;;  %v1601_v39 = vadd.s32 1, %v7076_v47 }
 0x170   : > { %v9737_v23 = vsel %vm12945_vm10, nan, %v9590_v27  ;;  %v9742_v12 = vsel %vm9607_vm15, 0, %v9601_v1  ;;  %v1163_v30 = vsel %vm1078_vm13, %v1162_v58, %v9378_v43  ;;  %v7066_v53 = vadd.s32 4294967294, %v1350_v51 }
 0x171   : > { %13322 = vst [vmem:[#allocation66_spill] sm:$0xff] %v9737_v23  ;;  %13323 = vst [vmem:[#allocation67_spill] sm:$0xff] %v9742_v12  ;;  %v9748_v57 = vand.u32 3, %v9742_v12  ;;  %v1524_v56 = vsel %vm1520_vm8, %v1504_v16, %v1507_v3  ;;  %v1526_v27 = vsel %vm1522_vm11, %v1510_v32, %v1525_v19  ;;  %vm1602_vm4 = vcmp.gt.s32.totalorder %v1601_v39, 0 }
 0x172   : > { %v9756_v22 = vsel %vm12944_vm12, nan, %v971_v31  ;;  %v1159_v1 = vmul.f32 %v1158_v24, %v1156_v4  ;;  %v1254_v14 = vor.u32 %v1253_v55, %v1252_v49  ;;  %v1603_v8 = vsel %vm1602_vm4, %v1601_v39, 0  ;;  %v9758_v13 = vpop.eup %7500  ;;  %v13327_v31 = vld [vmem:[#allocation34_spill] sm:$0xff] }
 0x173   : > { %13324 = vst [vmem:[#allocation68_spill] sm:$0xff] %v9756_v22  ;;  %13325 = vst [vmem:[#allocation69_spill] sm:$0xff] %v9758_v13  ;;  %v9762_v43 = vsel %vm9702_vm3, 0, %v1163_v30  ;;  %v1258_v58 = vor.u32 4788187, %v1257_v17  ;;  %v9765_v3 = vsub.s32 %v9660_v44, %v1448_v50  ;;  %v1605_v26 = vand.u32 31, %v1603_v8 }
 0x174   : > { %13326 = vst [vmem:[#allocation70_spill] sm:$0xff] %v9762_v43  ;;  %vm7067_vm15 = vcmp.lt.s32.totalorder %v7066_v53, 0  ;;  %v1527_v32 = vsel %vm1521_vm14, %v1524_v56, %v1526_v27  ;;  %v1546_v10 = vadd.s32 1, %v9717_v38  ;;  %v12939_v41 = vand.u32 2147483647, %v13317_v59 }
 0x175   : > { %7502 = vsinq.f32 %v9674_v29  ;;  %v9773_v33 = vand.u32 3, %v9762_v43  ;;  %vm1545_vm7 = vc.u32 %v9724_v45, %v9716_v46  ;;  %v9777_v24 = vsub.s32 32, %v1605_v26 }
 0x176   : > { %v1160_v51 = vxor.u32 2147483648, %v1159_v1  ;;  %v1261_v16 = vcvt.s32.f32 %v1254_v14  ;;  %v1265_v40 = vsub.s32 4, %v9449_v0  ;;  %v1259_v5 = vand.u32 2147483647, %v1258_v58 }
 0x177   : > { %v9781_v47 = vsel %vm7067_vm15, 0, %v7066_v53  ;;  %v1451_v4 = vsub.s32 0, %v9765_v3  ;;  %v1543_v29 = vmul.u32 %v9691_v9, %v1527_v32  ;;  %v1547_v49 = vsel %vm1545_vm7, %v1546_v10, %v9717_v38 }
 0x178   : > { %v1598_v55 = vand.u32 8388607, %v12939_v41  ;;  %v9788_v19 = vshrl.u32 %v1603_v8, 5  ;;  %v1697_v17 = vand.u32 2139095040, %v13327_v31  ;;  %v1608_v50 = vshll.u32 %v13157_v11, %v1605_v26 }
 0x179   : > { %v1609_v39 = vshrl.u32 %v13203_v63, %v9777_v24  ;;  %v1611_v30 = vshll.u32 %v13203_v63, %v1605_v26  ;;  %v1612_v53 = vshrl.u32 %v13204_v25, %v9777_v24  ;;  %vm1181_vm8 = vcmp.lt.s32.totalorder %v13273_v28, 0 }
 0x17a   : > { %v1614_v9 = vshll.u32 %v13204_v25, %v1605_v26  ;;  %v1615_v38 = vshrl.u32 %v13200_v7, %v9777_v24  ;;  %v1617_v56 = vshll.u32 %v13200_v7, %v1605_v26  ;;  %v1618_v27 = vshrl.u32 %v13201_v34, %v9777_v24 }
 0x17b   : > { %v1338_v14 = vadd.s32 %v9413_v54, %v9421_v35  ;;  %v1358_v8 = vsub.s32 4294967266, %v9781_v47  ;;  %v7069_v58 = vmin.u32 %v1451_v4, %v9765_v3  ;;  %v1620_v32 = vshll.u32 %v13201_v34, %v1605_v26 }
 0x17c   : > { %v1262_v10 = vmul.f32 %v1261_v16, %v1259_v5  ;;  %v1354_v41 = vsub.s32 32, %v9781_v47  ;;  %v1621_v44 = vshrl.u32 %v13202_v37, %v9777_v24  ;;  %v1698_v22 = vshrl.u32 %v1697_v17, 23 }
 0x17d   : > { %v9812_v23 = vadd.s32 %v1547_v49, %v1543_v29  ;;  %v1599_v2 = vor.u32 8388608, %v1598_v55  ;;  %v1610_v60 = vor.u32 %v1609_v39, %v1608_v50  ;;  %v1613_v62 = vor.u32 %v1612_v53, %v1611_v30 }
 0x17e   : > { %vm1071_vm9 = vcmp.eq.s32.totalorder %v9748_v57, 2  ;;  %v13328_v54 = vand.u32 2147483647, %v13273_v28  ;;  %v1616_v26 = vor.u32 %v1615_v38, %v1614_v9  ;;  %v1619_v16 = vor.u32 %v1618_v27, %v1617_v56 }
 0x17f   : > { %v1622_v5 = vor.u32 %v1621_v44, %v1620_v32  ;;  %vm1623_vm14 = vcmp.lt.s32.totalorder %v9788_v19, 1  ;;  %v9822_v4 = vpop.eup %7502  ;;  %vm1068_vm4 = vcmp.eq.s32.totalorder %v9748_v57, 0  ;;  %v1161_v29 = vsel %vm1078_vm13, %v1160_v51, %v1159_v1 }
 0x180   : > { %vm9817_vm11 = vcmp.le.f32.partialorder %v13328_v54, 0.7853982  ;;  %13331 = vst [vmem:[#allocation34_spill] sm:$0xff] %v9822_v4  ;;  %v1359_v49 = vadd.s32 127, %v1358_v8  ;;  %v1453_v55 = vclz %v7069_v58  ;;  %vm1626_vm15 = vcmp.lt.s32.totalorder %v9788_v19, 4 }
 0x181   : > { %v1263_v17 = vxor.u32 2147483648, %v1262_v10  ;;  %v1355_v50 = vshll.u32 %v9632_v18, %v9781_v47  ;;  %vm1625_vm7 = vcmp.lt.s32.totalorder %v9788_v19, 3  ;;  %v7080_v44 = vadd.s32 4294967169, %v1698_v22 }
 0x182   : > { %v1356_v39 = vshrl.u32 %v1338_v14, %v1354_v41  ;;  %v1549_v30 = vadd.s32 536870912, %v9812_v23  ;;  %vm1624_vm12 = vcmp.lt.s32.totalorder %v9788_v19, 2  ;;  %v1631_v53 = vsel %vm1623_vm14, %v1610_v60, %v1613_v62 }
 0x183   : > { %v1632_v1 = vsel %vm1626_vm15, %v1619_v16, 920167782  ;;  %v1635_v51 = vsel %vm1623_vm14, %v1613_v62, %v1616_v26  ;;  %v1636_v18 = vsel %vm1626_vm15, %v1622_v5, 1326507024  ;;  %v9841_v47 = vshll.u32 %v1599_v2, 8 }
 0x184   : > { %v1360_v22 = vshll.u32 %v1359_v49, 23  ;;  %v7070_v41 = vadd.s32 4294967294, %v1453_v55  ;;  %v1633_v9 = vsel %vm1625_vm7, %v1616_v26, %v1632_v1  ;;  %v1637_v38 = vsel %vm1625_vm7, %v1619_v16, %v1636_v18 }
 0x185   : > { %v12946_v56 = vxor.u32 2147483648, %v9822_v4  ;;  %v1266_v27 = vsel %vm1181_vm8, %v1265_v40, %v9449_v0  ;;  %v1634_v14 = vsel %vm1624_vm12, %v1631_v53, %v1633_v9  ;;  %v1704_v8 = vadd.s32 1, %v7080_v44 }
 0x186   : > { %v1164_v2 = vsel %vm9702_vm3, %v13318_v20, %v1161_v29  ;;  %v1264_v58 = vsel %vm1181_vm8, %v1263_v17, %v1262_v10  ;;  %v9858_v32 = vshrl.u32 %v1549_v30, 30  ;;  %v1638_v54 = vsel %vm1624_vm12, %v1635_v51, %v1637_v38 }
 0x187   : > { %v1357_v16 = vor.u32 %v1356_v39, %v1355_v50  ;;  %v9863_v5 = vmul.u32.u64.low %v9841_v47, %v1634_v14  ;;  %v9864_v0 = vmul.u32.u64.high %v9841_v47, %v1634_v14, %v9863_v5  ;;  %vm1705_vm13 = vcmp.gt.s32.totalorder %v1704_v8, 0 }
 0x188   : > { %v1361_v40 = vor.u32 4788187, %v1360_v22  ;;  %vm7071_vm10 = vcmp.lt.s32.totalorder %v7070_v41, 0  ;;  %v1607_v61 = vshrl.u32 %v13157_v11, %v9777_v24  ;;  %v1706_v29 = vsel %vm1705_vm13, %v1704_v8, 0 }
 0x189   : > { %v1628_v10 = vsel %vm1626_vm15, %v1616_v26, 2102212464  ;;  %v9872_v49 = vmul.u32.u64.low %v9841_v47, %v1638_v54  ;;  %v9873_v55 = vmul.u32.u64.high %v9841_v47, %v1638_v54, %v9872_v49  ;;  %v1708_v17 = vand.u32 31, %v1706_v29 }
 0x18a   : > { %v13332_v50 = vxor.u32 2147483648, %v9758_v13  ;;  %v1267_v24 = vsel %vm9817_vm11, %v13273_v28, %v1264_v58  ;;  %v1551_v39 = vshll.u32 %v9858_v32, 30  ;;  %v12947_v26 = vand.u32 2147483647, %v13327_v31 }
 0x18b   : > { %v9892_v30 = vsel %vm1068_vm4, %v9758_v13, %v12946_v56  ;;  %7504 = vcosq.f32 %v1164_v2  ;;  %v9896_v53 = vsel %vm9817_vm11, 0, %v1266_v27  ;;  %v9898_v1 = vsel %vm7071_vm10, 0, %v7070_v41 }
 0x18c   : > { %v9880_v44 = vsel %vm1071_vm9, %v13332_v50, %v9822_v4  ;;  %13333 = vst [vmem:[#allocation71_spill] sm:$0xff] %v9896_v53  ;;  %7506 = vsinq.f32 %v1164_v2  ;;  %v1627_v51 = vsel %vm1623_vm14, %v1607_v61, %v1610_v60  ;;  %v1629_v18 = vsel %vm1625_vm7, %v1613_v62, %v1628_v10 }
 0x18d   : > { %v1709_v22 = vsub.s32 32, %v1708_v17  ;;  %7508 = vcosq.f32 %v1267_v24  ;;  %v1362_v9 = vand.u32 2147483647, %v1361_v40  ;;  %v1364_v38 = vcvt.s32.f32 %v1357_v16 }
 0x18e   : > { %v1441_v14 = vadd.s32 %v9561_v15, %v9558_v6  ;;  %v1457_v35 = vsub.s32 32, %v9898_v1  ;;  %v1461_v27 = vsub.s32 4294967266, %v9898_v1  ;;  %v9909_v41 = vsub.s32 %v9812_v23, %v1551_v39 }
 0x18f   : > { %v1701_v60 = vand.u32 8388607, %v12947_v26  ;;  %v1630_v62 = vsel %vm1624_vm12, %v1627_v51, %v1629_v18  ;;  %v1649_v8 = vadd.s32 1, %v9864_v0  ;;  %v9916_v2 = vshrl.u32 %v1706_v29, 5 }
 0x190   : > { %v1711_v58 = vshll.u32 %v13157_v11, %v1708_v17  ;;  %v1712_v6 = vshrl.u32 %v13203_v63, %v1709_v22  ;;  %v1714_v15 = vshll.u32 %v13203_v63, %v1708_v17  ;;  %v1715_v54 = vshrl.u32 %v13204_v25, %v1709_v22 }
 0x191   : > { %v1720_v23 = vshll.u32 %v13200_v7, %v1708_v17  ;;  %vm1648_vm10 = vc.u32 %v9873_v55, %v9863_v5  ;;  %v1717_v19 = vshll.u32 %v13204_v25, %v1708_v17  ;;  %v1718_v16 = vshrl.u32 %v13200_v7, %v1709_v22 }
 0x192   : > { %v1721_v40 = vshrl.u32 %v13201_v34, %v1709_v22  ;;  %v1462_v61 = vadd.s32 127, %v1461_v27  ;;  %v1554_v29 = vsub.s32 0, %v9909_v41  ;;  %v1723_v10 = vshll.u32 %v13201_v34, %v1708_v17 }
 0x193   : > { %v1724_v49 = vshrl.u32 %v13202_v37, %v1709_v22  ;;  %v9931_v50 = vmul.f32 %v1364_v38, %v1362_v9  ;;  %v1458_v39 = vshll.u32 %v9765_v3, %v9898_v1  ;;  %v1646_v51 = vmul.u32 %v9841_v47, %v1630_v62 }
 0x194   : > { %v1722_v18 = vor.u32 %v1721_v40, %v1720_v23  ;;  %vm1067_vm12 = vcmp.lt.s32.totalorder %v9748_v57, 2  ;;  %v1650_v56 = vsel %vm1648_vm10, %v1649_v8, %v9864_v0  ;;  %v1702_v26 = vor.u32 8388608, %v1701_v60  ;;  %v13337_v40 = vld [vmem:[#allocation35_spill] sm:$0xff] }
 0x195   : > { %v1713_v27 = vor.u32 %v1712_v6, %v1711_v58  ;;  %v1716_v13 = vor.u32 %v1715_v54, %v1714_v15  ;;  %v9938_v4 = vpop.eup %7504  ;;  %v1719_v17 = vor.u32 %v1718_v16, %v1717_v19  ;;  %v1725_v43 = vor.u32 %v1724_v49, %v1723_v10 }
 0x196   : > { %13334 = vst [vmem:[#allocation72_spill] sm:$0xff] %v9938_v4  ;;  %vm1726_vm3 = vcmp.lt.s32.totalorder %v9916_v2, 1  ;;  %vm1729_vm8 = vcmp.lt.s32.totalorder %v9916_v2, 4  ;;  %v9942_v9 = vpop.eup %7506  ;;  %vm1284_vm9 = vcmp.lt.s32.totalorder %v13290_v48, 0  ;;  %v1459_v3 = vshrl.u32 %v1441_v14, %v1457_v35 }
 0x197   : > { %13335 = vst [vmem:[#allocation73_spill] sm:$0xff] %v9942_v9  ;;  %v1463_v47 = vshll.u32 %v1462_v61, 23  ;;  %v7073_v1 = vmin.u32 %v1554_v29, %v9909_v41  ;;  %vm1728_vm11 = vcmp.lt.s32.totalorder %v9916_v2, 3  ;;  %v9947_v0 = vpop.eup %7508  ;;  %vm1171_vm14 = vcmp.eq.s32.totalorder %v9773_v33, 0 }
 0x198   : > { %13336 = vst [vmem:[#allocation74_spill] sm:$0xff] %v9947_v0  ;;  %vm1174_vm4 = vcmp.eq.s32.totalorder %v9773_v33, 2  ;;  %7510 = vsinq.f32 %v1267_v24  ;;  %v1368_v38 = vsub.s32 4, %v9581_v21  ;;  %v9952_v60 = vadd.s32 %v1650_v56, %v1646_v51 }
 0x199   : > { %v1735_v62 = vsel %vm1729_vm8, %v1722_v18, 920167782  ;;  %v1710_v14 = vshrl.u32 %v13157_v11, %v1709_v22  ;;  %vm1727_vm15 = vcmp.lt.s32.totalorder %v9916_v2, 2  ;;  %v1734_v35 = vsel %vm1726_vm3, %v1713_v27, %v1716_v13 }
 0x19a   : > { %v9960_v8 = vshll.u32 %v1702_v26, 8  ;;  %v1366_v58 = vxor.u32 2147483648, %v9931_v50  ;;  %v1736_v24 = vsel %vm1728_vm11, %v1719_v17, %v1735_v62  ;;  %v1738_v56 = vsel %vm1726_vm3, %v1716_v13, %v1719_v17 }
 0x19b   : > { %v1739_v6 = vsel %vm1729_vm8, %v1725_v43, 1326507024  ;;  %v1460_v15 = vor.u32 %v1459_v3, %v1458_v39  ;;  %v1464_v22 = vor.u32 4788187, %v1463_v47  ;;  %v1556_v54 = vclz %v7073_v1 }
 0x19c   : > { %v1731_v23 = vsel %vm1729_vm8, %v1719_v17, 2102212464  ;;  %vm12961_vm7 = vweird.f32 %v13311_v42  ;;  %vm1170_vm13 = vcmp.lt.s32.totalorder %v9773_v33, 2  ;;  %v1652_v26 = vadd.s32 536870912, %v9952_v60 }
 0x19d   : > { %v1737_v19 = vsel %vm1727_vm15, %v1734_v35, %v1736_v24  ;;  %v1740_v16 = vsel %vm1728_vm11, %v1722_v18, %v1739_v6  ;;  %v1800_v43 = vand.u32 2139095040, %v13337_v40  ;;  %v1730_v61 = vsel %vm1726_vm3, %v1710_v14, %v1713_v27 }
 0x19e   : > { %v1741_v29 = vsel %vm1727_vm15, %v1738_v56, %v1740_v16  ;;  %v9984_v10 = vmul.u32.u64.low %v9960_v8, %v1737_v19  ;;  %v9985_v49 = vmul.u32.u64.high %v9960_v8, %v1737_v19, %v9984_v10  ;;  %v1732_v39 = vsel %vm1728_vm11, %v1716_v13, %v1731_v23 }
 0x19f   : > { %v9991_v51 = vmul.u32.u64.low %v9960_v8, %v1741_v29  ;;  %v9992_v17 = vmul.u32.u64.high %v9960_v8, %v1741_v29, %v9991_v51  ;;  %v1801_v18 = vshrl.u32 %v1800_v43, 23  ;;  %v12955_v3 = vxor.u32 2147483648, %v9942_v9 }
 0x1a0   : > { %v12954_v27 = vxor.u32 2147483648, %v9938_v4  ;;  %v9997_v47 = vand.u32 3, %v9896_v53  ;;  %v7074_v1 = vadd.s32 4294967294, %v1556_v54  ;;  %v1074_v62 = vsel %vm1067_vm12, %v9892_v30, %v9880_v44 }
 0x1a1   : > { %v13338_v13 = vand.u32 2147483647, %v13290_v48  ;;  %v1369_v35 = vsel %vm1284_vm9, %v1368_v38, %v9581_v21  ;;  %v7084_v24 = vadd.s32 4294967169, %v1801_v18  ;;  %v1465_v56 = vand.u32 2147483647, %v1464_v22 }
 0x1a2   : > { %v1467_v6 = vcvt.s32.f32 %v1460_v15  ;;  %v1733_v54 = vsel %vm1727_vm15, %v1730_v61, %v1732_v39  ;;  %v1752_v23 = vadd.s32 1, %v9985_v49  ;;  %v10015_v57 = vpop.eup %7510  ;;  %v1367_v44 = vsel %vm1284_vm9, %v1366_v58, %v9931_v50 }
 0x1a3   : > { %vm10005_vm10 = vcmp.le.f32.partialorder %v13338_v13, 0.7853982  ;;  %13341 = vst [vmem:[#allocation75_spill] sm:$0xff] %v10015_v57  ;;  %v10020_v30 = vshrl.u32 %v1652_v26, 30  ;;  %vm1751_vm12 = vc.u32 %v9992_v17, %v9984_v10  ;;  %v1807_v21 = vadd.s32 1, %v7084_v24 }
 0x1a4   : > { %v1173_v2 = vsel %vm1171_vm14, %v9938_v4, %v12955_v3  ;;  %v1176_v38 = vsel %vm1174_vm4, %v12954_v27, %v9942_v9  ;;  %vm1277_vm3 = vcmp.eq.s32.totalorder %v9997_v47, 2  ;;  %vm7075_vm8 = vcmp.lt.s32.totalorder %v7074_v1, 0 }
 0x1a5   : > { %v12953_v50 = vxor.u32 2147483648, %v9947_v0  ;;  %v10038_v58 = vsel %vm10005_vm10, 0, %v1369_v35  ;;  %v1749_v15 = vmul.u32 %v9960_v8, %v1733_v54  ;;  %vm1808_vm9 = vcmp.gt.s32.totalorder %v1807_v21, 0  ;;  %v13344_v54 = vld [vmem:[#allocation36_spill] sm:$0xff] }
 0x1a6   : > { %13342 = vst [vmem:[#allocation76_spill] sm:$0xff] %v10038_v58  ;;  %v1370_v22 = vsel %vm10005_vm10, %v13290_v48, %v1367_v44  ;;  %v10044_v26 = vmul.f32 %v1467_v6, %v1465_v56  ;;  %v1753_v19 = vsel %vm1751_vm12, %v1752_v23, %v9985_v49  ;;  %v1809_v16 = vsel %vm1808_vm9, %v1807_v21, 0 }
 0x1a7   : > { %v10047_v43 = vsel %vm7075_vm8, 0, %v7074_v1  ;;  %v1654_v61 = vshll.u32 %v10020_v30, 30  ;;  %v12956_v29 = vand.u32 2147483647, %v13337_v40  ;;  %v1811_v39 = vand.u32 31, %v1809_v16 }
 0x1a8   : > { %v10053_v8 = vsel %vm12961_vm7, nan, %v1074_v62  ;;  %v10057_v51 = vsel %vm1170_vm13, %v1173_v2, %v1176_v38  ;;  %v10061_v49 = vand.u32 3, %v10038_v58  ;;  %v10068_v1 = vsel %vm1277_vm3, %v12953_v50, %v10015_v57 }
 0x1a9   : > { %13343 = vst [vmem:[#allocation77_spill] sm:$0xff] %v10053_v8  ;;  %7512 = vcosq.f32 %v1370_v22  ;;  %v10070_v13 = vadd.s32 %v1753_v19, %v1749_v15  ;;  %v1812_v62 = vsub.s32 32, %v1811_v39  ;;  %v1471_v33 = vsub.s32 4, %v9711_v52 }
 0x1aa   : > { %7514 = vsinq.f32 %v1370_v22  ;;  %v1544_v14 = vadd.s32 %v9716_v46, %v9724_v45  ;;  %v1564_v35 = vsub.s32 4294967266, %v10047_v43  ;;  %v10078_v56 = vsub.s32 %v9952_v60, %v1654_v61 }
 0x1ab   : > { %v1804_v6 = vand.u32 8388607, %v12956_v29  ;;  %v1903_v23 = vand.u32 2139095040, %v13344_v54  ;;  %v1814_v44 = vshll.u32 %v13157_v11, %v1811_v39  ;;  %v1815_v21 = vshrl.u32 %v13203_v63, %v1812_v62 }
 0x1ac   : > { %v1817_v2 = vshll.u32 %v13203_v63, %v1811_v39  ;;  %v1818_v46 = vshrl.u32 %v13204_v25, %v1812_v62  ;;  %vm1387_vm11 = vcmp.lt.s32.totalorder %v13293_v36, 0  ;;  %v1755_v45 = vadd.s32 536870912, %v10070_v13 }
 0x1ad   : > { %v1810_v38 = vshrl.u32 %v1809_v16, 5  ;;  %v1820_v60 = vshll.u32 %v13204_v25, %v1811_v39  ;;  %v1821_v15 = vshrl.u32 %v13200_v7, %v1812_v62  ;;  %v1560_v22 = vsub.s32 32, %v10047_v43 }
 0x1ae   : > { %v1561_v19 = vshll.u32 %v9909_v41, %v10047_v43  ;;  %v1565_v61 = vadd.s32 127, %v1564_v35  ;;  %v1823_v50 = vshll.u32 %v13200_v7, %v1811_v39  ;;  %v1657_v27 = vsub.s32 0, %v10078_v56 }
 0x1af   : > { %v1805_v3 = vor.u32 8388608, %v1804_v6  ;;  %v1824_v29 = vshrl.u32 %v13201_v34, %v1812_v62  ;;  %v1826_v18 = vshll.u32 %v13201_v34, %v1811_v39  ;;  %vm1274_vm14 = vcmp.eq.s32.totalorder %v9997_v47, 0 }
 0x1b0   : > { %v1816_v16 = vor.u32 %v1815_v21, %v1814_v44  ;;  %v1819_v24 = vor.u32 %v1818_v46, %v1817_v2  ;;  %v1827_v8 = vshrl.u32 %v13202_v37, %v1812_v62  ;;  %v1904_v4 = vshrl.u32 %v1903_v23, 23 }
 0x1b1   : > { %vm1377_vm4 = vcmp.eq.s32.totalorder %v10061_v49, 0  ;;  %vm1380_vm15 = vcmp.eq.s32.totalorder %v10061_v49, 2  ;;  %v10102_v41 = vshrl.u32 %v1755_v45, 30  ;;  %v1813_v43 = vshrl.u32 %v13157_v11, %v1812_v62 }
 0x1b2   : > { %v1822_v35 = vor.u32 %v1821_v15, %v1820_v60  ;;  %vm1829_vm13 = vcmp.lt.s32.totalorder %v1810_v38, 1  ;;  %v13345_v6 = vand.u32 2147483647, %v13293_v36  ;;  %v1562_v44 = vshrl.u32 %v1544_v14, %v1560_v22 }
 0x1b3   : > { %v1825_v21 = vor.u32 %v1824_v29, %v1823_v50  ;;  %v1828_v2 = vor.u32 %v1827_v8, %v1826_v18  ;;  %vm1831_vm12 = vcmp.lt.s32.totalorder %v1810_v38, 3  ;;  %v10111_v23 = vpop.eup %7512  ;;  %v1566_v46 = vshll.u32 %v1565_v61, 23 }
 0x1b4   : > { %vm10107_vm10 = vcmp.le.f32.partialorder %v13345_v6, 0.7853982  ;;  %13348 = vst [vmem:[#allocation78_spill] sm:$0xff] %v10111_v23  ;;  %vm1830_vm3 = vcmp.lt.s32.totalorder %v1810_v38, 2  ;;  %vm1832_vm8 = vcmp.lt.s32.totalorder %v1810_v38, 4  ;;  %v1845_v45 = vshll.u32 %v1805_v3, 8  ;;  %v10113_v9 = vpop.eup %7514 }
 0x1b5   : > { %13349 = vst [vmem:[#allocation79_spill] sm:$0xff] %v10113_v9  ;;  %vm12984_vm9 = vweird.f32 %v13318_v20  ;;  %vm1273_vm7 = vcmp.lt.s32.totalorder %v9997_v47, 2  ;;  %v7077_v62 = vmin.u32 %v1657_v27, %v10078_v56  ;;  %v1834_v60 = vsel %vm1832_vm8, %v1822_v35, 2102212464 }
 0x1b6   : > { %v1837_v50 = vsel %vm1829_vm13, %v1816_v16, %v1819_v24  ;;  %v1838_v29 = vsel %vm1832_vm8, %v1825_v21, 920167782  ;;  %vm1376_vm2 = vcmp.lt.s32.totalorder %v10061_v49, 2  ;;  %v1757_v8 = vshll.u32 %v10102_v41, 30 }
 0x1b7   : > { %v1833_v3 = vsel %vm1829_vm13, %v1813_v43, %v1816_v16  ;;  %v1839_v18 = vsel %vm1831_vm12, %v1822_v35, %v1838_v29  ;;  %v7088_v14 = vadd.s32 4294967169, %v1904_v4  ;;  %v1835_v15 = vsel %vm1831_vm12, %v1819_v24, %v1834_v60 }
 0x1b8   : > { %v1840_v22 = vsel %vm1830_vm3, %v1837_v50, %v1839_v18  ;;  %v1841_v27 = vsel %vm1829_vm13, %v1819_v24, %v1822_v35  ;;  %v1842_v61 = vsel %vm1832_vm8, %v1828_v2, 1326507024  ;;  %v1472_v6 = vsel %vm1387_vm11, %v1471_v33, %v9711_v52 }
 0x1b9   : > { %v1843_v42 = vsel %vm1831_vm12, %v1825_v21, %v1842_v61  ;;  %v10133_v58 = vmul.u32.u64.low %v1845_v45, %v1840_v22  ;;  %v10134_v53 = vmul.u32.u64.high %v1845_v45, %v1840_v22, %v10133_v58  ;;  %v12967_v4 = vxor.u32 2147483648, %v10113_v9 }
 0x1ba   : > { %v12966_v16 = vxor.u32 2147483648, %v10111_v23  ;;  %v13350_v43 = vxor.u32 2147483648, %v10044_v26  ;;  %v1844_v35 = vsel %vm1830_vm3, %v1841_v27, %v1843_v42  ;;  %v1563_v2 = vor.u32 %v1562_v44, %v1561_v19 }
 0x1bb   : > { %v10146_v52 = vsub.s32 %v10070_v13, %v1757_v8  ;;  %v1836_v33 = vsel %vm1830_vm3, %v1833_v3, %v1835_v15  ;;  %v1910_v21 = vadd.s32 1, %v7088_v14  ;;  %v1567_v60 = vor.u32 4788187, %v1566_v46 }
 0x1bc   : > { %v1470_v24 = vsel %vm1387_vm11, %v13350_v43, %v10044_v26  ;;  %v1659_v50 = vclz %v7077_v62  ;;  %v10149_v29 = vmul.u32.u64.low %v1845_v45, %v1844_v35  ;;  %v10150_v18 = vmul.u32.u64.high %v1845_v45, %v1844_v35, %v10149_v29 }
 0x1bd   : > { %v13351_v22 = vxor.u32 2147483648, %v10015_v57  ;;  %v10159_v42 = vsel %vm10107_vm10, 0, %v1472_v6  ;;  %v1855_v13 = vadd.s32 1, %v10134_v53  ;;  %vm1911_vm11 = vcmp.gt.s32.totalorder %v1910_v21, 0 }
 0x1be   : > { %13352 = vst [vmem:[#allocation80_spill] sm:$0xff] %v10159_v42  ;;  %v1379_v38 = vsel %vm1377_vm4, %v10111_v23, %v12967_v4  ;;  %v1382_v19 = vsel %vm1380_vm15, %v12966_v16, %v10113_v9  ;;  %v1852_v44 = vmul.u32 %v1845_v45, %v1836_v33  ;;  %v1912_v46 = vsel %vm1911_vm11, %v1910_v21, 0 }
 0x1bf   : > { %v1276_v26 = vsel %vm1274_vm14, %v9947_v0, %v13351_v22  ;;  %v1473_v62 = vsel %vm10107_vm10, %v13293_v36, %v1470_v24  ;;  %v1570_v8 = vcvt.s32.f32 %v1563_v2  ;;  %v1760_v3 = vsub.s32 0, %v10146_v52 }
 0x1c0   : > { %v1914_v14 = vand.u32 31, %v1912_v46  ;;  %v1568_v15 = vand.u32 2147483647, %v1567_v60  ;;  %v7078_v27 = vadd.s32 4294967294, %v1659_v50  ;;  %vm1854_vm14 = vc.u32 %v10150_v18, %v10133_v58 }
 0x1c1   : > { %v12968_v61 = vand.u32 2147483647, %v13344_v54  ;;  %v10182_v45 = vsel %vm12984_vm9, nan, %v10057_v51  ;;  %v10187_v39 = vsel %vm1273_vm7, %v1276_v26, %v10068_v1  ;;  %v10190_v6 = vand.u32 3, %v10159_v42 }
 0x1c2   : > { %13353 = vst [vmem:[#allocation81_spill] sm:$0xff] %v10182_v45  ;;  %v1856_v43 = vsel %vm1854_vm14, %v1855_v13, %v10134_v53  ;;  %v10195_v24 = vsel %vm1376_vm2, %v1379_v38, %v1382_v19  ;;  %7516 = vcosq.f32 %v1473_v62  ;;  %v1915_v2 = vsub.s32 32, %v1914_v14 }
 0x1c3   : > { %v1857_v35 = vadd.s32 %v1856_v43, %v1852_v44  ;;  %7518 = vsinq.f32 %v1473_v62  ;;  %v1647_v47 = vadd.s32 %v9863_v5, %v9873_v55  ;;  %v7081_v1 = vmin.u32 %v1760_v3, %v10146_v52  ;;  %v13354_v44 = vld [vmem:[#allocation37_spill] sm:$0xff] }
 0x1c4   : > { %v10201_v33 = vmul.f32 %v1570_v8, %v1568_v15  ;;  %vm7079_vm7 = vcmp.lt.s32.totalorder %v7078_v27, 0  ;;  %v1907_v53 = vand.u32 8388607, %v12968_v61  ;;  %v1917_v49 = vshll.u32 %v13157_v11, %v1914_v14  ;;  %v13355_v8 = vld [vmem:[#allocation13_spill] sm:$0xff] }
 0x1c5   : > { %v1858_v21 = vadd.s32 536870912, %v1857_v35  ;;  %v1918_v60 = vshrl.u32 %v13203_v63, %v1915_v2  ;;  %v1920_v50 = vshll.u32 %v13203_v63, %v1914_v14  ;;  %v1921_v29 = vshrl.u32 %v13204_v25, %v1915_v2 }
 0x1c6   : > { %v1913_v22 = vshrl.u32 %v1912_v46, 5  ;;  %v1923_v5 = vshll.u32 %v13204_v25, %v1914_v14  ;;  %v1924_v55 = vshrl.u32 %v13200_v7, %v1915_v2  ;;  %v1926_v26 = vshll.u32 %v13200_v7, %v1914_v14 }
 0x1c7   : > { %v10212_v13 = vsel %vm7079_vm7, 0, %v7078_v27  ;;  %v1762_v38 = vclz %v7081_v1  ;;  %v1927_v19 = vshrl.u32 %v13201_v34, %v1915_v2  ;;  %v2006_v62 = vand.u32 2139095040, %v13354_v44 }
 0x1c8   : > { %vm12983_vm2 = vweird.f32 %v13273_v28  ;;  %vm1490_vm4 = vcmp.lt.s32.totalorder %v13355_v8, 0  ;;  %v10218_v3 = vshrl.u32 %v1858_v21, 30  ;;  %v1908_v46 = vor.u32 8388608, %v1907_v53 }
 0x1c9   : > { %v1929_v15 = vshll.u32 %v13201_v34, %v1914_v14  ;;  %v1930_v43 = vshrl.u32 %v13202_v37, %v1915_v2  ;;  %vm12982_vm15 = vweird.f32 %v13290_v48  ;;  %v1572_v27 = vxor.u32 2147483648, %v10201_v33 }
 0x1ca   : > { %v1919_v1 = vor.u32 %v1918_v60, %v1917_v49  ;;  %v1922_v16 = vor.u32 %v1921_v29, %v1920_v50  ;;  %v1928_v4 = vor.u32 %v1927_v19, %v1926_v26  ;;  %v1667_v61 = vsub.s32 4294967266, %v10212_v13 }
 0x1cb   : > { %v1916_v51 = vshrl.u32 %v13157_v11, %v1915_v2  ;;  %v1925_v45 = vor.u32 %v1924_v55, %v1923_v5  ;;  %vm1932_vm13 = vcmp.lt.s32.totalorder %v1913_v22, 1  ;;  %v13356_v21 = vand.u32 2147483647, %v13355_v8 }
 0x1cc   : > { %v1663_v14 = vsub.s32 32, %v10212_v13  ;;  %v1931_v23 = vor.u32 %v1930_v43, %v1929_v15  ;;  %vm1935_vm12 = vcmp.lt.s32.totalorder %v1913_v22, 4  ;;  %v2007_v9 = vshrl.u32 %v2006_v62, 23  ;;  %v10233_v49 = vpop.eup %7516 }
 0x1cd   : > { %vm10228_vm10 = vcmp.le.f32.partialorder %v13356_v21, 0.7853982  ;;  %13359 = vst [vmem:[#allocation37_spill] sm:$0xff] %v10233_v49  ;;  %v7082_v60 = vadd.s32 4294967294, %v1762_v38  ;;  %v1860_v50 = vshll.u32 %v10218_v3, 30  ;;  %vm1934_vm3 = vcmp.lt.s32.totalorder %v1913_v22, 3  ;;  %v10236_v29 = vpop.eup %7518 }
 0x1ce   : > { %v1948_v2 = vshll.u32 %v1908_v46, 8  ;;  %13360 = vst [vmem:[#allocation82_spill] sm:$0xff] %v10236_v29  ;;  %vm1933_vm8 = vcmp.lt.s32.totalorder %v1913_v22, 2  ;;  %v1937_v5 = vsel %vm1935_vm12, %v1925_v45, 2102212464  ;;  %v1940_v55 = vsel %vm1932_vm13, %v1919_v1, %v1922_v16 }
 0x1cf   : > { %v1941_v26 = vsel %vm1935_vm12, %v1928_v4, 920167782  ;;  %v1664_v19 = vshll.u32 %v10078_v56, %v10212_v13  ;;  %v1668_v62 = vadd.s32 127, %v1667_v61  ;;  %v1936_v15 = vsel %vm1932_vm13, %v1916_v51, %v1919_v1 }
 0x1d0   : > { %v1944_v38 = vsel %vm1932_vm13, %v1922_v16, %v1925_v45  ;;  %v1938_v43 = vsel %vm1934_vm3, %v1922_v16, %v1937_v5  ;;  %v1942_v46 = vsel %vm1934_vm3, %v1925_v45, %v1941_v26  ;;  %v1945_v21 = vsel %vm1935_vm12, %v1931_v23, 1326507024 }
 0x1d1   : > { %v7092_v42 = vadd.s32 4294967169, %v2007_v9  ;;  %v1665_v20 = vshrl.u32 %v1647_v47, %v1663_v14  ;;  %v10248_v0 = vsub.s32 %v1857_v35, %v1860_v50  ;;  %v1943_v57 = vsel %vm1933_vm8, %v1940_v55, %v1942_v46 }
 0x1d2   : > { %v1946_v12 = vsel %vm1934_vm3, %v1928_v4, %v1945_v21  ;;  %vm7083_vm11 = vcmp.lt.s32.totalorder %v7082_v60, 0  ;;  %v10253_v61 = vmul.u32.u64.low %v1948_v2, %v1943_v57  ;;  %v10254_v51 = vmul.u32.u64.high %v1948_v2, %v1943_v57, %v10253_v61 }
 0x1d3   : > { %v1947_v56 = vsel %vm1933_vm8, %v1944_v38, %v1946_v12  ;;  %v1669_v16 = vshll.u32 %v1668_v62, 23  ;;  %v1939_v45 = vsel %vm1933_vm8, %v1936_v15, %v1938_v43  ;;  %v10264_v9 = vsel %vm12983_vm2, nan, %v10187_v39 }
 0x1d4   : > { %v10258_v13 = vmul.u32.u64.low %v1948_v2, %v1947_v56  ;;  %v10259_v23 = vmul.u32.u64.high %v1948_v2, %v1947_v56, %v10258_v13  ;;  %13361 = vst [vmem:[#allocation83_spill] sm:$0xff] %v10264_v9  ;;  %v1573_v4 = vsel %vm1490_vm4, %v1572_v27, %v10201_v33  ;;  %v13362_v12 = vsub.s32 4, %v9858_v32 }
 0x1d5   : > { %v2013_v35 = vadd.s32 1, %v7092_v42  ;;  %v10277_v47 = vsel %vm12982_vm15, nan, %v10195_v24  ;;  %vm1483_vm14 = vcmp.eq.s32.totalorder %v10190_v6, 2  ;;  %v10280_v39 = vsel %vm7083_vm11, 0, %v7082_v60 }
 0x1d6   : > { %v1575_v57 = vsel %vm1490_vm4, %v13362_v12, %v9858_v32  ;;  %13363 = vst [vmem:[#allocation84_spill] sm:$0xff] %v10277_v47  ;;  %v1863_v22 = vsub.s32 0, %v10248_v0  ;;  %v12980_v33 = vxor.u32 2147483648, %v10233_v49  ;;  %v1955_v27 = vmul.u32 %v1948_v2, %v1939_v45 }
 0x1d7   : > { %v1958_v1 = vadd.s32 1, %v10254_v51  ;;  %vm2014_vm7 = vcmp.gt.s32.totalorder %v2013_v35, 0  ;;  %v1576_v32 = vsel %vm10228_vm10, %v13355_v8, %v1573_v4  ;;  %v10290_v42 = vsel %vm10228_vm10, 0, %v1575_v57 }
 0x1d8   : > { %v1666_v24 = vor.u32 %v1665_v20, %v1664_v19  ;;  %v1670_v14 = vor.u32 4788187, %v1669_v16  ;;  %v10293_v60 = vand.u32 3, %v10290_v42  ;;  %v1770_v50 = vsub.s32 4294967266, %v10280_v39 }
 0x1d9   : > { %vm1957_vm4 = vc.u32 %v10259_v23, %v10253_v61  ;;  %v2015_v2 = vsel %vm2014_vm7, %v2013_v35, 0  ;;  %v7085_v55 = vmin.u32 %v1863_v22, %v10248_v0  ;;  %v12981_v53 = vand.u32 2147483647, %v13354_v44 }
 0x1da   : > { %v1959_v26 = vsel %vm1957_vm4, %v1958_v1, %v10254_v51  ;;  %v10307_v20 = vsel %vm1483_vm14, %v12980_v33, %v10236_v29  ;;  %7520 = vcosq.f32 %v1576_v32  ;;  %v2017_v62 = vand.u32 31, %v2015_v2 }
 0x1db   : > { %v1960_v19 = vadd.s32 %v1959_v26, %v1955_v27  ;;  %7522 = vsinq.f32 %v1576_v32  ;;  %v1671_v15 = vand.u32 2147483647, %v1670_v14  ;;  %v1673_v38 = vcvt.s32.f32 %v1666_v24 }
 0x1dc   : > { %v1750_v43 = vadd.s32 %v9984_v10, %v9992_v17  ;;  %v1766_v46 = vsub.s32 32, %v10280_v39  ;;  %v1771_v21 = vadd.s32 127, %v1770_v50  ;;  %v2018_v51 = vsub.s32 32, %v2017_v62 }
 0x1dd   : > { %v1961_v56 = vadd.s32 536870912, %v1960_v19  ;;  %v1865_v16 = vclz %v7085_v55  ;;  %v2010_v45 = vand.u32 8388607, %v12981_v53  ;;  %v10314_v13 = vshrl.u32 %v2015_v2, 5 }
 0x1de   : > { %v2020_v4 = vshll.u32 %v13157_v11, %v2017_v62  ;;  %v2021_v57 = vshrl.u32 %v13203_v63, %v2018_v51  ;;  %v2023_v35 = vshll.u32 %v13203_v63, %v2017_v62  ;;  %v2024_v10 = vshrl.u32 %v13204_v25, %v2018_v51 }
 0x1df   : > { %v10317_v12 = vshrl.u32 %v1961_v56, 30  ;;  %v2026_v17 = vshll.u32 %v13204_v25, %v2017_v62  ;;  %v2027_v22 = vshrl.u32 %v13200_v7, %v2018_v51  ;;  %v2029_v27 = vshll.u32 %v13200_v7, %v2017_v62 }
 0x1e0   : > { %v2030_v1 = vshrl.u32 %v13201_v34, %v2018_v51  ;;  %v1674_v32 = vmul.f32 %v1673_v38, %v1671_v15  ;;  %v1767_v24 = vshll.u32 %v10146_v52, %v10280_v39  ;;  %v1768_v14 = vshrl.u32 %v1750_v43, %v1766_v46  ;;  %v13364_v15 = vld [vmem:[#allocation38_spill] sm:$0xff] }
 0x1e1   : > { %v1963_v50 = vshll.u32 %v10317_v12, 30  ;;  %vm1480_vm13 = vcmp.eq.s32.totalorder %v10190_v6, 0  ;;  %v1772_v2 = vshll.u32 %v1771_v21, 23  ;;  %v7086_v55 = vadd.s32 4294967294, %v1865_v16 }
 0x1e2   : > { %v2011_v26 = vor.u32 8388608, %v2010_v45  ;;  %v2032_v56 = vshll.u32 %v13201_v34, %v2017_v62  ;;  %vm1593_vm10 = vcmp.lt.s32.totalorder %v13317_v59, 0  ;;  %v2022_v33 = vor.u32 %v2021_v57, %v2020_v4 }
 0x1e3   : > { %v2025_v53 = vor.u32 %v2024_v10, %v2023_v35  ;;  %v2033_v5 = vshrl.u32 %v13202_v37, %v2018_v51  ;;  %v2109_v38 = vand.u32 2139095040, %v13364_v15  ;;  %v10334_v47 = vsub.s32 %v1960_v19, %v1963_v50 }
 0x1e4   : > { %v2028_v52 = vor.u32 %v2027_v22, %v2026_v17  ;;  %v2031_v39 = vor.u32 %v2030_v1, %v2029_v27  ;;  %vm2035_vm12 = vcmp.lt.s32.totalorder %v10314_v13, 1  ;;  %v10337_v43 = vpop.eup %7520  ;;  %v1677_v46 = vsub.s32 4, %v10020_v30 }
 0x1e5   : > { %13365 = vst [vmem:[#allocation85_spill] sm:$0xff] %v10337_v43  ;;  %v1769_v21 = vor.u32 %v1768_v14, %v1767_v24  ;;  %v2019_v62 = vshrl.u32 %v13157_v11, %v2018_v51  ;;  %vm2038_vm3 = vcmp.lt.s32.totalorder %v10314_v13, 4  ;;  %v10342_v16 = vpop.eup %7522  ;;  %v13367_v45 = vand.u32 2147483647, %v13317_v59 }
 0x1e6   : > { %13366 = vst [vmem:[#allocation86_spill] sm:$0xff] %v10342_v16  ;;  %v1773_v4 = vor.u32 4788187, %v1772_v2  ;;  %v2034_v57 = vor.u32 %v2033_v5, %v2032_v56  ;;  %vm2037_vm11 = vcmp.lt.s32.totalorder %v10314_v13, 3  ;;  %v2040_v35 = vsel %vm2038_vm3, %v2028_v52, 2102212464 }
 0x1e7   : > { %vm10346_vm8 = vcmp.le.f32.partialorder %v13367_v45, 0.7853982  ;;  %v1675_v10 = vxor.u32 2147483648, %v1674_v32  ;;  %vm2036_vm14 = vcmp.lt.s32.totalorder %v10314_v13, 2  ;;  %v2043_v51 = vsel %vm2035_vm12, %v2022_v33, %v2025_v53 }
 0x1e8   : > { %v2051_v17 = vshll.u32 %v2011_v26, 8  ;;  %vm7087_vm7 = vcmp.lt.s32.totalorder %v7086_v55, 0  ;;  %v1966_v22 = vsub.s32 0, %v10334_v47  ;;  %v2044_v27 = vsel %vm2038_vm3, %v2031_v39, 920167782 }
 0x1e9   : > { %v2110_v1 = vshrl.u32 %v2109_v38, 23  ;;  %vm1479_vm4 = vcmp.lt.s32.totalorder %v10190_v6, 2  ;;  %v1776_v5 = vcvt.s32.f32 %v1769_v21  ;;  %v2039_v24 = vsel %vm2035_vm12, %v2019_v62, %v2022_v33 }
 0x1ea   : > { %v2041_v14 = vsel %vm2037_vm11, %v2025_v53, %v2040_v35  ;;  %v2045_v50 = vsel %vm2037_vm11, %v2028_v52, %v2044_v27  ;;  %vm1583_vm15 = vcmp.eq.s32.totalorder %v10293_v60, 0  ;;  %vm1586_vm2 = vcmp.eq.s32.totalorder %v10293_v60, 2 }
 0x1eb   : > { %v1774_v2 = vand.u32 2147483647, %v1773_v4  ;;  %v2046_v26 = vsel %vm2036_vm14, %v2043_v51, %v2045_v50  ;;  %v2047_v56 = vsel %vm2035_vm12, %v2025_v53, %v2028_v52  ;;  %v2048_v33 = vsel %vm2038_vm3, %v2034_v57, 1326507024 }
 0x1ec   : > { %vm1696_vm9 = vcmp.lt.s32.totalorder %v13327_v31, 0  ;;  %v1868_v38 = vsel %vm7087_vm7, 0, %v7086_v55  ;;  %v2049_v21 = vsel %vm2037_vm11, %v2031_v39, %v2048_v33  ;;  %v7089_v4 = vmin.u32 %v1966_v22, %v10334_v47 }
 0x1ed   : > { %v10378_v62 = vmul.u32.u64.low %v2051_v17, %v2046_v26  ;;  %v10379_v45 = vmul.u32.u64.high %v2051_v17, %v2046_v26, %v10378_v62  ;;  %v2042_v35 = vsel %vm2036_vm14, %v2039_v24, %v2041_v14  ;;  %v2050_v53 = vsel %vm2036_vm14, %v2047_v56, %v2049_v21 }
 0x1ee   : > { %v7096_v52 = vadd.s32 4294967169, %v2110_v1  ;;  %v13370_v57 = vxor.u32 2147483648, %v10236_v29  ;;  %v1678_v39 = vsel %vm1593_vm10, %v1677_v46, %v10020_v30  ;;  %v1676_v22 = vsel %vm1593_vm10, %v1675_v10, %v1674_v32 }
 0x1ef   : > { %v10395_v51 = vmul.u32.u64.low %v2051_v17, %v2050_v53  ;;  %v10396_v27 = vmul.u32.u64.high %v2051_v17, %v2050_v53, %v10395_v51  ;;  %v1777_v24 = vmul.f32 %v1776_v5, %v1774_v2  ;;  %v1853_v13 = vadd.s32 %v10133_v58, %v10150_v18 }
 0x1f0   : > { %v1482_v55 = vsel %vm1480_vm13, %v10233_v49, %v13370_v57  ;;  %v2116_v1 = vadd.s32 1, %v7096_v52  ;;  %v1869_v14 = vsub.s32 32, %v1868_v38  ;;  %v1873_v50 = vsub.s32 4294967266, %v1868_v38 }
 0x1f1   : > { %v2058_v26 = vmul.u32 %v2051_v17, %v2042_v35  ;;  %v2061_v56 = vadd.s32 1, %v10379_v45  ;;  %v12985_v33 = vxor.u32 2147483648, %v10337_v43  ;;  %v10406_v30 = vsel %vm10346_vm8, 0, %v1678_v39 }
 0x1f2   : > { %13371 = vst [vmem:[#allocation87_spill] sm:$0xff] %v10406_v30  ;;  %v1968_v46 = vclz %v7089_v4  ;;  %vm2117_vm13 = vcmp.gt.s32.totalorder %v2116_v1, 0  ;;  %v12986_v32 = vxor.u32 2147483648, %v10342_v16  ;;  %v1679_v58 = vsel %vm10346_vm8, %v13317_v59, %v1676_v22 }
 0x1f3   : > { %v1780_v18 = vsub.s32 4, %v10102_v41  ;;  %vm2060_vm10 = vc.u32 %v10396_v27, %v10378_v62  ;;  %v1778_v10 = vxor.u32 2147483648, %v1777_v24  ;;  %v12987_v5 = vand.u32 2147483647, %v13364_v15 }
 0x1f4   : > { %v2062_v17 = vsel %vm2060_vm10, %v2061_v56, %v10379_v45  ;;  %v2118_v2 = vsel %vm2117_vm13, %v2116_v1, 0  ;;  %v1870_v21 = vshll.u32 %v10248_v0, %v1868_v38  ;;  %v1871_v4 = vshrl.u32 %v1853_v13, %v1869_v14 }
 0x1f5   : > { %v1874_v35 = vadd.s32 127, %v1873_v50  ;;  %v2063_v53 = vadd.s32 %v2062_v17, %v2058_v26  ;;  %v10421_v19 = vsel %vm1479_vm4, %v1482_v55, %v10307_v20  ;;  %v10424_v52 = vand.u32 3, %v10406_v30  ;;  %v13372_v26 = vld [vmem:[#allocation39_spill] sm:$0xff] }
 0x1f6   : > { %v7090_v57 = vadd.s32 4294967294, %v1968_v46  ;;  %v2120_v39 = vand.u32 31, %v2118_v2  ;;  %v10431_v45 = vsel %vm1583_vm15, %v10337_v43, %v12986_v32  ;;  %v10438_v0 = vsel %vm1586_vm2, %v12985_v33, %v10342_v16 }
 0x1f7   : > { %7524 = vcosq.f32 %v1679_v58  ;;  %v2064_v6 = vadd.s32 536870912, %v2063_v53  ;;  %v10442_v20 = vsel %vm1696_vm9, %v1778_v10, %v1777_v24  ;;  %v10447_v38 = vsel %vm1696_vm9, %v1780_v18, %v10102_v41 }
 0x1f8   : > { %7526 = vsinq.f32 %v1679_v58  ;;  %v2121_v55 = vsub.s32 32, %v2120_v39  ;;  %v1872_v51 = vor.u32 %v1871_v4, %v1870_v21  ;;  %v1875_v22 = vshll.u32 %v1874_v35, 23 }
 0x1f9   : > { %v10449_v13 = vshrl.u32 %v2064_v6, 30  ;;  %v2113_v1 = vand.u32 8388607, %v12987_v5  ;;  %vm7091_vm2 = vcmp.lt.s32.totalorder %v7090_v57, 0  ;;  %v2119_v14 = vshrl.u32 %v2118_v2, 5 }
 0x1fa   : > { %v2123_v50 = vshll.u32 %v13157_v11, %v2120_v39  ;;  %v2212_v24 = vand.u32 2139095040, %v13372_v26  ;;  %v2124_v46 = vshrl.u32 %v13203_v63, %v2121_v55  ;;  %v2126_v41 = vshll.u32 %v13203_v63, %v2120_v39 }
 0x1fb   : > { %v2066_v56 = vshll.u32 %v10449_v13, 30  ;;  %v2127_v58 = vshrl.u32 %v13204_v25, %v2121_v55  ;;  %v2129_v18 = vshll.u32 %v13204_v25, %v2120_v39  ;;  %v2130_v10 = vshrl.u32 %v13200_v7, %v2121_v55 }
 0x1fc   : > { %v2132_v17 = vshll.u32 %v13200_v7, %v2120_v39  ;;  %v2133_v2 = vshrl.u32 %v13201_v34, %v2121_v55  ;;  %vm1582_vm9 = vcmp.lt.s32.totalorder %v10293_v60, 2  ;;  %v1876_v21 = vor.u32 4788187, %v1875_v22 }
 0x1fd   : > { %v10464_v4 = vsel %vm7091_vm2, 0, %v7090_v57  ;;  %v10466_v35 = vsub.s32 %v2063_v53, %v2066_v56  ;;  %v2114_v6 = vor.u32 8388608, %v2113_v1  ;;  %v2122_v33 = vshrl.u32 %v13157_v11, %v2121_v55 }
 0x1fe   : > { %v2135_v32 = vshll.u32 %v13201_v34, %v2120_v39  ;;  %v2136_v5 = vshrl.u32 %v13202_v37, %v2121_v55  ;;  %v2213_v9 = vshrl.u32 %v2212_v24, 23  ;;  %v13373_v43 = vand.u32 2147483647, %v13327_v31 }
 0x1ff   : > { %v2069_v22 = vsub.s32 0, %v10466_v35  ;;  %v2125_v57 = vor.u32 %v2124_v46, %v2123_v50  ;;  %v2128_v49 = vor.u32 %v2127_v58, %v2126_v41  ;;  %v2134_v53 = vor.u32 %v2133_v2, %v2132_v17 }
 0x200   : > { %vm10473_vm15 = vcmp.le.f32.partialorder %v13373_v43, 0.7853982  ;;  %v1879_v56 = vcvt.s32.f32 %v1872_v51  ;;  %v2131_v1 = vor.u32 %v2130_v10, %v2129_v18  ;;  %v2137_v29 = vor.u32 %v2136_v5, %v2135_v32 }
 0x201   : > { %vm2138_vm12 = vcmp.lt.s32.totalorder %v2119_v14, 1  ;;  %v10478_v48 = vpop.eup %7524  ;;  %v1877_v39 = vand.u32 2147483647, %v1876_v21  ;;  %v1976_v55 = vsub.s32 4294967266, %v10464_v4  ;;  %vm2140_vm3 = vcmp.lt.s32.totalorder %v2119_v14, 3 }
 0x202   : > { %13376 = vst [vmem:[#allocation88_spill] sm:$0xff] %v10478_v48  ;;  %v2154_v24 = vshll.u32 %v2114_v6, 8  ;;  %v10481_v43 = vpop.eup %7526  ;;  %vm13016_vm8 = vweird.f32 %v13293_v36  ;;  %vm13012_vm11 = vweird.f32 %v13355_v8  ;;  %v7093_v50 = vmin.u32 %v2069_v22, %v10466_v35 }
 0x203   : > { %13377 = vst [vmem:[#allocation89_spill] sm:$0xff] %v10481_v43  ;;  %vm2139_vm14 = vcmp.lt.s32.totalorder %v2119_v14, 2  ;;  %vm2141_vm7 = vcmp.lt.s32.totalorder %v2119_v14, 4  ;;  %v7100_v51 = vadd.s32 4294967169, %v2213_v9  ;;  %vm1686_vm4 = vcmp.eq.s32.totalorder %v10424_v52, 0 }
 0x204   : > { %vm1689_vm13 = vcmp.eq.s32.totalorder %v10424_v52, 2  ;;  %v2142_v32 = vsel %vm2138_vm12, %v2122_v33, %v2125_v57  ;;  %v2143_v5 = vsel %vm2141_vm7, %v2131_v1, 2102212464  ;;  %v2146_v46 = vsel %vm2138_vm12, %v2125_v57, %v2128_v49 }
 0x205   : > { %v2147_v41 = vsel %vm2141_vm7, %v2134_v53, 920167782  ;;  %vm1799_vm10 = vcmp.lt.s32.totalorder %v13337_v40, 0  ;;  %v2144_v58 = vsel %vm2140_vm3, %v2128_v49, %v2143_v5  ;;  %v2150_v10 = vsel %vm2138_vm12, %v2128_v49, %v2131_v1 }
 0x206   : > { %v2148_v18 = vsel %vm2140_vm3, %v2131_v1, %v2147_v41  ;;  %v2151_v17 = vsel %vm2141_vm7, %v2137_v29, 1326507024  ;;  %v1880_v9 = vmul.f32 %v1879_v56, %v1877_v39  ;;  %v1956_v2 = vadd.s32 %v10253_v61, %v10259_v23 }
 0x207   : > { %v2149_v21 = vsel %vm2139_vm14, %v2146_v46, %v2148_v18  ;;  %v2152_v33 = vsel %vm2140_vm3, %v2134_v53, %v2151_v17  ;;  %v2145_v6 = vsel %vm2139_vm14, %v2142_v32, %v2144_v58  ;;  %v1972_v5 = vsub.s32 32, %v10464_v4 }
 0x208   : > { %v2153_v22 = vsel %vm2139_vm14, %v2150_v10, %v2152_v33  ;;  %v10500_v57 = vmul.u32.u64.low %v2154_v24, %v2149_v21  ;;  %v10501_v30 = vmul.u32.u64.high %v2154_v24, %v2149_v21, %v10500_v57  ;;  %v2219_v56 = vadd.s32 1, %v7100_v51 }
 0x209   : > { %v10505_v49 = vmul.u32.u64.low %v2154_v24, %v2153_v22  ;;  %v10506_v29 = vmul.u32.u64.high %v2154_v24, %v2153_v22, %v10505_v49  ;;  %v1589_v61 = vsel %vm1582_vm9, %v10431_v45, %v10438_v0  ;;  %v10515_v23 = vsel %vm10473_vm15, 0, %v10447_v38 }
 0x20a   : > { %13378 = vst [vmem:[#allocation90_spill] sm:$0xff] %v10515_v23  ;;  %v13379_v14 = vand.u32 2147483647, %v13337_v40  ;;  %v1977_v1 = vadd.s32 127, %v1976_v55  ;;  %v2071_v39 = vclz %v7093_v50  ;;  %v12999_v51 = vxor.u32 2147483648, %v10481_v43 }
 0x20b   : > { %v12998_v32 = vxor.u32 2147483648, %v10478_v48  ;;  %v2161_v46 = vmul.u32 %v2154_v24, %v2145_v6  ;;  %vm2220_vm12 = vcmp.gt.s32.totalorder %v2219_v56, 0  ;;  %v1782_v60 = vsel %vm10473_vm15, %v13327_v31, %v10442_v20 }
 0x20c   : > { %vm10519_vm2 = vcmp.le.f32.partialorder %v13379_v14, 0.7853982  ;;  %v1881_v45 = vxor.u32 2147483648, %v1880_v9  ;;  %v2164_v0 = vadd.s32 1, %v10501_v30  ;;  %v2221_v38 = vsel %vm2220_vm12, %v2219_v56, 0 }
 0x20d   : > { %v1973_v41 = vshll.u32 %v10334_v47, %v10464_v4  ;;  %v1974_v55 = vshrl.u32 %v1956_v2, %v1972_v5  ;;  %vm2163_vm9 = vc.u32 %v10506_v29, %v10500_v57  ;;  %v13000_v50 = vand.u32 2147483647, %v13372_v26 }
 0x20e   : > { %v1978_v24 = vshll.u32 %v1977_v1, 23  ;;  %v7094_v58 = vadd.s32 4294967294, %v2071_v39  ;;  %v2165_v18 = vsel %vm2163_vm9, %v2164_v0, %v10501_v30  ;;  %v2223_v10 = vand.u32 31, %v2221_v38 }
 0x20f   : > { %v10539_v16 = vsel %vm13016_vm8, nan, %v10421_v19  ;;  %v10543_v20 = vsel %vm13012_vm11, nan, %v1589_v61  ;;  %v10546_v47 = vand.u32 3, %v10515_v23  ;;  %v2166_v4 = vadd.s32 %v2165_v18, %v2161_v46 }
 0x210   : > { %13382 = vst [vmem:[#allocation91_spill] sm:$0xff] %v10539_v16  ;;  %13383 = vst [vmem:[#allocation92_spill] sm:$0xff] %v10543_v20  ;;  %v10553_v30 = vsel %vm1686_vm4, %v10478_v48, %v12999_v51  ;;  %v10560_v19 = vsel %vm1689_vm13, %v12998_v32, %v10481_v43  ;;  %7528 = vcosq.f32 %v1782_v60  ;;  %v2224_v17 = vsub.s32 32, %v2223_v10 }
 0x211   : > { %7530 = vsinq.f32 %v1782_v60  ;;  %v1882_v2 = vsel %vm1799_vm10, %v1881_v45, %v1880_v9  ;;  %v2167_v21 = vadd.s32 536870912, %v2166_v4  ;;  %v2216_v33 = vand.u32 8388607, %v13000_v50 }
 0x212   : > { %v1975_v6 = vor.u32 %v1974_v55, %v1973_v41  ;;  %v1979_v22 = vor.u32 4788187, %v1978_v24  ;;  %vm7095_vm15 = vcmp.lt.s32.totalorder %v7094_v58, 0  ;;  %v2226_v5 = vshll.u32 %v13157_v11, %v2223_v10 }
 0x213   : > { %v10567_v49 = vshrl.u32 %v2167_v21, 30  ;;  %v2227_v56 = vshrl.u32 %v13203_v63, %v2224_v17  ;;  %v2229_v61 = vshll.u32 %v13203_v63, %v2223_v10  ;;  %v2230_v14 = vshrl.u32 %v13204_v25, %v2224_v17 }
 0x214   : > { %v2222_v1 = vshrl.u32 %v2221_v38, 5  ;;  %v2232_v9 = vshll.u32 %v13204_v25, %v2223_v10  ;;  %v2233_v39 = vshrl.u32 %v13200_v7, %v2224_v17  ;;  %v2235_v46 = vshll.u32 %v13200_v7, %v2223_v10 }
 0x215   : > { %v1885_v60 = vsel %vm10519_vm2, %v13337_v40, %v1882_v2  ;;  %v2169_v45 = vshll.u32 %v10567_v49, 30  ;;  %v2217_v0 = vor.u32 8388608, %v2216_v33  ;;  %v2236_v41 = vshrl.u32 %v13201_v34, %v2224_v17 }
 0x216   : > { %v1980_v55 = vand.u32 2147483647, %v1979_v22  ;;  %v1982_v24 = vcvt.s32.f32 %v1975_v6  ;;  %v2238_v18 = vshll.u32 %v13201_v34, %v2223_v10  ;;  %v2239_v38 = vshrl.u32 %v13202_v37, %v2224_v17 }
 0x217   : > { %vm1685_vm3 = vcmp.lt.s32.totalorder %v10424_v52, 2  ;;  %v10584_v21 = vsel %vm7095_vm15, 0, %v7094_v58  ;;  %v10586_v32 = vsub.s32 %v2166_v4, %v2169_v45  ;;  %v2228_v51 = vor.u32 %v2227_v56, %v2226_v5 }
 0x218   : > { %v2231_v2 = vor.u32 %v2230_v14, %v2229_v61  ;;  %v2225_v50 = vshrl.u32 %v13157_v11, %v2224_v17  ;;  %v2234_v33 = vor.u32 %v2233_v39, %v2232_v9  ;;  %v2237_v20 = vor.u32 %v2236_v41, %v2235_v46 }
 0x219   : > { %vm2241_vm14 = vcmp.lt.s32.totalorder %v2222_v1, 1  ;;  %v1883_v6 = vsub.s32 4, %v10218_v3  ;;  %7532 = vcosq.f32 %v1885_v60  ;;  %vm1902_vm7 = vcmp.lt.s32.totalorder %v13344_v54, 0 }
 0x21a   : > { %v2172_v10 = vsub.s32 0, %v10586_v32  ;;  %vm2244_vm4 = vcmp.lt.s32.totalorder %v2222_v1, 4  ;;  %v10592_v22 = vpop.eup %7528  ;;  %7534 = vsinq.f32 %v1885_v60  ;;  %v2240_v58 = vor.u32 %v2239_v38, %v2238_v18 }
 0x21b   : > { %13384 = vst [vmem:[#allocation93_spill] sm:$0xff] %v10592_v22  ;;  %vm2243_vm13 = vcmp.lt.s32.totalorder %v2222_v1, 3  ;;  %v2246_v4 = vsel %vm2244_vm4, %v2234_v33, 2102212464  ;;  %v10595_v5 = vpop.eup %7530  ;;  %vm13011_vm12 = vweird.f32 %v13317_v59  ;;  %v2079_v17 = vsub.s32 4294967266, %v10584_v21 }
 0x21c   : > { %13385 = vst [vmem:[#allocation94_spill] sm:$0xff] %v10595_v5  ;;  %vm2242_vm9 = vcmp.lt.s32.totalorder %v2222_v1, 2  ;;  %v2249_v56 = vsel %vm2241_vm14, %v2228_v51, %v2231_v2  ;;  %v2257_v61 = vshll.u32 %v2217_v0, 8  ;;  %v13386_v14 = vand.u32 2147483647, %v13344_v54 }
 0x21d   : > { %v1983_v39 = vmul.f32 %v1982_v24, %v1980_v55  ;;  %v2059_v46 = vadd.s32 %v10378_v62, %v10396_v27  ;;  %v2245_v60 = vsel %vm2241_vm14, %v2225_v50, %v2228_v51  ;;  %v2250_v45 = vsel %vm2244_vm4, %v2237_v20, 920167782  ;;  %v13389_v24 = vld [vmem:[#allocation40_spill] sm:$0xff] }
 0x21e   : > { %vm10602_vm15 = vcmp.le.f32.partialorder %v13386_v14, 0.7853982  ;;  %v7097_v41 = vmin.u32 %v2172_v10, %v10586_v32  ;;  %v2247_v18 = vsel %vm2243_vm13, %v2231_v2, %v2246_v4  ;;  %v2251_v0 = vsel %vm2243_vm13, %v2234_v33, %v2250_v45 }
 0x21f   : > { %v2253_v38 = vsel %vm2241_vm14, %v2231_v2, %v2234_v33  ;;  %v2075_v14 = vsub.s32 32, %v10584_v21  ;;  %v2252_v16 = vsel %vm2242_vm9, %v2249_v56, %v2251_v0  ;;  %v2254_v55 = vsel %vm2244_vm4, %v2240_v58, 1326507024 }
 0x220   : > { %v2315_v62 = vand.u32 2139095040, %v13389_v24  ;;  %v2080_v27 = vadd.s32 127, %v2079_v17  ;;  %v2255_v51 = vsel %vm2243_vm13, %v2237_v20, %v2254_v55  ;;  %v1984_v10 = vxor.u32 2147483648, %v1983_v39 }
 0x221   : > { %v10619_v50 = vmul.u32.u64.low %v2257_v61, %v2252_v16  ;;  %v10620_v48 = vmul.u32.u64.high %v2257_v61, %v2252_v16, %v10619_v50  ;;  %v2248_v4 = vsel %vm2242_vm9, %v2245_v60, %v2247_v18  ;;  %v2256_v2 = vsel %vm2242_vm9, %v2253_v38, %v2255_v51 }
 0x222   : > { %v2316_v33 = vshrl.u32 %v2315_v62, 23  ;;  %vm1789_vm14 = vcmp.eq.s32.totalorder %v10546_v47, 0  ;;  %v2174_v56 = vclz %v7097_v41  ;;  %v1692_v20 = vsel %vm1685_vm3, %v10553_v30, %v10560_v19 }
 0x223   : > { %v10626_v45 = vmul.u32.u64.low %v2257_v61, %v2256_v2  ;;  %v10627_v58 = vmul.u32.u64.high %v2257_v61, %v2256_v2, %v10626_v45  ;;  %v1884_v16 = vsel %vm1799_vm10, %v1883_v6, %v10218_v3  ;;  %v2076_v1 = vshll.u32 %v10466_v35, %v10584_v21  ;;  %v10638_v60 = vpop.eup %7532 }
 0x224   : > { %v7104_v17 = vadd.s32 4294967169, %v2316_v33  ;;  %v2077_v18 = vshrl.u32 %v2059_v46, %v2075_v14  ;;  %v2081_v41 = vshll.u32 %v2080_v27, 23  ;;  %v2264_v0 = vmul.u32 %v2257_v61, %v2248_v4  ;;  %v10641_v55 = vpop.eup %7534  ;;  %v13392_v4 = vld [vmem:[#allocation41_spill] sm:$0xff] }
 0x225   : > { %v2267_v38 = vadd.s32 1, %v10620_v48  ;;  %vm1792_vm4 = vcmp.eq.s32.totalorder %v10546_v47, 2  ;;  %v13003_v52 = vxor.u32 2147483648, %v10592_v22  ;;  %v1985_v3 = vsel %vm1902_vm7, %v1984_v10, %v1983_v39 }
 0x226   : > { %v2322_v30 = vadd.s32 1, %v7104_v17  ;;  %v13004_v35 = vxor.u32 2147483648, %v10595_v5  ;;  %v10650_v19 = vsel %vm10519_vm2, 0, %v1884_v16  ;;  %v7098_v21 = vadd.s32 4294967294, %v2174_v56 }
 0x227   : > { %13390 = vst [vmem:[#allocation40_spill] sm:$0xff] %v10650_v19  ;;  %vm2266_vm10 = vc.u32 %v10627_v58, %v10619_v50  ;;  %v10656_v6 = vsel %vm13011_vm12, nan, %v1692_v20  ;;  %v10659_v61 = vand.u32 3, %v10650_v19  ;;  %v1988_v53 = vsel %vm10602_vm15, %v13344_v54, %v1985_v3 }
 0x228   : > { %13391 = vst [vmem:[#allocation95_spill] sm:$0xff] %v10656_v6  ;;  %v2268_v39 = vsel %vm2266_vm10, %v2267_v38, %v10620_v48  ;;  %vm2323_vm3 = vcmp.gt.s32.totalorder %v2322_v30, 0  ;;  %v2078_v46 = vor.u32 %v2077_v18, %v2076_v1  ;;  %v2082_v14 = vor.u32 4788187, %v2081_v41 }
 0x229   : > { %v2269_v62 = vadd.s32 %v2268_v39, %v2264_v0  ;;  %v10670_v27 = vsel %vm1792_vm4, %v13003_v52, %v10595_v5  ;;  %v13005_v51 = vand.u32 2147483647, %v13389_v24  ;;  %v2324_v10 = vsel %vm2323_vm3, %v2322_v30, 0 }
 0x22a   : > { %v2418_v48 = vand.u32 2139095040, %v13392_v4  ;;  %v10679_v2 = vsel %vm1789_vm14, %v10592_v22, %v13004_v35  ;;  %vm7099_vm2 = vcmp.lt.s32.totalorder %v7098_v21, 0  ;;  %7536 = vcosq.f32 %v1988_v53 }
 0x22b   : > { %v2270_v56 = vadd.s32 536870912, %v2269_v62  ;;  %v2326_v16 = vand.u32 31, %v2324_v10  ;;  %7538 = vsinq.f32 %v1988_v53  ;;  %v2083_v1 = vand.u32 2147483647, %v2082_v14 }
 0x22c   : > { %v2085_v17 = vcvt.s32.f32 %v2078_v46  ;;  %v10686_v41 = vsel %vm7099_vm2, 0, %v7098_v21  ;;  %v2319_v0 = vand.u32 8388607, %v13005_v51  ;;  %v2419_v3 = vshrl.u32 %v2418_v48, 23 }
 0x22d   : > { %v10684_v18 = vshrl.u32 %v2270_v56, 30  ;;  %v2327_v38 = vsub.s32 32, %v2326_v16  ;;  %v2329_v39 = vshll.u32 %v13157_v11, %v2326_v16  ;;  %v2332_v52 = vshll.u32 %v13203_v63, %v2326_v16 }
 0x22e   : > { %v2335_v35 = vshll.u32 %v13204_v25, %v2326_v16  ;;  %v2338_v14 = vshll.u32 %v13200_v7, %v2326_v16  ;;  %v2162_v56 = vadd.s32 %v10500_v57, %v10506_v29  ;;  %v2325_v51 = vshrl.u32 %v2324_v10, 5 }
 0x22f   : > { %v2272_v30 = vshll.u32 %v10684_v18, 30  ;;  %v2330_v53 = vshrl.u32 %v13203_v63, %v2327_v38  ;;  %v2333_v46 = vshrl.u32 %v13204_v25, %v2327_v38  ;;  %v2336_v21 = vshrl.u32 %v13200_v7, %v2327_v38 }
 0x230   : > { %v2339_v45 = vshrl.u32 %v13201_v34, %v2327_v38  ;;  %v10703_v20 = vmul.f32 %v2085_v17, %v2083_v1  ;;  %v2182_v33 = vsub.s32 4294967266, %v10686_v41  ;;  %v2320_v6 = vor.u32 8388608, %v2319_v0 }
 0x231   : > { %v10700_v48 = vsub.s32 %v2269_v62, %v2272_v30  ;;  %v7108_v59 = vadd.s32 4294967169, %v2419_v3  ;;  %vm1788_vm13 = vcmp.lt.s32.totalorder %v10546_v47, 2  ;;  %vm1895_vm9 = vcmp.eq.s32.totalorder %v10659_v61, 2 }
 0x232   : > { %v2328_v5 = vshrl.u32 %v13157_v11, %v2327_v38  ;;  %v2331_v57 = vor.u32 %v2330_v53, %v2329_v39  ;;  %v2334_v29 = vor.u32 %v2333_v46, %v2332_v52  ;;  %vm1892_vm14 = vcmp.eq.s32.totalorder %v10659_v61, 0 }
 0x233   : > { %v2275_v22 = vsub.s32 0, %v10700_v48  ;;  %v2337_v62 = vor.u32 %v2336_v21, %v2335_v35  ;;  %v2340_v10 = vor.u32 %v2339_v45, %v2338_v14  ;;  %v2341_v1 = vshll.u32 %v13201_v34, %v2326_v16 }
 0x234   : > { %v2342_v17 = vshrl.u32 %v13202_v37, %v2327_v38  ;;  %vm2005_vm4 = vcmp.lt.s32.totalorder %v13354_v44, 0  ;;  %v2178_v0 = vsub.s32 32, %v10686_v41  ;;  %v2179_v3 = vshll.u32 %v10586_v32, %v10686_v41  ;;  %v10718_v39 = vpop.eup %7536 }
 0x235   : > { %v7101_v30 = vmin.u32 %v2275_v22, %v10700_v48  ;;  %vm2344_vm10 = vcmp.lt.s32.totalorder %v2325_v51, 1  ;;  %13393 = vst [vmem:[#allocation96_spill] sm:$0xff] %v10718_v39  ;;  %v2183_v52 = vadd.s32 127, %v2182_v33  ;;  %v2360_v35 = vshll.u32 %v2320_v6, 8  ;;  %v10720_v46 = vpop.eup %7538 }
 0x236   : > { %v2343_v53 = vor.u32 %v2342_v17, %v2341_v1  ;;  %v2425_v45 = vadd.s32 1, %v7108_v59  ;;  %13394 = vst [vmem:[#allocation97_spill] sm:$0xff] %v10720_v46  ;;  %vm2345_vm3 = vcmp.lt.s32.totalorder %v2325_v51, 2  ;;  %vm2346_vm2 = vcmp.lt.s32.totalorder %v2325_v51, 3 }
 0x237   : > { %vm2347_vm12 = vcmp.lt.s32.totalorder %v2325_v51, 4  ;;  %v2348_v16 = vsel %vm2344_vm10, %v2328_v5, %v2331_v57  ;;  %v13395_v38 = vand.u32 2147483647, %v13354_v44  ;;  %v2352_v22 = vsel %vm2344_vm10, %v2331_v57, %v2334_v29 }
 0x238   : > { %v2349_v32 = vsel %vm2347_vm12, %v2337_v62, 2102212464  ;;  %v2353_v41 = vsel %vm2347_vm12, %v2340_v10, 920167782  ;;  %v2356_v14 = vsel %vm2344_vm10, %v2334_v29, %v2337_v62  ;;  %v2277_v33 = vclz %v7101_v30 }
 0x239   : > { %vm10724_vm11 = vcmp.le.f32.partialorder %v13395_v38, 0.7853982  ;;  %v2350_v1 = vsel %vm2346_vm2, %v2334_v29, %v2349_v32  ;;  %v2354_v6 = vsel %vm2346_vm2, %v2337_v62, %v2353_v41  ;;  %v2357_v59 = vsel %vm2347_vm12, %v2343_v53, 1326507024 }
 0x23a   : > { %v2180_v17 = vshrl.u32 %v2162_v56, %v2178_v0  ;;  %v2355_v43 = vsel %vm2345_vm3, %v2352_v22, %v2354_v6  ;;  %v2358_v8 = vsel %vm2346_vm2, %v2340_v10, %v2357_v59  ;;  %vm2426_vm8 = vcmp.gt.s32.totalorder %v2425_v45, 0 }
 0x23b   : > { %v2351_v5 = vsel %vm2345_vm3, %v2348_v16, %v2350_v1  ;;  %v2359_v38 = vsel %vm2345_vm3, %v2356_v14, %v2358_v8  ;;  %v10731_v36 = vmul.u32.u64.low %v2360_v35, %v2355_v43  ;;  %v10732_v19 = vmul.u32.u64.high %v2360_v35, %v2355_v43, %v10731_v36 }
 0x23c   : > { %v2087_v57 = vxor.u32 2147483648, %v10703_v20  ;;  %v2184_v23 = vshll.u32 %v2183_v52, 23  ;;  %v10736_v30 = vmul.u32.u64.low %v2360_v35, %v2359_v38  ;;  %v10737_v29 = vmul.u32.u64.high %v2360_v35, %v2359_v38, %v10736_v30 }
 0x23d   : > { %vm1891_vm12 = vcmp.lt.s32.totalorder %v10659_v61, 2  ;;  %v13398_v56 = vsub.s32 4, %v10317_v12  ;;  %v7102_v51 = vadd.s32 4294967294, %v2277_v33  ;;  %v2427_v8 = vsel %vm2426_vm8, %v2425_v45, 0 }
 0x23e   : > { %v10749_v43 = vsel %vm1788_vm13, %v10679_v2, %v10670_v27  ;;  %v13399_v10 = vxor.u32 2147483648, %v10638_v60  ;;  %v2367_v52 = vmul.u32 %v2360_v35, %v2351_v5  ;;  %v2429_v53 = vand.u32 31, %v2427_v8 }
 0x23f   : > { %v1987_v62 = vsel %vm1902_vm7, %v13398_v56, %v10317_v12  ;;  %v13400_v16 = vxor.u32 2147483648, %v10641_v55  ;;  %v2181_v45 = vor.u32 %v2180_v17, %v2179_v3  ;;  %v2370_v32 = vadd.s32 1, %v10732_v19 }
 0x240   : > { %v1897_v0 = vsel %vm1895_vm9, %v13399_v10, %v10641_v55  ;;  %v13020_v47 = vand.u32 2147483647, %v13392_v4  ;;  %v10765_v27 = vsel %vm10602_vm15, 0, %v1987_v62  ;;  %v2088_v2 = vsel %vm2005_vm4, %v2087_v57, %v10703_v20 }
 0x241   : > { %v1894_v12 = vsel %vm1892_vm14, %v10638_v60, %v13400_v16  ;;  %v2185_v35 = vor.u32 4788187, %v2184_v23  ;;  %vm2369_vm8 = vc.u32 %v10737_v29, %v10731_v36  ;;  %v10773_v22 = vand.u32 3, %v10765_v27 }
 0x242   : > { %vm7103_vm7 = vcmp.lt.s32.totalorder %v7102_v51, 0  ;;  %v2371_v3 = vsel %vm2369_vm8, %v2370_v32, %v10732_v19  ;;  %v2430_v41 = vsub.s32 32, %v2429_v53  ;;  %v10778_v9 = vsel %vm1891_vm12, %v1894_v12, %v1897_v0 }
 0x243   : > { %v2372_v20 = vadd.s32 %v2371_v3, %v2367_v52  ;;  %v13021_v23 = vxor.u32 2147483648, %v10720_v46  ;;  %v2091_v1 = vsel %vm10724_vm11, %v13354_v44, %v2088_v2  ;;  %v2188_v6 = vcvt.s32.f32 %v2181_v45 }
 0x244   : > { %v2422_v19 = vand.u32 8388607, %v13020_v47  ;;  %v2186_v59 = vand.u32 2147483647, %v2185_v35  ;;  %v10788_v17 = vsel %vm7103_vm7, 0, %v7102_v51  ;;  %v2428_v5 = vshrl.u32 %v2427_v8, 5 }
 0x245   : > { %v2373_v61 = vadd.s32 536870912, %v2372_v20  ;;  %v2432_v38 = vshll.u32 %v13157_v11, %v2429_v53  ;;  %v2433_v57 = vshrl.u32 %v13203_v63, %v2430_v41  ;;  %v2435_v30 = vshll.u32 %v13203_v63, %v2429_v53 }
 0x246   : > { %v2436_v56 = vshrl.u32 %v13204_v25, %v2430_v41  ;;  %v2438_v10 = vshll.u32 %v13204_v25, %v2429_v53  ;;  %v2439_v0 = vshrl.u32 %v13200_v7, %v2430_v41  ;;  %v2441_v52 = vshll.u32 %v13200_v7, %v2429_v53 }
 0x247   : > { %v10794_v62 = vshrl.u32 %v2373_v61, 30  ;;  %7540 = vcosq.f32 %v2091_v1  ;;  %v2442_v51 = vshrl.u32 %v13201_v34, %v2430_v41  ;;  %v2444_v8 = vshll.u32 %v13201_v34, %v2429_v53 }
 0x248   : > { %v2445_v16 = vshrl.u32 %v13202_v37, %v2430_v41  ;;  %vm13039_vm15 = vweird.f32 %v13327_v31  ;;  %vm13038_vm13 = vweird.f32 %v13337_v40  ;;  %v10804_v12 = vmul.f32 %v2188_v6, %v2186_v59 }
 0x249   : > { %v2285_v45 = vsub.s32 4294967266, %v10788_v17  ;;  %v2375_v32 = vshll.u32 %v10794_v62, 30  ;;  %v2423_v2 = vor.u32 8388608, %v2422_v19  ;;  %vm1995_vm9 = vcmp.eq.s32.totalorder %v10773_v22, 0 }
 0x24a   : > { %vm1998_vm14 = vcmp.eq.s32.totalorder %v10773_v22, 2  ;;  %v2431_v35 = vshrl.u32 %v13157_v11, %v2430_v41  ;;  %v2434_v53 = vor.u32 %v2433_v57, %v2432_v38  ;;  %v2437_v3 = vor.u32 %v2436_v56, %v2435_v30 }
 0x24b   : > { %v2443_v61 = vor.u32 %v2442_v51, %v2441_v52  ;;  %v10811_v47 = vsub.s32 %v2372_v20, %v2375_v32  ;;  %v2440_v33 = vor.u32 %v2439_v0, %v2438_v10  ;;  %vm2447_vm10 = vcmp.lt.s32.totalorder %v2428_v5, 1 }
 0x24c   : > { %vm2450_vm3 = vcmp.lt.s32.totalorder %v2428_v5, 4  ;;  %7542 = vsinq.f32 %v2091_v1  ;;  %vm2108_vm2 = vcmp.lt.s32.totalorder %v13364_v15, 0  ;;  %v2265_v6 = vadd.s32 %v10619_v50, %v10627_v58 }
 0x24d   : > { %v2281_v19 = vsub.s32 32, %v10788_v17  ;;  %v2446_v59 = vor.u32 %v2445_v16, %v2444_v8  ;;  %v2378_v14 = vsub.s32 0, %v10811_v47  ;;  %vm2449_vm12 = vcmp.lt.s32.totalorder %v2428_v5, 3 }
 0x24e   : > { %v2452_v41 = vsel %vm2450_vm3, %v2440_v33, 2102212464  ;;  %v2463_v38 = vshll.u32 %v2423_v2, 8  ;;  %v2286_v20 = vadd.s32 127, %v2285_v45  ;;  %vm2448_vm8 = vcmp.lt.s32.totalorder %v2428_v5, 2 }
 0x24f   : > { %v2455_v57 = vsel %vm2447_vm10, %v2434_v53, %v2437_v3  ;;  %v2456_v1 = vsel %vm2450_vm3, %v2443_v61, 920167782  ;;  %v2190_v30 = vxor.u32 2147483648, %v10804_v12  ;;  %v2282_v50 = vshll.u32 %v10700_v48, %v10788_v17 }
 0x250   : > { %v7105_v58 = vmin.u32 %v2378_v14, %v10811_v47  ;;  %v2451_v56 = vsel %vm2447_vm10, %v2431_v35, %v2434_v53  ;;  %v13401_v10 = vand.u32 2147483647, %v13364_v15  ;;  %v2453_v52 = vsel %vm2449_vm12, %v2437_v3, %v2452_v41 }
 0x251   : > { %v2457_v51 = vsel %vm2449_vm12, %v2440_v33, %v2456_v1  ;;  %v2459_v8 = vsel %vm2447_vm10, %v2437_v3, %v2440_v33  ;;  %v2460_v16 = vsel %vm2450_vm3, %v2446_v59, 1326507024  ;;  %v2283_v45 = vshrl.u32 %v2265_v6, %v2281_v19  ;;  %v10838_v32 = vpop.eup %7540  ;;  %v13407_v19 = vld [vmem:[#allocation42_spill] sm:$0xff] }
 0x252   : > { %vm10828_vm7 = vcmp.le.f32.partialorder %v13401_v10, 0.7853982  ;;  %v2380_v48 = vclz %v7105_v58  ;;  %v2458_v14 = vsel %vm2448_vm8, %v2455_v57, %v2457_v51  ;;  %v2461_v17 = vsel %vm2449_vm12, %v2443_v61, %v2460_v16  ;;  %13404 = vst [vmem:[#allocation98_spill] sm:$0xff] %v10838_v32 }
 0x253   : > { %v2287_v2 = vshll.u32 %v2286_v20, 23  ;;  %v2462_v35 = vsel %vm2448_vm8, %v2459_v8, %v2461_v17  ;;  %v10841_v53 = vmul.u32.u64.low %v2463_v38, %v2458_v14  ;;  %v10842_v10 = vmul.u32.u64.high %v2463_v38, %v2458_v14, %v10841_v53 }
 0x254   : > { %v7106_v41 = vadd.s32 4294967294, %v2380_v48  ;;  %v2454_v33 = vsel %vm2448_vm8, %v2451_v56, %v2453_v52  ;;  %v10846_v3 = vmul.u32.u64.low %v2463_v38, %v2462_v35  ;;  %v10847_v59 = vmul.u32.u64.high %v2463_v38, %v2462_v35, %v10846_v3 }
 0x255   : > { %v10852_v6 = vsel %vm13039_vm15, nan, %v10749_v43  ;;  %v10857_v61 = vsel %vm13038_vm13, nan, %v10778_v9  ;;  %vm13028_vm10 = vweird.f32 %v13344_v54  ;;  %vm1994_vm3 = vcmp.lt.s32.totalorder %v10773_v22, 2 }
 0x256   : > { %13405 = vst [vmem:[#allocation99_spill] sm:$0xff] %v10852_v6  ;;  %13406 = vst [vmem:[#allocation100_spill] sm:$0xff] %v10857_v61  ;;  %v2521_v5 = vand.u32 2139095040, %v13407_v19  ;;  %v1997_v20 = vsel %vm1995_vm9, %v10718_v39, %v13021_v23  ;;  %v13408_v43 = vxor.u32 2147483648, %v10718_v39  ;;  %v13409_v9 = vsub.s32 4, %v10449_v13  ;;  %v10877_v58 = vpop.eup %7542 }
 0x257   : > { %vm7107_vm12 = vcmp.lt.s32.totalorder %v7106_v41, 0  ;;  %13410 = vst [vmem:[#allocation101_spill] sm:$0xff] %v10877_v58  ;;  %v2470_v52 = vmul.u32 %v2463_v38, %v2454_v33  ;;  %v2473_v51 = vadd.s32 1, %v10842_v10  ;;  %v2191_v16 = vsel %vm2108_vm2, %v2190_v30, %v10804_v12 }
 0x258   : > { %v2000_v57 = vsel %vm1998_vm14, %v13408_v43, %v10720_v46  ;;  %v2090_v1 = vsel %vm2005_vm4, %v13409_v9, %v10449_v13  ;;  %v2383_v56 = vsel %vm7107_vm12, 0, %v7106_v41  ;;  %v2522_v8 = vshrl.u32 %v2521_v5, 23  ;;  %v13411_v5 = vld [vmem:[#allocation43_spill] sm:$0xff] }
 0x259   : > { %v2192_v48 = vsub.s32 4, %v10567_v49  ;;  %v2284_v14 = vor.u32 %v2283_v45, %v2282_v50  ;;  %v2288_v17 = vor.u32 4788187, %v2287_v2  ;;  %v2388_v35 = vsub.s32 4294967266, %v2383_v56 }
 0x25a   : > { %vm2472_vm4 = vc.u32 %v10847_v59, %v10841_v53  ;;  %v13022_v13 = vand.u32 2147483647, %v13407_v19  ;;  %v7112_v3 = vadd.s32 4294967169, %v2522_v8  ;;  %v2368_v38 = vadd.s32 %v10731_v36, %v10737_v29 }
 0x25b   : > { %v2384_v41 = vsub.s32 32, %v2383_v56  ;;  %v2474_v33 = vsel %vm2472_vm4, %v2473_v51, %v10842_v10  ;;  %v2624_v43 = vand.u32 2139095040, %v13411_v5  ;;  %v2001_v12 = vsel %vm1994_vm3, %v1997_v20, %v2000_v57 }
 0x25c   : > { %v10895_v30 = vsel %vm10724_vm11, 0, %v2090_v1  ;;  %v2475_v50 = vadd.s32 %v2474_v33, %v2470_v52  ;;  %v2528_v45 = vadd.s32 1, %v7112_v3  ;;  %v2193_v2 = vsel %vm2108_vm2, %v2192_v48, %v10567_v49 }
 0x25d   : > { %v2194_v36 = vsel %vm10828_vm7, %v13364_v15, %v2191_v16  ;;  %v2289_v29 = vand.u32 2147483647, %v2288_v17  ;;  %v2291_v10 = vcvt.s32.f32 %v2284_v14  ;;  %v2389_v9 = vadd.s32 127, %v2388_v35 }
 0x25e   : > { %v2476_v51 = vadd.s32 536870912, %v2475_v50  ;;  %v2525_v22 = vand.u32 8388607, %v13022_v13  ;;  %vm2529_vm9 = vcmp.gt.s32.totalorder %v2528_v45, 0  ;;  %v2385_v21 = vshll.u32 %v10811_v47, %v2383_v56 }
 0x25f   : > { %v2386_v20 = vshrl.u32 %v2368_v38, %v2384_v41  ;;  %v2530_v57 = vsel %vm2529_vm9, %v2528_v45, 0  ;;  %v2625_v1 = vshrl.u32 %v2624_v43, 23  ;;  %v10907_v52 = vand.u32 3, %v10895_v30 }
 0x260   : > { %v10911_v49 = vsel %vm10828_vm7, 0, %v2193_v2  ;;  %v10913_v8 = vshrl.u32 %v2476_v51, 30  ;;  %v2532_v16 = vand.u32 31, %v2530_v57  ;;  %v10917_v48 = vsel %vm13028_vm10, nan, %v2001_v12 }
 0x261   : > { %13412 = vst [vmem:[#allocation102_spill] sm:$0xff] %v10911_v49  ;;  %13413 = vst [vmem:[#allocation103_spill] sm:$0xff] %v10917_v48  ;;  %v10922_v56 = vand.u32 3, %v10911_v49  ;;  %7544 = vcosq.f32 %v2194_v36  ;;  %v2390_v17 = vshll.u32 %v2389_v9, 23  ;;  %v2292_v3 = vmul.f32 %v2291_v10, %v2289_v29 }
 0x262   : > { %v2478_v0 = vshll.u32 %v10913_v8, 30  ;;  %v2533_v35 = vsub.s32 32, %v2532_v16  ;;  %v2387_v38 = vor.u32 %v2386_v20, %v2385_v21  ;;  %v2526_v41 = vor.u32 8388608, %v2525_v22 }
 0x263   : > { %v7116_v33 = vadd.s32 4294967169, %v2625_v1  ;;  %vm2101_vm11 = vcmp.eq.s32.totalorder %v10907_v52, 2  ;;  %v2535_v12 = vshll.u32 %v13157_v11, %v2532_v16  ;;  %v2538_v2 = vshll.u32 %v13203_v63, %v2532_v16 }
 0x264   : > { %v10926_v43 = vsub.s32 %v2475_v50, %v2478_v0  ;;  %v2536_v45 = vshrl.u32 %v13203_v63, %v2533_v35  ;;  %vm2211_vm14 = vcmp.lt.s32.totalorder %v13372_v26, 0  ;;  %v2539_v9 = vshrl.u32 %v13204_v25, %v2533_v35 }
 0x265   : > { %v2541_v51 = vshll.u32 %v13204_v25, %v2532_v16  ;;  %v2542_v29 = vshrl.u32 %v13200_v7, %v2533_v35  ;;  %v2544_v10 = vshll.u32 %v13200_v7, %v2532_v16  ;;  %vm2098_vm2 = vcmp.eq.s32.totalorder %v10907_v52, 0 }
 0x266   : > { %v2391_v50 = vor.u32 4788187, %v2390_v17  ;;  %v2481_v22 = vsub.s32 0, %v10926_v43  ;;  %v2531_v21 = vshrl.u32 %v2530_v57, 5  ;;  %v2545_v20 = vshrl.u32 %v13201_v34, %v2533_v35 }
 0x267   : > { %7546 = vsinq.f32 %v2194_v36  ;;  %v2293_v1 = vxor.u32 2147483648, %v2292_v3  ;;  %v2547_v0 = vshll.u32 %v13201_v34, %v2532_v16  ;;  %v10940_v23 = vshll.u32 %v2526_v41, 8 }
 0x268   : > { %v13414_v13 = vand.u32 2147483647, %v13372_v26  ;;  %v7109_v47 = vmin.u32 %v2481_v22, %v10926_v43  ;;  %v2534_v17 = vshrl.u32 %v13157_v11, %v2533_v35  ;;  %v2537_v48 = vor.u32 %v2536_v45, %v2535_v12 }
 0x269   : > { %v2540_v57 = vor.u32 %v2539_v9, %v2538_v2  ;;  %vm2097_vm7 = vcmp.lt.s32.totalorder %v10907_v52, 2  ;;  %v2394_v36 = vcvt.s32.f32 %v2387_v38  ;;  %v2543_v61 = vor.u32 %v2542_v29, %v2541_v51 }
 0x26a   : > { %vm10944_vm8 = vcmp.le.f32.partialorder %v13414_v13, 0.7853982  ;;  %v2546_v6 = vor.u32 %v2545_v20, %v2544_v10  ;;  %v2548_v16 = vshrl.u32 %v13202_v37, %v2533_v35  ;;  %v2392_v41 = vand.u32 2147483647, %v2391_v50 }
 0x26b   : > { %v2483_v54 = vclz %v7109_v47  ;;  %vm2550_vm3 = vcmp.lt.s32.totalorder %v2531_v21, 1  ;;  %v2631_v13 = vadd.s32 1, %v7116_v33  ;;  %vm2551_vm12 = vcmp.lt.s32.totalorder %v2531_v21, 2  ;;  %v10952_v22 = vpop.eup %7544 }
 0x26c   : > { %v2549_v39 = vor.u32 %v2548_v16, %v2547_v0  ;;  %vm2552_vm4 = vcmp.lt.s32.totalorder %v2531_v21, 3  ;;  %vm2553_vm9 = vcmp.lt.s32.totalorder %v2531_v21, 4  ;;  %v2554_v46 = vsel %vm2550_vm3, %v2534_v17, %v2537_v48 }
 0x26d   : > { %v2555_v12 = vsel %vm2553_vm9, %v2543_v61, 2102212464  ;;  %v2558_v45 = vsel %vm2550_vm3, %v2537_v48, %v2540_v57  ;;  %v2559_v2 = vsel %vm2553_vm9, %v2546_v6, 920167782  ;;  %vm2314_vm10 = vcmp.lt.s32.totalorder %v13389_v24, 0 }
 0x26e   : > { %v2556_v38 = vsel %vm2552_vm4, %v2540_v57, %v2555_v12  ;;  %v2560_v9 = vsel %vm2552_vm4, %v2543_v61, %v2559_v2  ;;  %v2562_v51 = vsel %vm2550_vm3, %v2540_v57, %v2543_v61  ;;  %v2563_v35 = vsel %vm2553_vm9, %v2549_v39, 1326507024 }
 0x26f   : > { %v2295_v47 = vsub.s32 4, %v10684_v18  ;;  %v7110_v29 = vadd.s32 4294967294, %v2483_v54  ;;  %v2561_v33 = vsel %vm2551_vm12, %v2558_v45, %v2560_v9  ;;  %v2564_v10 = vsel %vm2552_vm4, %v2546_v6, %v2563_v35 }
 0x270   : > { %v13417_v50 = vxor.u32 2147483648, %v10838_v32  ;;  %v2565_v48 = vsel %vm2551_vm12, %v2562_v51, %v2564_v10  ;;  %v10964_v0 = vmul.u32.u64.low %v10940_v23, %v2561_v33  ;;  %v10965_v17 = vmul.u32.u64.high %v10940_v23, %v2561_v33, %v10964_v0 }
 0x271   : > { %v2294_v39 = vsel %vm2211_vm14, %v2293_v1, %v2292_v3  ;;  %v2395_v54 = vmul.f32 %v2394_v36, %v2392_v41  ;;  %v2557_v61 = vsel %vm2551_vm12, %v2554_v46, %v2556_v38  ;;  %v13030_v6 = vand.u32 2147483647, %v13411_v5  ;;  %v10972_v57 = vpop.eup %7546 }
 0x272   : > { %v2103_v20 = vsel %vm2101_vm11, %v13417_v50, %v10877_v58  ;;  %v13418_v16 = vxor.u32 2147483648, %v10877_v58  ;;  %v13419_v45 = vand.u32 2147483647, %v13389_v24  ;;  %vm2632_vm3 = vcmp.gt.s32.totalorder %v2631_v13, 0 }
 0x273   : > { %v10986_v3 = vmul.u32.u64.low %v10940_v23, %v2565_v48  ;;  %v10987_v21 = vmul.u32.u64.high %v10940_v23, %v2565_v48, %v10986_v3  ;;  %v13029_v46 = vxor.u32 2147483648, %v10952_v22  ;;  %v2296_v1 = vsel %vm2211_vm14, %v2295_v47, %v10684_v18 }
 0x274   : > { %v2100_v12 = vsel %vm2098_vm2, %v10838_v32, %v13418_v16  ;;  %vm10981_vm11 = vcmp.le.f32.partialorder %v13419_v45, 0.7853982  ;;  %vm7111_vm12 = vcmp.lt.s32.totalorder %v7110_v29, 0  ;;  %v2633_v36 = vsel %vm2632_vm3, %v2631_v13, 0 }
 0x275   : > { %v2297_v41 = vsel %vm10944_vm8, %v13372_v26, %v2294_v39  ;;  %v2573_v38 = vmul.u32 %v10940_v23, %v2557_v61  ;;  %v2576_v9 = vadd.s32 1, %v10965_v17  ;;  %v2635_v51 = vand.u32 31, %v2633_v36 }
 0x276   : > { %v11000_v35 = vsel %vm2097_vm7, %v2100_v12, %v2103_v20  ;;  %vm2204_vm2 = vcmp.eq.s32.totalorder %v10922_v56, 2  ;;  %v2396_v33 = vxor.u32 2147483648, %v2395_v54  ;;  %v2628_v18 = vand.u32 8388607, %v13030_v6 }
 0x277   : > { %v11007_v13 = vsel %vm10944_vm8, 0, %v2296_v1  ;;  %v11009_v47 = vsel %vm7111_vm12, 0, %v7110_v29  ;;  %vm2575_vm14 = vc.u32 %v10987_v21, %v10964_v0  ;;  %v2636_v23 = vsub.s32 32, %v2635_v51 }
 0x278   : > { %13422 = vst [vmem:[#allocation104_spill] sm:$0xff] %v11007_v13  ;;  %7548 = vcosq.f32 %v2297_v41  ;;  %v11015_v10 = vand.u32 3, %v11007_v13  ;;  %v2577_v50 = vsel %vm2575_vm14, %v2576_v9, %v10965_v17  ;;  %v11021_v14 = vsel %vm2204_vm2, %v13029_v46, %v10972_v57 }
 0x279   : > { %7550 = vsinq.f32 %v2297_v41  ;;  %v2471_v29 = vadd.s32 %v10841_v53, %v10847_v59  ;;  %v2578_v20 = vadd.s32 %v2577_v50, %v2573_v38  ;;  %vm2201_vm8 = vcmp.eq.s32.totalorder %v10922_v56, 0 }
 0x27a   : > { %v2397_v48 = vsel %vm2314_vm10, %v2396_v33, %v2395_v54  ;;  %v2491_v39 = vsub.s32 4294967266, %v11009_v47  ;;  %v2629_v61 = vor.u32 8388608, %v2628_v18  ;;  %v2638_v17 = vshll.u32 %v13157_v11, %v2635_v51 }
 0x27b   : > { %v2579_v16 = vadd.s32 536870912, %v2578_v20  ;;  %v2639_v12 = vshrl.u32 %v13203_v63, %v2636_v23  ;;  %v2641_v45 = vshll.u32 %v13203_v63, %v2635_v51  ;;  %v2642_v3 = vshrl.u32 %v13204_v25, %v2636_v23 }
 0x27c   : > { %v2634_v1 = vshrl.u32 %v2633_v36, 5  ;;  %v2644_v53 = vshll.u32 %v13204_v25, %v2635_v51  ;;  %v2645_v59 = vshrl.u32 %v13200_v7, %v2636_v23  ;;  %v2647_v41 = vshll.u32 %v13200_v7, %v2635_v51 }
 0x27d   : > { %v2487_v54 = vsub.s32 32, %v11009_v47  ;;  %v11037_v38 = vshrl.u32 %v2579_v16, 30  ;;  %v2648_v9 = vshrl.u32 %v13201_v34, %v2636_v23  ;;  %v2650_v33 = vshll.u32 %v13201_v34, %v2635_v51 }
 0x27e   : > { %v2400_v18 = vsel %vm10981_vm11, %v13389_v24, %v2397_v48  ;;  %v2488_v36 = vshll.u32 %v10926_v43, %v11009_v47  ;;  %v2492_v50 = vadd.s32 127, %v2491_v39  ;;  %v2651_v46 = vshrl.u32 %v13202_v37, %v2636_v23  ;;  %v13424_v39 = vld [vmem:[#allocation44_spill] sm:$0xff] }
 0x27f   : > { %v2581_v6 = vshll.u32 %v11037_v38, 30  ;;  %v2637_v52 = vshrl.u32 %v13157_v11, %v2636_v23  ;;  %v2640_v16 = vor.u32 %v2639_v12, %v2638_v17  ;;  %v2643_v32 = vor.u32 %v2642_v3, %v2641_v45 }
 0x280   : > { %v2646_v58 = vor.u32 %v2645_v59, %v2644_v53  ;;  %v2649_v40 = vor.u32 %v2648_v9, %v2647_v41  ;;  %v2652_v13 = vor.u32 %v2651_v46, %v2650_v33  ;;  %vm2653_vm7 = vcmp.lt.s32.totalorder %v2634_v1, 1 }
 0x281   : > { %v2489_v51 = vshrl.u32 %v2471_v29, %v2487_v54  ;;  %v11049_v49 = vsub.s32 %v2578_v20, %v2581_v6  ;;  %vm2656_vm4 = vcmp.lt.s32.totalorder %v2634_v1, 4  ;;  %v11051_v48 = vshll.u32 %v2629_v61, 8 }
 0x282   : > { %v11053_v43 = vpop.eup %7548  ;;  %vm2200_vm9 = vcmp.lt.s32.totalorder %v10922_v56, 2  ;;  %v2493_v47 = vshll.u32 %v2492_v50, 23  ;;  %vm2654_vm3 = vcmp.lt.s32.totalorder %v2634_v1, 2  ;;  %v2658_v23 = vsel %vm2656_vm4, %v2646_v58, 2102212464 }
 0x283   : > { %13423 = vst [vmem:[#allocation105_spill] sm:$0xff] %v11053_v43  ;;  %v2727_v17 = vand.u32 2139095040, %v13424_v39  ;;  %v11058_v12 = vpop.eup %7550  ;;  %vm2304_vm12 = vcmp.eq.s32.totalorder %v11015_v10, 0  ;;  %vm2307_vm2 = vcmp.eq.s32.totalorder %v11015_v10, 2  ;;  %v2584_v6 = vsub.s32 0, %v11049_v49 }
 0x284   : > { %13425 = vst [vmem:[#allocation106_spill] sm:$0xff] %v11058_v12  ;;  %vm2655_vm14 = vcmp.lt.s32.totalorder %v2634_v1, 3  ;;  %v2657_v46 = vsel %vm2653_vm7, %v2637_v52, %v2640_v16  ;;  %v2661_v29 = vsel %vm2653_vm7, %v2640_v16, %v2643_v32  ;;  %v2662_v61 = vsel %vm2656_vm4, %v2649_v40, 920167782 }
 0x285   : > { %v2659_v20 = vsel %vm2655_vm14, %v2643_v32, %v2658_v23  ;;  %v2665_v45 = vsel %vm2653_vm7, %v2643_v32, %v2646_v58  ;;  %v2666_v3 = vsel %vm2656_vm4, %v2652_v13, 1326507024  ;;  %v13426_v53 = vxor.u32 2147483648, %v10972_v57 }
 0x286   : > { %7552 = vcosq.f32 %v2400_v18  ;;  %v2490_v41 = vor.u32 %v2489_v51, %v2488_v36  ;;  %v7113_v54 = vmin.u32 %v2584_v6, %v11049_v49  ;;  %vm13096_vm13 = vweird.f32 %v13354_v44 }
 0x287   : > { %v2203_v59 = vsel %vm2201_vm8, %v10952_v22, %v13426_v53  ;;  %v2494_v52 = vor.u32 4788187, %v2493_v47  ;;  %v2663_v9 = vsel %vm2655_vm14, %v2646_v58, %v2662_v61  ;;  %v2667_v33 = vsel %vm2655_vm14, %v2649_v40, %v2666_v3 }
 0x288   : > { %v2728_v50 = vshrl.u32 %v2727_v17, 23  ;;  %vm13046_vm7 = vweird.f32 %v13364_v15  ;;  %vm2303_vm4 = vcmp.lt.s32.totalorder %v11015_v10, 2  ;;  %vm2417_vm15 = vcmp.lt.s32.totalorder %v13392_v4, 0 }
 0x289   : > { %v2586_v32 = vclz %v7113_v54  ;;  %v2660_v13 = vsel %vm2654_vm3, %v2657_v46, %v2659_v20  ;;  %v2664_v16 = vsel %vm2654_vm3, %v2661_v29, %v2663_v9  ;;  %v2668_v36 = vsel %vm2654_vm3, %v2665_v45, %v2667_v33 }
 0x28a   : > { %v11082_v51 = vmul.u32.u64.low %v11051_v48, %v2668_v36  ;;  %v11083_v23 = vmul.u32.u64.high %v11051_v48, %v2668_v36, %v11082_v51  ;;  %v11086_v40 = vmul.u32.u64.low %v11051_v48, %v2664_v16  ;;  %v11087_v58 = vmul.u32.u64.high %v11051_v48, %v2664_v16, %v11086_v40 }
 0x28b   : > { %v13040_v47 = vxor.u32 2147483648, %v11053_v43  ;;  %v2398_v17 = vsub.s32 4, %v10794_v62  ;;  %v7114_v6 = vadd.s32 4294967294, %v2586_v32  ;;  %v7120_v61 = vadd.s32 4294967169, %v2728_v50 }
 0x28c   : > { %v13041_v46 = vxor.u32 2147483648, %v11058_v12  ;;  %7554 = vsinq.f32 %v2400_v18  ;;  %v13427_v1 = vand.u32 2147483647, %v13392_v4  ;;  %v2497_v20 = vcvt.s32.f32 %v2490_v41 }
 0x28d   : > { %v2501_v45 = vsub.s32 4, %v10913_v8  ;;  %v2495_v3 = vand.u32 2147483647, %v2494_v52  ;;  %vm7115_vm3 = vcmp.lt.s32.totalorder %v7114_v6, 0  ;;  %v2676_v53 = vmul.u32 %v11051_v48, %v2660_v13 }
 0x28e   : > { %vm11095_vm8 = vcmp.le.f32.partialorder %v13427_v1, 0.7853982  ;;  %v2734_v54 = vadd.s32 1, %v7120_v61  ;;  %v2574_v9 = vadd.s32 %v10964_v0, %v10987_v21  ;;  %v2589_v33 = vsel %vm7115_vm3, 0, %v7114_v6 }
 0x28f   : > { %vm2678_vm14 = vc.u32 %v11083_v23, %v11086_v40  ;;  %v2679_v18 = vadd.s32 1, %v11087_v58  ;;  %v2207_v41 = vsel %vm2200_vm9, %v2203_v59, %v11021_v14  ;;  %v2399_v52 = vsel %vm2314_vm10, %v2398_v17, %v10794_v62 }
 0x290   : > { %v2590_v50 = vsub.s32 32, %v2589_v33  ;;  %v2594_v48 = vsub.s32 4294967266, %v2589_v33  ;;  %v2306_v0 = vsel %vm2304_vm12, %v11053_v43, %v13041_v46  ;;  %v2309_v21 = vsel %vm2307_vm2, %v13040_v47, %v11058_v12  ;;  %v11123_v14 = vpop.eup %7552 }
 0x291   : > { %v2680_v56 = vsel %vm2678_vm14, %v2679_v18, %v11087_v58  ;;  %vm2735_vm9 = vcmp.gt.s32.totalorder %v2734_v54, 0  ;;  %13430 = vst [vmem:[#allocation107_spill] sm:$0xff] %v11123_v14  ;;  %v2498_v62 = vmul.f32 %v2497_v20, %v2495_v3  ;;  %v13042_v13 = vand.u32 2147483647, %v13424_v39  ;;  %v13434_v18 = vld [vmem:[#allocation45_spill] sm:$0xff] }
 0x292   : > { %v2595_v59 = vadd.s32 127, %v2594_v48  ;;  %v2681_v32 = vadd.s32 %v2680_v56, %v2676_v53  ;;  %v2502_v16 = vsel %vm2417_vm15, %v2501_v45, %v10913_v8  ;;  %v2591_v36 = vshll.u32 %v11049_v49, %v2589_v33 }
 0x293   : > { %v2592_v51 = vshrl.u32 %v2574_v9, %v2590_v50  ;;  %v2736_v17 = vsel %vm2735_vm9, %v2734_v54, 0  ;;  %v11133_v58 = vsel %vm13096_vm13, nan, %v11000_v35  ;;  %v11137_v6 = vsel %vm10981_vm11, 0, %v2399_v52 }
 0x294   : > { %13431 = vst [vmem:[#allocation108_spill] sm:$0xff] %v11133_v58  ;;  %v2596_v61 = vshll.u32 %v2595_v59, 23  ;;  %v2682_v1 = vadd.s32 536870912, %v2681_v32  ;;  %v11141_v20 = vsel %vm13046_vm7, nan, %v2207_v41  ;;  %v11145_v49 = vsel %vm2303_vm4, %v2306_v0, %v2309_v21 }
 0x295   : > { %13432 = vst [vmem:[#allocation109_spill] sm:$0xff] %v11141_v20  ;;  %v11148_v8 = vand.u32 3, %v11137_v6  ;;  %v2738_v45 = vand.u32 31, %v2736_v17  ;;  %v2499_v3 = vxor.u32 2147483648, %v2498_v62  ;;  %v11153_v2 = vsel %vm11095_vm8, 0, %v2502_v16 }
 0x296   : > { %v11155_v53 = vshrl.u32 %v2682_v1, 30  ;;  %v11157_v54 = vpop.eup %7554  ;;  %v2593_v9 = vor.u32 %v2592_v51, %v2591_v36  ;;  %v2731_v10 = vand.u32 8388607, %v13042_v13  ;;  %v2830_v41 = vand.u32 2139095040, %v13434_v18 }
 0x297   : > { %13433 = vst [vmem:[#allocation110_spill] sm:$0xff] %v11157_v54  ;;  %v2739_v33 = vsub.s32 32, %v2738_v45  ;;  %v2597_v52 = vor.u32 4788187, %v2596_v61  ;;  %v2737_v48 = vshrl.u32 %v2736_v17, 5  ;;  %v2741_v0 = vshll.u32 %v13157_v11, %v2738_v45 }
 0x298   : > { %v2684_v50 = vshll.u32 %v11155_v53, 30  ;;  %v2744_v56 = vshll.u32 %v13203_v63, %v2738_v45  ;;  %v2750_v16 = vshll.u32 %v13200_v7, %v2738_v45  ;;  %v2747_v51 = vshll.u32 %v13204_v25, %v2738_v45 }
 0x299   : > { %v2742_v21 = vshrl.u32 %v13203_v63, %v2739_v33  ;;  %v2745_v59 = vshrl.u32 %v13204_v25, %v2739_v33  ;;  %v2748_v1 = vshrl.u32 %v13200_v7, %v2739_v33  ;;  %v2751_v61 = vshrl.u32 %v13201_v34, %v2739_v33 }
 0x29a   : > { %v11168_v36 = vsub.s32 %v2681_v32, %v2684_v50  ;;  %v2500_v47 = vsel %vm2417_vm15, %v2499_v3, %v2498_v62  ;;  %v2732_v46 = vor.u32 8388608, %v2731_v10  ;;  %v2831_v13 = vshrl.u32 %v2830_v41, 23 }
 0x29b   : > { %v2598_v35 = vand.u32 2147483647, %v2597_v52  ;;  %v2600_v20 = vcvt.s32.f32 %v2593_v9  ;;  %v2743_v15 = vor.u32 %v2742_v21, %v2741_v0  ;;  %vm13072_vm10 = vweird.f32 %v13372_v26 }
 0x29c   : > { %v2687_v58 = vsub.s32 0, %v11168_v36  ;;  %vm2410_vm11 = vcmp.eq.s32.totalorder %v11148_v8, 2  ;;  %v2746_v32 = vor.u32 %v2745_v59, %v2744_v56  ;;  %v2752_v50 = vor.u32 %v2751_v61, %v2750_v16 }
 0x29d   : > { %v2753_v43 = vshll.u32 %v13201_v34, %v2738_v45  ;;  %v2754_v17 = vshrl.u32 %v13202_v37, %v2739_v33  ;;  %vm2407_vm12 = vcmp.eq.s32.totalorder %v11148_v8, 0  ;;  %v2740_v3 = vshrl.u32 %v13157_v11, %v2739_v33 }
 0x29e   : > { %v7117_v62 = vmin.u32 %v2687_v58, %v11168_v36  ;;  %v2749_v9 = vor.u32 %v2748_v1, %v2747_v51  ;;  %vm2756_vm15 = vcmp.lt.s32.totalorder %v2737_v48, 1  ;;  %vm2758_vm2 = vcmp.lt.s32.totalorder %v2737_v48, 3 }
 0x29f   : > { %v2755_v10 = vor.u32 %v2754_v17, %v2753_v43  ;;  %v13047_v41 = vand.u32 2147483647, %v13434_v18  ;;  %v7124_v52 = vadd.s32 4294967169, %v2831_v13  ;;  %vm2520_vm4 = vcmp.lt.s32.totalorder %v13407_v19, 0 }
 0x2a0   : > { %v2689_v0 = vclz %v7117_v62  ;;  %vm2757_vm3 = vcmp.lt.s32.totalorder %v2737_v48, 2  ;;  %vm2759_vm14 = vcmp.lt.s32.totalorder %v2737_v48, 4  ;;  %v2772_v45 = vshll.u32 %v2732_v46, 8 }
 0x2a1   : > { %v2601_v21 = vmul.f32 %v2600_v20, %v2598_v35  ;;  %v2761_v56 = vsel %vm2759_vm14, %v2749_v9, 2102212464  ;;  %v2764_v59 = vsel %vm2756_vm15, %v2743_v15, %v2746_v32  ;;  %v2765_v58 = vsel %vm2759_vm14, %v2752_v50, 920167782 }
 0x2a2   : > { %v7118_v16 = vadd.s32 4294967294, %v2689_v0  ;;  %v2760_v33 = vsel %vm2756_vm15, %v2740_v3, %v2743_v15  ;;  %v2766_v43 = vsel %vm2758_vm2, %v2749_v9, %v2765_v58  ;;  %v2768_v51 = vsel %vm2756_vm15, %v2746_v32, %v2749_v9 }
 0x2a3   : > { %v13435_v13 = vand.u32 2147483647, %v13407_v19  ;;  %v2762_v46 = vsel %vm2758_vm2, %v2746_v32, %v2761_v56  ;;  %v2767_v20 = vsel %vm2757_vm3, %v2764_v59, %v2766_v43  ;;  %v2769_v35 = vsel %vm2759_vm14, %v2755_v10, 1326507024 }
 0x2a4   : > { %v2837_v61 = vadd.s32 1, %v7124_v52  ;;  %vm7119_vm7 = vcmp.lt.s32.totalorder %v7118_v16, 0  ;;  %v2770_v17 = vsel %vm2758_vm2, %v2752_v50, %v2769_v35  ;;  %v2503_v3 = vsel %vm11095_vm8, %v13392_v4, %v2500_v47 }
 0x2a5   : > { %vm11192_vm9 = vcmp.le.f32.partialorder %v13435_v13, 0.7853982  ;;  %v11199_v15 = vmul.u32.u64.low %v2772_v45, %v2767_v20  ;;  %v11200_v62 = vmul.u32.u64.high %v2772_v45, %v2767_v20, %v11199_v15  ;;  %v2692_v9 = vsel %vm7119_vm7, 0, %v7118_v16 }
 0x2a6   : > { %v2771_v0 = vsel %vm2757_vm3, %v2768_v51, %v2770_v17  ;;  %vm2838_vm15 = vcmp.gt.s32.totalorder %v2837_v61, 0  ;;  %v2602_v32 = vxor.u32 2147483648, %v2601_v21  ;;  %v2763_v56 = vsel %vm2757_vm3, %v2760_v33, %v2762_v46 }
 0x2a7   : > { %v2834_v10 = vand.u32 8388607, %v13047_v41  ;;  %v2839_v52 = vsel %vm2838_vm15, %v2837_v61, 0  ;;  %v2697_v50 = vsub.s32 4294967266, %v2692_v9  ;;  %v11216_v47 = vsel %vm13072_vm10, nan, %v11145_v49 }
 0x2a8   : > { %v11210_v59 = vmul.u32.u64.low %v2772_v45, %v2771_v0  ;;  %v11211_v58 = vmul.u32.u64.high %v2772_v45, %v2771_v0, %v11210_v59  ;;  %v2841_v43 = vand.u32 31, %v2839_v52  ;;  %13438 = vst [vmem:[#allocation111_spill] sm:$0xff] %v11216_v47  ;;  %v13439_v29 = vxor.u32 2147483648, %v11123_v14 }
 0x2a9   : > { %v11224_v16 = vand.u32 3, %v11153_v2  ;;  %v2782_v33 = vadd.s32 1, %v11200_v62  ;;  %v13440_v51 = vxor.u32 2147483648, %v11157_v54  ;;  %7556 = vcosq.f32 %v2503_v3 }
 0x2aa   : > { %v2412_v48 = vsel %vm2410_vm11, %v13439_v29, %v11157_v54  ;;  %v2779_v49 = vmul.u32 %v2772_v45, %v2763_v56  ;;  %v2842_v46 = vsub.s32 32, %v2841_v43  ;;  %7558 = vsinq.f32 %v2503_v3 }
 0x2ab   : > { %v2409_v13 = vsel %vm2407_vm12, %v11123_v14, %v13440_v51  ;;  %v2604_v20 = vsub.s32 4, %v11037_v38  ;;  %v2677_v35 = vadd.s32 %v11086_v40, %v11083_v23  ;;  %v2835_v61 = vor.u32 8388608, %v2834_v10 }
 0x2ac   : > { %vm2406_vm7 = vcmp.lt.s32.totalorder %v11148_v8, 2  ;;  %v2603_v17 = vsel %vm2520_vm4, %v2602_v32, %v2601_v21  ;;  %v2693_v0 = vsub.s32 32, %v2692_v9  ;;  %v2698_v59 = vadd.s32 127, %v2697_v50 }
 0x2ad   : > { %vm2781_vm8 = vc.u32 %v11211_v58, %v11199_v15  ;;  %v2844_v3 = vshll.u32 %v13157_v11, %v2841_v43  ;;  %v2847_v56 = vshll.u32 %v13203_v63, %v2841_v43  ;;  %v2853_v29 = vshll.u32 %v13200_v7, %v2841_v43 }
 0x2ae   : > { %v2783_v45 = vsel %vm2781_vm8, %v2782_v33, %v11200_v62  ;;  %v11244_v40 = vshrl.u32 %v2839_v52, 5  ;;  %v2845_v10 = vshrl.u32 %v13203_v63, %v2842_v46  ;;  %v2848_v21 = vshrl.u32 %v13204_v25, %v2842_v46 }
 0x2af   : > { %v2784_v23 = vadd.s32 %v2783_v45, %v2779_v49  ;;  %v2606_v32 = vsel %vm11192_vm9, %v13407_v19, %v2603_v17  ;;  %v2850_v50 = vshll.u32 %v13204_v25, %v2841_v43  ;;  %v2851_v62 = vshrl.u32 %v13200_v7, %v2842_v46 }
 0x2b0   : > { %v2854_v33 = vshrl.u32 %v13201_v34, %v2842_v46  ;;  %v2694_v51 = vshll.u32 %v11168_v36, %v2692_v9  ;;  %v2695_v41 = vshrl.u32 %v2677_v35, %v2693_v0  ;;  %v2699_v49 = vshll.u32 %v2698_v59, 23 }
 0x2b1   : > { %v2785_v52 = vadd.s32 536870912, %v2784_v23  ;;  %v2846_v45 = vor.u32 %v2845_v10, %v2844_v3  ;;  %v2849_v47 = vor.u32 %v2848_v21, %v2847_v56  ;;  %v2856_v54 = vshll.u32 %v13201_v34, %v2841_v43 }
 0x2b2   : > { %v2855_v14 = vor.u32 %v2854_v33, %v2853_v29  ;;  %v2605_v17 = vsel %vm2520_vm4, %v2604_v20, %v11037_v38  ;;  %v2857_v12 = vshrl.u32 %v13202_v37, %v2842_v46  ;;  %vm2859_vm11 = vcmp.lt.s32.totalorder %v11244_v40, 1 }
 0x2b3   : > { %v11259_v26 = vshrl.u32 %v2785_v52, 30  ;;  %vm13071_vm12 = vweird.f32 %v13389_v24  ;;  %7560 = vcosq.f32 %v2606_v32  ;;  %v2852_v36 = vor.u32 %v2851_v62, %v2850_v50  ;;  %v11267_v35 = vpop.eup %7556 }
 0x2b4   : > { %vm2862_vm2 = vcmp.lt.s32.totalorder %v11244_v40, 4  ;;  %v11265_v9 = vshll.u32 %v2835_v61, 8  ;;  %13441 = vst [vmem:[#allocation112_spill] sm:$0xff] %v11267_v35  ;;  %v2696_v43 = vor.u32 %v2695_v41, %v2694_v51  ;;  %v2700_v0 = vor.u32 4788187, %v2699_v49  ;;  %v11271_v20 = vpop.eup %7558 }
 0x2b5   : > { %v2787_v38 = vshll.u32 %v11259_v26, 30  ;;  %vm2861_vm4 = vcmp.lt.s32.totalorder %v11244_v40, 3  ;;  %13442 = vst [vmem:[#allocation113_spill] sm:$0xff] %v11271_v20  ;;  %v2858_v59 = vor.u32 %v2857_v12, %v2856_v54  ;;  %vm2860_vm3 = vcmp.lt.s32.totalorder %v11244_v40, 2 }
 0x2b6   : > { %v2867_v3 = vsel %vm2859_vm11, %v2846_v45, %v2849_v47  ;;  %v2868_v61 = vsel %vm2862_vm2, %v2855_v14, 920167782  ;;  %vm2510_vm14 = vcmp.eq.s32.totalorder %v11224_v16, 0  ;;  %7562 = vsinq.f32 %v2606_v32 }
 0x2b7   : > { %v11279_v41 = vsub.s32 %v2784_v23, %v2787_v38  ;;  %v2843_v56 = vshrl.u32 %v13157_v11, %v2842_v46  ;;  %v2413_v29 = vsel %vm2406_vm7, %v2409_v13, %v2412_v48  ;;  %vm2509_vm15 = vcmp.lt.s32.totalorder %v11224_v16, 2 }
 0x2b8   : > { %v11287_v12 = vsel %vm11192_vm9, 0, %v2605_v17  ;;  %v2864_v54 = vsel %vm2862_vm2, %v2852_v36, 2102212464  ;;  %v2869_v10 = vsel %vm2861_vm4, %v2852_v36, %v2868_v61  ;;  %v2701_v21 = vand.u32 2147483647, %v2700_v0 }
 0x2b9   : > { %v2703_v23 = vcvt.s32.f32 %v2696_v43  ;;  %v2790_v32 = vsub.s32 0, %v11279_v41  ;;  %v2870_v8 = vsel %vm2860_vm3, %v2867_v3, %v2869_v10  ;;  %v2871_v48 = vsel %vm2859_vm11, %v2849_v47, %v2852_v36  ;;  %v13443_v36 = vld [vmem:[#allocation46_spill] sm:$0xff] }
 0x2ba   : > { %v2872_v1 = vsel %vm2862_vm2, %v2858_v59, 1326507024  ;;  %v11301_v13 = vmul.u32.u64.low %v11265_v9, %v2870_v8  ;;  %v11302_v46 = vmul.u32.u64.high %v11265_v9, %v2870_v8, %v11301_v13  ;;  %v11306_v50 = vand.u32 3, %v11287_v12 }
 0x2bb   : > { %vm2623_vm9 = vcmp.lt.s32.totalorder %v13411_v5, 0  ;;  %v7121_v62 = vmin.u32 %v2790_v32, %v11279_v41  ;;  %v2863_v33 = vsel %vm2859_vm11, %v2843_v56, %v2846_v45  ;;  %v2865_v51 = vsel %vm2861_vm4, %v2849_v47, %v2864_v54 }
 0x2bc   : > { %vm13069_vm7 = vweird.f32 %v13392_v4  ;;  %v13058_v49 = vxor.u32 2147483648, %v11271_v20  ;;  %v13057_v52 = vxor.u32 2147483648, %v11267_v35  ;;  %v2873_v17 = vsel %vm2861_vm4, %v2855_v14, %v2872_v1 }
 0x2bd   : > { %v2933_v43 = vand.u32 2139095040, %v13443_v36  ;;  %vm2513_vm8 = vcmp.eq.s32.totalorder %v11224_v16, 2  ;;  %v2704_v0 = vmul.f32 %v2703_v23, %v2701_v21  ;;  %v2792_v38 = vclz %v7121_v62  ;;  %v11323_v59 = vpop.eup %7560 }
 0x2be   : > { %v2874_v45 = vsel %vm2860_vm3, %v2871_v48, %v2873_v17  ;;  %13444 = vst [vmem:[#allocation114_spill] sm:$0xff] %v11323_v59  ;;  %v13445_v47 = vand.u32 2147483647, %v13411_v5  ;;  %v2866_v14 = vsel %vm2860_vm3, %v2863_v33, %v2865_v51  ;;  %v11339_v10 = vsel %vm13071_vm12, nan, %v2413_v29 }
 0x2bf   : > { %v11334_v61 = vmul.u32.u64.low %v11265_v9, %v2874_v45  ;;  %v11335_v56 = vmul.u32.u64.high %v11265_v9, %v2874_v45, %v11334_v61  ;;  %v2934_v54 = vshrl.u32 %v2933_v43, 23  ;;  %13448 = vst [vmem:[#allocation115_spill] sm:$0xff] %v11339_v10  ;;  %vm2613_vm2 = vcmp.eq.s32.totalorder %v11306_v50, 0 }
 0x2c0   : > { %vm11327_vm11 = vcmp.le.f32.partialorder %v13445_v47, 0.7853982  ;;  %vm2616_vm4 = vcmp.eq.s32.totalorder %v11306_v50, 2  ;;  %v7122_v21 = vadd.s32 4294967294, %v2792_v38  ;;  %v2512_v40 = vsel %vm2510_vm14, %v11267_v35, %v13058_v49  ;;  %v11352_v29 = vpop.eup %7562 }
 0x2c1   : > { %v2515_v23 = vsel %vm2513_vm8, %v13057_v52, %v11271_v20  ;;  %v2885_v32 = vadd.s32 1, %v11302_v46  ;;  %v7128_v8 = vadd.s32 4294967169, %v2934_v54  ;;  %13449 = vst [vmem:[#allocation116_spill] sm:$0xff] %v11352_v29  ;;  %v2707_v48 = vsub.s32 4, %v11155_v53 }
 0x2c2   : > { %v2780_v1 = vadd.s32 %v11199_v15, %v11211_v58  ;;  %vm7123_vm3 = vcmp.lt.s32.totalorder %v7122_v21, 0  ;;  %v2882_v62 = vmul.u32 %v11265_v9, %v2866_v14  ;;  %v2705_v33 = vxor.u32 2147483648, %v2704_v0 }
 0x2c3   : > { %v2795_v51 = vsel %vm7123_vm3, 0, %v7122_v21  ;;  %vm2884_vm14 = vc.u32 %v11335_v56, %v11301_v13  ;;  %v2940_v17 = vadd.s32 1, %v7128_v8  ;;  %v2516_v43 = vsel %vm2509_vm15, %v2512_v40, %v2515_v23  ;;  %v13450_v23 = vld [vmem:[#allocation47_spill] sm:$0xff] }
 0x2c4   : > { %v2796_v38 = vsub.s32 32, %v2795_v51  ;;  %v2797_v45 = vshll.u32 %v11279_v41, %v2795_v51  ;;  %v2800_v47 = vsub.s32 4294967266, %v2795_v51  ;;  %v13056_v61 = vxor.u32 2147483648, %v11352_v29 }
 0x2c5   : > { %v13055_v15 = vxor.u32 2147483648, %v11323_v59  ;;  %v2886_v58 = vsel %vm2884_vm14, %v2885_v32, %v11302_v46  ;;  %vm2941_vm8 = vcmp.gt.s32.totalorder %v2940_v17, 0  ;;  %v2708_v9 = vsel %vm2623_vm9, %v2707_v48, %v11155_v53 }
 0x2c6   : > { %vm2726_vm3 = vcmp.lt.s32.totalorder %v13424_v39, 0  ;;  %v2798_v14 = vshrl.u32 %v2780_v1, %v2796_v38  ;;  %v2801_v16 = vadd.s32 127, %v2800_v47  ;;  %v2887_v54 = vadd.s32 %v2886_v58, %v2882_v62 }
 0x2c7   : > { %v2706_v41 = vsel %vm2623_vm9, %v2705_v33, %v2704_v0  ;;  %v13059_v21 = vand.u32 2147483647, %v13443_v36  ;;  %v2942_v40 = vsel %vm2941_vm8, %v2940_v17, 0  ;;  %v3036_v8 = vand.u32 2139095040, %v13450_v23 }
 0x2c8   : > { %v11376_v46 = vsel %vm13069_vm7, nan, %v2516_v43  ;;  %v2799_v32 = vor.u32 %v2798_v14, %v2797_v45  ;;  %v2802_v51 = vshll.u32 %v2801_v16, 23  ;;  %v2888_v53 = vadd.s32 536870912, %v2887_v54 }
 0x2c9   : > { %13451 = vst [vmem:[#allocation47_spill] sm:$0xff] %v11376_v46  ;;  %v11383_v48 = vsel %vm2613_vm2, %v11323_v59, %v13056_v61  ;;  %v11390_v0 = vsel %vm2616_vm4, %v13055_v15, %v11352_v29  ;;  %v11394_v1 = vsel %vm11327_vm11, 0, %v2708_v9  ;;  %v2944_v62 = vand.u32 31, %v2942_v40 }
 0x2ca   : > { %v11399_v33 = vsel %vm11327_vm11, %v13411_v5, %v2706_v41  ;;  %v2803_v17 = vor.u32 4788187, %v2802_v51  ;;  %v2810_v43 = vsub.s32 4, %v11259_v26  ;;  %v11402_v38 = vshrl.u32 %v2888_v53, 30 }
 0x2cb   : > { %v2937_v45 = vand.u32 8388607, %v13059_v21  ;;  %v11406_v47 = vshrl.u32 %v2942_v40, 5  ;;  %v2945_v58 = vsub.s32 32, %v2944_v62  ;;  %v3037_v14 = vshrl.u32 %v3036_v8, 23 }
 0x2cc   : > { %v2804_v9 = vand.u32 2147483647, %v2803_v17  ;;  %v2806_v16 = vcvt.s32.f32 %v2799_v32  ;;  %v2890_v15 = vshll.u32 %v11402_v38, 30  ;;  %v2947_v3 = vshll.u32 %v13157_v11, %v2944_v62 }
 0x2cd   : > { %v2948_v41 = vshrl.u32 %v13203_v63, %v2945_v58  ;;  %v2950_v51 = vshll.u32 %v13203_v63, %v2944_v62  ;;  %v2951_v53 = vshrl.u32 %v13204_v25, %v2945_v58  ;;  %v2956_v61 = vshll.u32 %v13200_v7, %v2944_v62 }
 0x2ce   : > { %v11414_v52 = vsub.s32 %v2887_v54, %v2890_v15  ;;  %v2953_v40 = vshll.u32 %v13204_v25, %v2944_v62  ;;  %v2954_v8 = vshrl.u32 %v13200_v7, %v2945_v58  ;;  %v2957_v32 = vshrl.u32 %v13201_v34, %v2945_v58 }
 0x2cf   : > { %7564 = vcosq.f32 %v11399_v33  ;;  %v11423_v17 = vsel %vm2726_vm3, %v2810_v43, %v11259_v26  ;;  %v2938_v49 = vor.u32 8388608, %v2937_v45  ;;  %v7132_v21 = vadd.s32 4294967169, %v3037_v14 }
 0x2d0   : > { %v2807_v46 = vmul.f32 %v2806_v16, %v2804_v9  ;;  %v2893_v10 = vsub.s32 0, %v11414_v52  ;;  %v2949_v15 = vor.u32 %v2948_v41, %v2947_v3  ;;  %v13073_v54 = vand.u32 2147483647, %v13450_v23 }
 0x2d1   : > { %v13452_v59 = vand.u32 2147483647, %v13424_v39  ;;  %v2952_v4 = vor.u32 %v2951_v53, %v2950_v51  ;;  %v2958_v35 = vor.u32 %v2957_v32, %v2956_v61  ;;  %v2959_v20 = vshll.u32 %v13201_v34, %v2944_v62 }
 0x2d2   : > { %v2960_v26 = vshrl.u32 %v13202_v37, %v2945_v58  ;;  %vm2612_vm9 = vcmp.lt.s32.totalorder %v11306_v50, 2  ;;  %v7125_v43 = vmin.u32 %v2893_v10, %v11414_v52  ;;  %v2946_v45 = vshrl.u32 %v13157_v11, %v2945_v58 }
 0x2d3   : > { %vm11429_vm15 = vcmp.le.f32.partialorder %v13452_v59, 0.7853982  ;;  %v2955_v14 = vor.u32 %v2954_v8, %v2953_v40  ;;  %vm2962_vm11 = vcmp.lt.s32.totalorder %v11406_v47, 1  ;;  %vm2964_vm2 = vcmp.lt.s32.totalorder %v11406_v47, 3 }
 0x2d4   : > { %v2961_v9 = vor.u32 %v2960_v26, %v2959_v20  ;;  %v2978_v59 = vshll.u32 %v2938_v49, 8  ;;  %v3043_v16 = vadd.s32 1, %v7132_v21  ;;  %v2883_v61 = vadd.s32 %v11301_v13, %v11335_v56 }
 0x2d5   : > { %v2895_v62 = vclz %v7125_v43  ;;  %vm2963_vm4 = vcmp.lt.s32.totalorder %v11406_v47, 2  ;;  %vm2965_vm14 = vcmp.lt.s32.totalorder %v11406_v47, 4  ;;  %v2808_v3 = vxor.u32 2147483648, %v2807_v46 }
 0x2d6   : > { %v2967_v10 = vsel %vm2965_vm14, %v2955_v14, 2102212464  ;;  %v2970_v58 = vsel %vm2962_vm11, %v2949_v15, %v2952_v4  ;;  %v2971_v41 = vsel %vm2965_vm14, %v2958_v35, 920167782  ;;  %v2966_v20 = vsel %vm2962_vm11, %v2946_v45, %v2949_v15 }
 0x2d7   : > { %v7126_v51 = vadd.s32 4294967294, %v2895_v62  ;;  %v2972_v49 = vsel %vm2964_vm2, %v2955_v14, %v2971_v41  ;;  %v2974_v13 = vsel %vm2962_vm11, %v2952_v4, %v2955_v14  ;;  %v2968_v56 = vsel %vm2964_vm2, %v2952_v4, %v2967_v10 }
 0x2d8   : > { %v2973_v21 = vsel %vm2963_vm4, %v2970_v58, %v2972_v49  ;;  %v2975_v53 = vsel %vm2965_vm14, %v2961_v9, 1326507024  ;;  %vm3044_vm8 = vcmp.gt.s32.totalorder %v3043_v16, 0  ;;  %v2809_v26 = vsel %vm2726_vm3, %v2808_v3, %v2807_v46 }
 0x2d9   : > { %vm7127_vm7 = vcmp.lt.s32.totalorder %v7126_v51, 0  ;;  %v2976_v40 = vsel %vm2964_vm2, %v2958_v35, %v2975_v53  ;;  %v11458_v8 = vmul.u32.u64.low %v2978_v59, %v2973_v21  ;;  %v11459_v32 = vmul.u32.u64.high %v2978_v59, %v2973_v21, %v11458_v8  ;;  %v11462_v15 = vpop.eup %7564 }
 0x2da   : > { %13455 = vst [vmem:[#allocation117_spill] sm:$0xff] %v11462_v15  ;;  %v2898_v43 = vsel %vm7127_vm7, 0, %v7126_v51  ;;  %v2977_v4 = vsel %vm2963_vm4, %v2974_v13, %v2976_v40  ;;  %v3045_v45 = vsel %vm3044_vm8, %v3043_v16, 0  ;;  %vm13070_vm11 = vweird.f32 %v13407_v19 }
 0x2db   : > { %v2899_v14 = vsub.s32 32, %v2898_v43  ;;  %v2900_v9 = vshll.u32 %v11414_v52, %v2898_v43  ;;  %v2903_v35 = vsub.s32 4294967266, %v2898_v43  ;;  %v2969_v62 = vsel %vm2963_vm4, %v2966_v20, %v2968_v56 }
 0x2dc   : > { %7566 = vsinq.f32 %v11399_v33  ;;  %v11473_v10 = vmul.u32.u64.low %v2978_v59, %v2977_v4  ;;  %v11474_v58 = vmul.u32.u64.high %v2978_v59, %v2977_v4, %v11473_v10  ;;  %v3047_v46 = vand.u32 31, %v3045_v45 }
 0x2dd   : > { %v2812_v3 = vsel %vm11429_vm15, %v13424_v39, %v2809_v26  ;;  %v2901_v16 = vshrl.u32 %v2883_v61, %v2899_v14  ;;  %v2904_v41 = vadd.s32 127, %v2903_v35  ;;  %v2988_v51 = vadd.s32 1, %v11459_v32 }
 0x2de   : > { %v2619_v52 = vsel %vm2612_vm9, %v11383_v48, %v11390_v0  ;;  %v11485_v47 = vand.u32 3, %v11394_v1  ;;  %v2985_v33 = vmul.u32 %v2978_v59, %v2969_v62  ;;  %v3048_v20 = vsub.s32 32, %v3047_v46 }
 0x2df   : > { %v11490_v49 = vsel %vm11429_vm15, 0, %v11423_v17  ;;  %v2902_v13 = vor.u32 %v2901_v16, %v2900_v9  ;;  %v2905_v61 = vshll.u32 %v2904_v41, 23  ;;  %v3040_v56 = vand.u32 8388607, %v13073_v54 }
 0x2e0   : > { %13456 = vst [vmem:[#allocation118_spill] sm:$0xff] %v11490_v49  ;;  %7568 = vcosq.f32 %v2812_v3  ;;  %vm2987_vm7 = vc.u32 %v11474_v58, %v11458_v8  ;;  %v11496_v50 = vshrl.u32 %v3045_v45, 5  ;;  %v3050_v48 = vshll.u32 %v13157_v11, %v3047_v46 }
 0x2e1   : > { %v2906_v0 = vor.u32 4788187, %v2905_v61  ;;  %v2989_v59 = vsel %vm2987_vm7, %v2988_v51, %v11459_v32  ;;  %v3053_v29 = vshll.u32 %v13203_v63, %v3047_v46  ;;  %v3059_v17 = vshll.u32 %v13200_v7, %v3047_v46 }
 0x2e2   : > { %v2990_v21 = vadd.s32 %v2989_v59, %v2985_v33  ;;  %v3051_v53 = vshrl.u32 %v13203_v63, %v3048_v20  ;;  %v3054_v40 = vshrl.u32 %v13204_v25, %v3048_v20  ;;  %v3056_v26 = vshll.u32 %v13204_v25, %v3047_v46 }
 0x2e3   : > { %vm2716_vm3 = vcmp.eq.s32.totalorder %v11485_v47, 0  ;;  %vm2719_vm15 = vcmp.eq.s32.totalorder %v11485_v47, 2  ;;  %v2907_v43 = vand.u32 2147483647, %v2906_v0  ;;  %v2909_v4 = vcvt.s32.f32 %v2902_v13 }
 0x2e4   : > { %v3057_v45 = vshrl.u32 %v13200_v7, %v3048_v20  ;;  %v3060_v32 = vshrl.u32 %v13201_v34, %v3048_v20  ;;  %7570 = vsinq.f32 %v2812_v3  ;;  %v11510_v14 = vand.u32 3, %v11490_v49 }
 0x2e5   : > { %vm2829_vm9 = vcmp.lt.s32.totalorder %v13434_v18, 0  ;;  %v2991_v9 = vadd.s32 536870912, %v2990_v21  ;;  %v3062_v35 = vshll.u32 %v13201_v34, %v3047_v46  ;;  %v3041_v62 = vor.u32 8388608, %v3040_v56 }
 0x2e6   : > { %v3052_v10 = vor.u32 %v3051_v53, %v3050_v48  ;;  %v3055_v16 = vor.u32 %v3054_v40, %v3053_v29  ;;  %v3061_v41 = vor.u32 %v3060_v32, %v3059_v17  ;;  %v11514_v51 = vpop.eup %7566  ;;  %v11518_v33 = vsel %vm13070_vm11, nan, %v2619_v52 }
 0x2e7   : > { %13457 = vst [vmem:[#allocation119_spill] sm:$0xff] %v11514_v51  ;;  %13458 = vst [vmem:[#allocation120_spill] sm:$0xff] %v11518_v33  ;;  %v11520_v13 = vshrl.u32 %v2991_v9, 30  ;;  %v3063_v3 = vshrl.u32 %v13202_v37, %v3048_v20  ;;  %vm3065_vm2 = vcmp.lt.s32.totalorder %v11496_v50, 1  ;;  %vm2715_vm4 = vcmp.lt.s32.totalorder %v11485_v47, 2 }
 0x2e8   : > { %v2910_v61 = vmul.f32 %v2909_v4, %v2907_v43  ;;  %v3058_v56 = vor.u32 %v3057_v45, %v3056_v26  ;;  %vm3068_vm14 = vcmp.lt.s32.totalorder %v11496_v50, 4  ;;  %v13459_v48 = vand.u32 2147483647, %v13434_v18 }
 0x2e9   : > { %v2993_v52 = vshll.u32 %v11520_v13, 30  ;;  %v3049_v59 = vshrl.u32 %v13157_v11, %v3048_v20  ;;  %v3064_v29 = vor.u32 %v3063_v3, %v3062_v35  ;;  %vm3067_vm7 = vcmp.lt.s32.totalorder %v11496_v50, 3 }
 0x2ea   : > { %vm11529_vm8 = vcmp.le.f32.partialorder %v13459_v48, 0.7853982  ;;  %vm2822_vm11 = vcmp.eq.s32.totalorder %v11510_v14, 2  ;;  %vm3066_vm12 = vcmp.lt.s32.totalorder %v11496_v50, 2  ;;  %v3073_v17 = vsel %vm3065_vm2, %v3052_v10, %v3055_v16  ;;  %v11542_v26 = vpop.eup %7568 }
 0x2eb   : > { %v3074_v53 = vsel %vm3068_vm14, %v3061_v41, 920167782  ;;  %v3081_v40 = vshll.u32 %v3041_v62, 8  ;;  %13462 = vst [vmem:[#allocation121_spill] sm:$0xff] %v11542_v26  ;;  %vm2819_vm10 = vcmp.eq.s32.totalorder %v11510_v14, 0  ;;  %v2913_v20 = vsub.s32 4, %v11402_v38 }
 0x2ec   : > { %v11547_v4 = vsub.s32 %v2990_v21, %v2993_v52  ;;  %v3070_v45 = vsel %vm3068_vm14, %v3058_v56, 2102212464  ;;  %v2911_v32 = vxor.u32 2147483648, %v2910_v61  ;;  %v3075_v9 = vsel %vm3067_vm7, %v3058_v56, %v3074_v53  ;;  %v13463_v62 = vld [vmem:[#allocation24_spill] sm:$0xff] }
 0x2ed   : > { %v3078_v35 = vsel %vm3068_vm14, %v3064_v29, 1326507024  ;;  %v3069_v54 = vsel %vm3065_vm2, %v3049_v59, %v3052_v10  ;;  %v3076_v21 = vsel %vm3066_vm12, %v3073_v17, %v3075_v9  ;;  %v3077_v52 = vsel %vm3065_vm2, %v3055_v16, %v3058_v56 }
 0x2ee   : > { %v2996_v48 = vsub.s32 0, %v11547_v4  ;;  %v3071_v46 = vsel %vm3067_vm7, %v3055_v16, %v3070_v45  ;;  %v3079_v53 = vsel %vm3067_vm7, %v3061_v41, %v3078_v35  ;;  %v11571_v3 = vpop.eup %7570  ;;  %vm13095_vm14 = vweird.f32 %v13411_v5 }
 0x2ef   : > { %v11567_v29 = vmul.u32.u64.low %v3081_v40, %v3076_v21  ;;  %v11568_v43 = vmul.u32.u64.high %v3081_v40, %v3076_v21, %v11567_v29  ;;  %13464 = vst [vmem:[#allocation24_spill] sm:$0xff] %v11571_v3  ;;  %v13465_v10 = vxor.u32 2147483648, %v11514_v51  ;;  %v13466_v16 = vxor.u32 2147483648, %v11462_v15 }
 0x2f0   : > { %v2914_v59 = vsel %vm2829_vm9, %v2913_v20, %v11402_v38  ;;  %v7129_v17 = vmin.u32 %v2996_v48, %v11547_v4  ;;  %vm2818_vm2 = vcmp.lt.s32.totalorder %v11510_v14, 2  ;;  %v2912_v9 = vsel %vm2829_vm9, %v2911_v32, %v2910_v61 }
 0x2f1   : > { %v2718_v56 = vsel %vm2716_vm3, %v11462_v15, %v13465_v10  ;;  %v2721_v41 = vsel %vm2719_vm15, %v13466_v16, %v11514_v51  ;;  %v3080_v35 = vsel %vm3066_vm12, %v3077_v52, %v3079_v53  ;;  %v3139_v21 = vand.u32 2139095040, %v13463_v62 }
 0x2f2   : > { %v2998_v10 = vclz %v7129_v17  ;;  %v3072_v16 = vsel %vm3066_vm12, %v3069_v54, %v3071_v46  ;;  %v11597_v33 = vmul.u32.u64.low %v3081_v40, %v3080_v35  ;;  %v11598_v38 = vmul.u32.u64.high %v3081_v40, %v3080_v35, %v11597_v33 }
 0x2f3   : > { %v13076_v20 = vxor.u32 2147483648, %v11571_v3  ;;  %v13467_v48 = vand.u32 2147483647, %v13443_v36  ;;  %vm2932_vm15 = vcmp.lt.s32.totalorder %v13443_v36, 0  ;;  %v3091_v61 = vadd.s32 1, %v11568_v43 }
 0x2f4   : > { %v3140_v32 = vshrl.u32 %v3139_v21, 23  ;;  %v2722_v50 = vsel %vm2715_vm4, %v2718_v56, %v2721_v41  ;;  %v11613_v54 = vsel %vm11529_vm8, 0, %v2914_v59  ;;  %v7130_v33 = vadd.s32 4294967294, %v2998_v10 }
 0x2f5   : > { %vm11603_vm3 = vcmp.le.f32.partialorder %v13467_v48, 0.7853982  ;;  %13470 = vst [vmem:[#allocation122_spill] sm:$0xff] %v11613_v54  ;;  %v3016_v46 = vsub.s32 4, %v11520_v13  ;;  %v2915_v52 = vsel %vm11529_vm8, %v13434_v18, %v2912_v9  ;;  %v3088_v53 = vmul.u32 %v3081_v40, %v3072_v16 }
 0x2f6   : > { %v7136_v17 = vadd.s32 4294967169, %v3140_v32  ;;  %v13471_v35 = vand.u32 2147483647, %v13463_v62  ;;  %v13472_v47 = vxor.u32 2147483648, %v11542_v26  ;;  %v2986_v41 = vadd.s32 %v11458_v8, %v11474_v58 }
 0x2f7   : > { %vm7131_vm12 = vcmp.lt.s32.totalorder %v7130_v33, 0  ;;  %vm3090_vm9 = vc.u32 %v11598_v38, %v11567_v29  ;;  %v2821_v0 = vsel %vm2819_vm10, %v11542_v26, %v13076_v20  ;;  %7572 = vcosq.f32 %v2915_v52  ;;  %v13473_v20 = vld [vmem:[#allocation26_spill] sm:$0xff] }
 0x2f8   : > { %v3143_v48 = vand.u32 8388607, %v13471_v35  ;;  %v2824_v56 = vsel %vm2822_vm11, %v13472_v47, %v11571_v3  ;;  %v3001_v40 = vsel %vm7131_vm12, 0, %v7130_v33  ;;  %v3092_v59 = vsel %vm3090_vm9, %v3091_v61, %v11568_v43 }
 0x2f9   : > { %v3146_v9 = vadd.s32 1, %v7136_v17  ;;  %v3002_v21 = vsub.s32 32, %v3001_v40  ;;  %v3003_v10 = vshll.u32 %v11547_v4, %v3001_v40  ;;  %v3006_v16 = vsub.s32 4294967266, %v3001_v40 }
 0x2fa   : > { %v3017_v8 = vsel %vm2932_vm15, %v3016_v46, %v11520_v13  ;;  %v3093_v58 = vadd.s32 %v3092_v59, %v3088_v53  ;;  %v3144_v32 = vor.u32 8388608, %v3143_v48  ;;  %v3242_v33 = vand.u32 2139095040, %v13473_v20 }
 0x2fb   : > { %vm3147_vm11 = vcmp.gt.s32.totalorder %v3146_v9, 0  ;;  %v3004_v35 = vshrl.u32 %v2986_v41, %v3002_v21  ;;  %v3007_v47 = vadd.s32 127, %v3006_v16  ;;  %v11643_v43 = vsel %vm13095_vm14, nan, %v2722_v50 }
 0x2fc   : > { %v3148_v3 = vsel %vm3147_vm11, %v3146_v9, 0  ;;  %13474 = vst [vmem:[#allocation26_spill] sm:$0xff] %v11643_v43  ;;  %v11646_v61 = vand.u32 3, %v11613_v54  ;;  %v3094_v4 = vadd.s32 536870912, %v3093_v58  ;;  %v11650_v13 = vsel %vm2818_vm2, %v2821_v0, %v2824_v56 }
 0x2fd   : > { %v3150_v17 = vand.u32 31, %v3148_v3  ;;  %v3005_v46 = vor.u32 %v3004_v35, %v3003_v10  ;;  %v3008_v53 = vshll.u32 %v3007_v47, 23  ;;  %v11654_v48 = vsel %vm11603_vm3, 0, %v3017_v8 }
 0x2fe   : > { %13475 = vst [vmem:[#allocation123_spill] sm:$0xff] %v11654_v48  ;;  %7574 = vsinq.f32 %v2915_v52  ;;  %v11656_v41 = vshrl.u32 %v3094_v4, 30  ;;  %v11659_v21 = vshll.u32 %v3144_v32, 8  ;;  %v3243_v16 = vshrl.u32 %v3242_v33, 23 }
 0x2ff   : > { %v3151_v50 = vsub.s32 32, %v3150_v17  ;;  %v3009_v59 = vor.u32 4788187, %v3008_v53  ;;  %v3012_v9 = vcvt.s32.f32 %v3005_v46  ;;  %v3149_v56 = vshrl.u32 %v3148_v3, 5 }
 0x300   : > { %v3096_v14 = vshll.u32 %v11656_v41, 30  ;;  %v3153_v0 = vshll.u32 %v13157_v11, %v3150_v17  ;;  %v3156_v52 = vshll.u32 %v13203_v63, %v3150_v17  ;;  %v3162_v47 = vshll.u32 %v13200_v7, %v3150_v17 }
 0x301   : > { %v3154_v10 = vshrl.u32 %v13203_v63, %v3151_v50  ;;  %v3010_v8 = vand.u32 2147483647, %v3009_v59  ;;  %v3157_v35 = vshrl.u32 %v13204_v25, %v3151_v50  ;;  %v3159_v32 = vshll.u32 %v13204_v25, %v3150_v17  ;;  %v11672_v3 = vpop.eup %7572 }
 0x302   : > { %v11667_v4 = vsub.s32 %v3093_v58, %v3096_v14  ;;  %v3160_v33 = vshrl.u32 %v13200_v7, %v3151_v50  ;;  %v3163_v46 = vshrl.u32 %v13201_v34, %v3151_v50  ;;  %13476 = vst [vmem:[#allocation124_spill] sm:$0xff] %v11672_v3  ;;  %v3089_v59 = vadd.s32 %v11567_v29, %v11598_v38 }
 0x303   : > { %v3013_v53 = vmul.f32 %v3012_v9, %v3010_v8  ;;  %v7140_v40 = vadd.s32 4294967169, %v3243_v16  ;;  %v13477_v43 = vand.u32 2147483647, %v13473_v20  ;;  %v3152_v14 = vshrl.u32 %v13157_v11, %v3151_v50 }
 0x304   : > { %v3099_v58 = vsub.s32 0, %v11667_v4  ;;  %v3155_v5 = vor.u32 %v3154_v10, %v3153_v0  ;;  %v3165_v15 = vshll.u32 %v13201_v34, %v3150_v17  ;;  %v3158_v19 = vor.u32 %v3157_v35, %v3156_v52 }
 0x305   : > { %v11678_v26 = vand.u32 8388607, %v13477_v43  ;;  %v3014_v51 = vxor.u32 2147483648, %v3013_v53  ;;  %v3164_v54 = vor.u32 %v3163_v46, %v3162_v47  ;;  %v3166_v9 = vshrl.u32 %v13202_v37, %v3151_v50 }
 0x306   : > { %vm13094_vm10 = vweird.f32 %v13424_v39  ;;  %v13086_v29 = vxor.u32 2147483648, %v11672_v3  ;;  %v7133_v38 = vmin.u32 %v3099_v58, %v11667_v4  ;;  %v3161_v43 = vor.u32 %v3160_v33, %v3159_v32 }
 0x307   : > { %vm3168_vm4 = vcmp.lt.s32.totalorder %v3149_v56, 1  ;;  %vm2925_vm8 = vcmp.eq.s32.totalorder %v11646_v61, 2  ;;  %v3015_v16 = vsel %vm2932_vm15, %v3014_v51, %v3013_v53  ;;  %v3167_v0 = vor.u32 %v3166_v9, %v3165_v15 }
 0x308   : > { %vm3170_vm7 = vcmp.lt.s32.totalorder %v3149_v56, 3  ;;  %vm3171_vm2 = vcmp.lt.s32.totalorder %v3149_v56, 4  ;;  %v11690_v17 = vpop.eup %7574  ;;  %v3018_v50 = vsel %vm11603_vm3, %v13443_v36, %v3015_v16  ;;  %v3101_v10 = vclz %v7133_v38 }
 0x309   : > { %13478 = vst [vmem:[#allocation125_spill] sm:$0xff] %v11690_v17  ;;  %vm3169_vm12 = vcmp.lt.s32.totalorder %v3149_v56, 2  ;;  %v3173_v8 = vsel %vm3171_vm2, %v3161_v43, 2102212464  ;;  %v3172_v52 = vsel %vm3168_vm4, %v3152_v14, %v3155_v5  ;;  %v3176_v35 = vsel %vm3168_vm4, %v3155_v5, %v3158_v19 }
 0x30a   : > { %v3177_v47 = vsel %vm3171_vm2, %v3164_v54, 920167782  ;;  %v3249_v51 = vadd.s32 1, %v7140_v40  ;;  %7576 = vcosq.f32 %v3018_v50  ;;  %v7134_v15 = vadd.s32 4294967294, %v3101_v10 }
 0x30b   : > { %v3174_v32 = vsel %vm3170_vm7, %v3158_v19, %v3173_v8  ;;  %v3178_v33 = vsel %vm3170_vm7, %v3161_v43, %v3177_v47  ;;  %7578 = vsinq.f32 %v3018_v50  ;;  %v3180_v46 = vsel %vm3168_vm4, %v3158_v19, %v3161_v43 }
 0x30c   : > { %v3179_v45 = vsel %vm3169_vm12, %v3176_v35, %v3178_v33  ;;  %v3181_v53 = vsel %vm3171_vm2, %v3167_v0, 1326507024  ;;  %vm7135_vm3 = vcmp.lt.s32.totalorder %v7134_v15, 0  ;;  %v3175_v9 = vsel %vm3169_vm12, %v3172_v52, %v3174_v32 }
 0x30d   : > { %v3182_v58 = vsel %vm3170_vm7, %v3164_v54, %v3181_v53  ;;  %v11706_v5 = vmul.u32.u64.low %v11659_v21, %v3179_v45  ;;  %v11707_v14 = vmul.u32.u64.high %v11659_v21, %v3179_v45, %v11706_v5  ;;  %v3104_v40 = vsel %vm7135_vm3, 0, %v7134_v15 }
 0x30e   : > { %v3183_v38 = vsel %vm3169_vm12, %v3180_v46, %v3182_v58  ;;  %vm3250_vm15 = vcmp.gt.s32.totalorder %v3249_v51, 0  ;;  %v3105_v16 = vsub.s32 32, %v3104_v40  ;;  %v3106_v50 = vshll.u32 %v11667_v4, %v3104_v40 }
 0x30f   : > { %v3109_v19 = vsub.s32 4294967266, %v3104_v40  ;;  %v3251_v43 = vsel %vm3250_vm15, %v3249_v51, 0  ;;  %v11714_v0 = vand.u32 3, %v11654_v48  ;;  %vm2922_vm9 = vcmp.eq.s32.totalorder %v11646_v61, 0 }
 0x310   : > { %v11717_v54 = vmul.u32.u64.low %v11659_v21, %v3183_v38  ;;  %v11718_v10 = vmul.u32.u64.high %v11659_v21, %v3183_v38, %v11717_v54  ;;  %v3253_v8 = vand.u32 31, %v3251_v43  ;;  %vm3035_vm11 = vcmp.lt.s32.totalorder %v13450_v23, 0 }
 0x311   : > { %v3107_v56 = vshrl.u32 %v3089_v59, %v3105_v16  ;;  %v3110_v52 = vadd.s32 127, %v3109_v19  ;;  %v3194_v35 = vadd.s32 1, %v11707_v14  ;;  %v11726_v4 = vsel %vm13094_vm10, nan, %v11650_v13 }
 0x312   : > { %13479 = vst [vmem:[#allocation126_spill] sm:$0xff] %v11726_v4  ;;  %v3191_v47 = vmul.u32 %v11659_v21, %v3175_v9  ;;  %v3247_v51 = vor.u32 8388608, %v11678_v26  ;;  %v3254_v15 = vsub.s32 32, %v3253_v8  ;;  %v11736_v59 = vsel %vm2925_vm8, %v13086_v29, %v11690_v17 }
 0x313   : > { %v13480_v33 = vand.u32 2147483647, %v13450_v23  ;;  %v3108_v13 = vor.u32 %v3107_v56, %v3106_v50  ;;  %v3111_v21 = vshll.u32 %v3110_v52, 23  ;;  %vm3028_vm7 = vcmp.eq.s32.totalorder %v11714_v0, 2 }
 0x314   : > { %vm3193_vm2 = vc.u32 %v11718_v10, %v11706_v5  ;;  %v3256_v26 = vshll.u32 %v13157_v11, %v3253_v8  ;;  %v3259_v46 = vshll.u32 %v13203_v63, %v3253_v8  ;;  %v3265_v53 = vshll.u32 %v13200_v7, %v3253_v8  ;;  %v11750_v58 = vpop.eup %7576 }
 0x315   : > { %vm11740_vm4 = vcmp.le.f32.partialorder %v13480_v33, 0.7853982  ;;  %13483 = vst [vmem:[#allocation127_spill] sm:$0xff] %v11750_v58  ;;  %vm3025_vm8 = vcmp.eq.s32.totalorder %v11714_v0, 0  ;;  %v3112_v40 = vor.u32 4788187, %v3111_v21  ;;  %v3115_v9 = vcvt.s32.f32 %v3108_v13  ;;  %v11755_v50 = vpop.eup %7578 }
 0x316   : > { %v3195_v38 = vsel %vm3193_vm2, %v3194_v35, %v11707_v14  ;;  %v3257_v16 = vshrl.u32 %v13203_v63, %v3254_v15  ;;  %v3119_v19 = vsub.s32 4, %v11656_v41  ;;  %v11758_v56 = vshrl.u32 %v3251_v43, 5 }
 0x317   : > { %v3196_v54 = vadd.s32 %v3195_v38, %v3191_v47  ;;  %v3260_v52 = vshrl.u32 %v13204_v25, %v3254_v15  ;;  %v3113_v33 = vand.u32 2147483647, %v3112_v40  ;;  %v3262_v29 = vshll.u32 %v13204_v25, %v3253_v8 }
 0x318   : > { %v3263_v32 = vshrl.u32 %v13200_v7, %v3254_v15  ;;  %v3266_v13 = vshrl.u32 %v13201_v34, %v3254_v15  ;;  %vm2921_vm12 = vcmp.lt.s32.totalorder %v11646_v61, 2  ;;  %v13484_v14 = vxor.u32 2147483648, %v11690_v17 }
 0x319   : > { %v3197_v47 = vadd.s32 536870912, %v3196_v54  ;;  %v3268_v43 = vshll.u32 %v13201_v34, %v3253_v8  ;;  %v3269_v21 = vshrl.u32 %v13202_v37, %v3254_v15  ;;  %vm3024_vm3 = vcmp.lt.s32.totalorder %v11714_v0, 2 }
 0x31a   : > { %v2924_v35 = vsel %vm2922_vm9, %v11672_v3, %v13484_v14  ;;  %v3116_v40 = vmul.f32 %v3115_v9, %v3113_v33  ;;  %v3258_v38 = vor.u32 %v3257_v16, %v3256_v26  ;;  %v3261_v4 = vor.u32 %v3260_v52, %v3259_v46 }
 0x31b   : > { %v3267_v39 = vor.u32 %v3266_v13, %v3265_v53  ;;  %v3120_v48 = vsel %vm3035_vm11, %v3119_v19, %v11656_v41  ;;  %v11776_v17 = vshrl.u32 %v3197_v47, 30  ;;  %vm3271_vm15 = vcmp.lt.s32.totalorder %v11758_v56, 1 }
 0x31c   : > { %v11779_v14 = vshll.u32 %v3247_v51, 8  ;;  %vm2919_vm9 = vweird.f32 %v13434_v18  ;;  %v13097_v8 = vxor.u32 2147483648, %v11750_v58  ;;  %v3117_v3 = vxor.u32 2147483648, %v3116_v40 }
 0x31d   : > { %v3264_v49 = vor.u32 %v3263_v32, %v3262_v29  ;;  %vm3274_vm2 = vcmp.lt.s32.totalorder %v11758_v56, 4  ;;  %v13098_v26 = vxor.u32 2147483648, %v11755_v50  ;;  %v3199_v46 = vshll.u32 %v11776_v17, 30 }
 0x31e   : > { %v3270_v53 = vor.u32 %v3269_v21, %v3268_v43  ;;  %vm3273_vm10 = vcmp.lt.s32.totalorder %v11758_v56, 3  ;;  %vm13112_vm14 = vweird.f32 %v13443_v36  ;;  %v3118_v41 = vsel %vm3035_vm11, %v3117_v3, %v3116_v40 }
 0x31f   : > { %vm3272_vm13 = vcmp.lt.s32.totalorder %v11758_v56, 2  ;;  %v3279_v51 = vsel %vm3271_vm15, %v3258_v38, %v3261_v4  ;;  %v3280_v29 = vsel %vm3274_vm2, %v3267_v39, 920167782  ;;  %v3121_v32 = vsel %vm11740_vm4, %v13450_v23, %v3118_v41 }
 0x320   : > { %v11800_v9 = vsel %vm11740_vm4, 0, %v3120_v48  ;;  %v11802_v16 = vsub.s32 %v3196_v54, %v3199_v46  ;;  %v3255_v3 = vshrl.u32 %v13157_v11, %v3254_v15  ;;  %v3030_v19 = vsel %vm3028_vm7, %v13097_v8, %v11755_v50 }
 0x321   : > { %7580 = vcosq.f32 %v3121_v32  ;;  %v3276_v52 = vsel %vm3274_vm2, %v3264_v49, 2102212464  ;;  %v3281_v33 = vsel %vm3273_vm10, %v3264_v49, %v3280_v29  ;;  %v3027_v48 = vsel %vm3025_vm8, %v11750_v58, %v13098_v26 }
 0x322   : > { %7582 = vsinq.f32 %v3121_v32  ;;  %v3202_v15 = vsub.s32 0, %v11802_v16  ;;  %v3282_v45 = vsel %vm3272_vm13, %v3279_v51, %v3281_v33  ;;  %v3283_v54 = vsel %vm3271_vm15, %v3261_v4, %v3264_v49  ;;  %v13485_v51 = vld [vmem:[#allocation25_spill] sm:$0xff] }
 0x323   : > { %v3284_v13 = vsel %vm3274_vm2, %v3270_v53, 1326507024  ;;  %v11827_v47 = vmul.u32.u64.low %v11779_v14, %v3282_v45  ;;  %v11828_v43 = vmul.u32.u64.high %v11779_v14, %v3282_v45, %v11827_v47  ;;  %v11832_v21 = vand.u32 3, %v11800_v9 }
 0x324   : > { %v7137_v40 = vmin.u32 %v3202_v15, %v11802_v16  ;;  %v3275_v46 = vsel %vm3271_vm15, %v3255_v3, %v3258_v38  ;;  %v3277_v41 = vsel %vm3273_vm10, %v3261_v4, %v3276_v52  ;;  %v2928_v49 = vsel %vm2921_vm12, %v2924_v35, %v11736_v59 }
 0x325   : > { %v3285_v53 = vsel %vm3273_vm10, %v3267_v39, %v3284_v13  ;;  %v13099_v29 = vand.u32 2147483647, %v13485_v51  ;;  %v3345_v32 = vand.u32 2139095040, %v13485_v51  ;;  %v3031_v33 = vsel %vm3024_vm3, %v3027_v48, %v3030_v19 }
 0x326   : > { %v13486_v15 = vand.u32 2147483647, %v13463_v62  ;;  %vm3138_vm4 = vcmp.lt.s32.totalorder %v13463_v62, 0  ;;  %v3204_v61 = vclz %v7137_v40  ;;  %v3286_v4 = vsel %vm3272_vm13, %v3283_v54, %v3285_v53  ;;  %v13492_v53 = vld [vmem:[#allocation18_spill] sm:$0xff] }
 0x327   : > { %v3278_v39 = vsel %vm3272_vm13, %v3275_v46, %v3277_v41  ;;  %v11860_v59 = vmul.u32.u64.low %v11779_v14, %v3286_v4  ;;  %v11861_v35 = vmul.u32.u64.high %v11779_v14, %v3286_v4, %v11860_v59  ;;  %v3346_v0 = vshrl.u32 %v3345_v32, 23 }
 0x328   : > { %vm11850_vm11 = vcmp.le.f32.partialorder %v13486_v15, 0.7853982  ;;  %v11865_v3 = vsel %vm2919_vm9, nan, %v2928_v49  ;;  %vm3128_vm10 = vcmp.eq.s32.totalorder %v11832_v21, 0  ;;  %v7138_v19 = vadd.s32 4294967294, %v3204_v61 }
 0x329   : > { %13489 = vst [vmem:[#allocation25_spill] sm:$0xff] %v11865_v3  ;;  %v3222_v52 = vsub.s32 4, %v11776_v17  ;;  %vm3131_vm7 = vcmp.eq.s32.totalorder %v11832_v21, 2  ;;  %v3297_v48 = vadd.s32 1, %v11828_v43  ;;  %v7144_v56 = vadd.s32 4294967169, %v3346_v0 }
 0x32a   : > { %v3349_v45 = vand.u32 8388607, %v13099_v29  ;;  %v11875_v54 = vsel %vm13112_vm14, nan, %v3031_v33  ;;  %v3192_v13 = vadd.s32 %v11706_v5, %v11718_v10  ;;  %vm7139_vm13 = vcmp.lt.s32.totalorder %v7138_v19, 0 }
 0x32b   : > { %13490 = vst [vmem:[#allocation128_spill] sm:$0xff] %v11875_v54  ;;  %v3294_v40 = vmul.u32 %v11779_v14, %v3278_v39  ;;  %v11880_v46 = vpop.eup %7580  ;;  %v3207_v41 = vsel %vm7139_vm13, 0, %v7138_v19  ;;  %vm3296_vm8 = vc.u32 %v11861_v35, %v11827_v47  ;;  %v3352_v49 = vadd.s32 1, %v7144_v56 }
 0x32c   : > { %13491 = vst [vmem:[#allocation129_spill] sm:$0xff] %v11880_v46  ;;  %v3448_v32 = vand.u32 2139095040, %v13492_v53  ;;  %v11885_v15 = vpop.eup %7582  ;;  %vm3127_vm12 = vcmp.lt.s32.totalorder %v11832_v21, 2  ;;  %v3208_v33 = vsub.s32 32, %v3207_v41  ;;  %v3209_v61 = vshll.u32 %v11802_v16, %v3207_v41 }
 0x32d   : > { %13493 = vst [vmem:[#allocation18_spill] sm:$0xff] %v11885_v15  ;;  %v3212_v5 = vsub.s32 4294967266, %v3207_v41  ;;  %v3223_v10 = vsel %vm3138_vm4, %v3222_v52, %v11776_v17  ;;  %v3298_v14 = vsel %vm3296_vm8, %v3297_v48, %v11828_v43  ;;  %v3350_v4 = vor.u32 8388608, %v3349_v45 }
 0x32e   : > { %vm3353_vm3 = vcmp.gt.s32.totalorder %v3352_v49, 0  ;;  %v13100_v39 = vand.u32 2147483647, %v13492_v53  ;;  %v13101_v59 = vxor.u32 2147483648, %v11880_v46  ;;  %v3210_v0 = vshrl.u32 %v3192_v13, %v3208_v33 }
 0x32f   : > { %v3213_v19 = vadd.s32 127, %v3212_v5  ;;  %v3299_v56 = vadd.s32 %v3298_v14, %v3294_v40  ;;  %v13102_v8 = vxor.u32 2147483648, %v11885_v15  ;;  %v11898_v16 = vsel %vm11850_vm11, 0, %v3223_v10  ;;  %v13494_v40 = vld [vmem:[#allocation27_spill] sm:$0xff] }
 0x330   : > { %v3354_v41 = vsel %vm3353_vm3, %v3352_v49, 0  ;;  %v3449_v26 = vshrl.u32 %v3448_v32, 23  ;;  %v3211_v17 = vor.u32 %v3210_v0, %v3209_v61  ;;  %v11901_v43 = vand.u32 3, %v11898_v16 }
 0x331   : > { %v3214_v52 = vshll.u32 %v3213_v19, 23  ;;  %v3300_v48 = vadd.s32 536870912, %v3299_v56  ;;  %v3356_v45 = vand.u32 31, %v3354_v41  ;;  %v11903_v29 = vshll.u32 %v3350_v4, 8 }
 0x332   : > { %v11907_v13 = vand.u32 8388607, %v13100_v39  ;;  %v11910_v33 = vadd.s32 3, %v13494_v40  ;;  %v3133_v49 = vsel %vm3131_vm7, %v13101_v59, %v11885_v15  ;;  %v3218_v61 = vcvt.s32.f32 %v3211_v17 }
 0x333   : > { %v3215_v32 = vor.u32 4788187, %v3214_v52  ;;  %v3301_v5 = vshrl.u32 %v3300_v48, 30  ;;  %v3130_v10 = vsel %vm3128_vm10, %v11880_v46, %v13102_v8  ;;  %v11922_v14 = vshrl.u32 %v3354_v41, 5 }
 0x334   : > { %v3357_v4 = vsub.s32 32, %v3356_v45  ;;  %v7148_v0 = vadd.s32 4294967169, %v3449_v26  ;;  %v3359_v39 = vshll.u32 %v13157_v11, %v3356_v45  ;;  %v3362_v54 = vshll.u32 %v13203_v63, %v3356_v45 }
 0x335   : > { %v3216_v19 = vand.u32 2147483647, %v3215_v32  ;;  %v3302_v40 = vshll.u32 %v3301_v5, 30  ;;  %v3365_v48 = vshll.u32 %v13204_v25, %v3356_v45  ;;  %v3368_v59 = vshll.u32 %v13200_v7, %v3356_v45 }
 0x336   : > { %v3360_v52 = vshrl.u32 %v13203_v63, %v3357_v4  ;;  %v3363_v17 = vshrl.u32 %v13204_v25, %v3357_v4  ;;  %v3366_v41 = vshrl.u32 %v13200_v7, %v3357_v4  ;;  %v3369_v26 = vshrl.u32 %v13201_v34, %v3357_v4 }
 0x337   : > { %v3219_v3 = vmul.f32 %v3218_v61, %v3216_v19  ;;  %v11930_v8 = vsub.s32 %v3299_v56, %v3302_v40  ;;  %v3134_v32 = vsel %vm3127_vm12, %v3130_v10, %v3133_v49  ;;  %v3295_v46 = vadd.s32 %v11827_v47, %v11861_v35 }
 0x338   : > { %v3453_v15 = vor.u32 8388608, %v11907_v13  ;;  %v3455_v36 = vadd.s32 1, %v7148_v0  ;;  %vm13111_vm15 = vweird.f32 %v13450_v23  ;;  %vm3241_vm2 = vcmp.lt.s32.totalorder %v13473_v20, 0 }
 0x339   : > { %v3220_v18 = vxor.u32 2147483648, %v3219_v3  ;;  %v3305_v56 = vsub.s32 0, %v11930_v8  ;;  %v3358_v61 = vshrl.u32 %v13157_v11, %v3357_v4  ;;  %v3361_v19 = vor.u32 %v3360_v52, %v3359_v39 }
 0x33a   : > { %v3364_v40 = vor.u32 %v3363_v17, %v3362_v54  ;;  %v3370_v58 = vor.u32 %v3369_v26, %v3368_v59  ;;  %v3371_v21 = vshll.u32 %v13201_v34, %v3356_v45  ;;  %v3372_v49 = vshrl.u32 %v13202_v37, %v3357_v4 }
 0x33b   : > { %v3221_v47 = vsel %vm3138_vm4, %v3220_v18, %v3219_v3  ;;  %v7141_v35 = vmin.u32 %v3305_v56, %v11930_v8  ;;  %v3367_v13 = vor.u32 %v3366_v41, %v3365_v48  ;;  %vm3374_vm10 = vcmp.lt.s32.totalorder %v11922_v14, 1 }
 0x33c   : > { %v3224_v10 = vsel %vm11850_vm11, %v13463_v62, %v3221_v47  ;;  %v13495_v39 = vand.u32 2147483647, %v13473_v20  ;;  %v3325_v59 = vsub.s32 4, %v3301_v5  ;;  %v3373_v45 = vor.u32 %v3372_v49, %v3371_v21 }
 0x33d   : > { %vm3376_vm13 = vcmp.lt.s32.totalorder %v11922_v14, 3  ;;  %7584 = vcosq.f32 %v3224_v10  ;;  %v3307_v18 = vclz %v7141_v35  ;;  %vm3375_vm4 = vcmp.lt.s32.totalorder %v11922_v14, 2 }
 0x33e   : > { %vm11954_vm7 = vcmp.le.f32.partialorder %v13495_v39, 0.7853982  ;;  %vm3377_vm8 = vcmp.lt.s32.totalorder %v11922_v14, 4  ;;  %7586 = vsinq.f32 %v3224_v10  ;;  %v3382_v38 = vsel %vm3374_vm10, %v3361_v19, %v3364_v40 }
 0x33f   : > { %v3379_v3 = vsel %vm3377_vm8, %v3367_v13, 2102212464  ;;  %v3383_v4 = vsel %vm3377_vm8, %v3370_v58, 920167782  ;;  %v7142_v0 = vadd.s32 4294967294, %v3307_v18  ;;  %v3378_v52 = vsel %vm3374_vm10, %v3358_v61, %v3361_v19 }
 0x340   : > { %v3384_v17 = vsel %vm3376_vm13, %v3367_v13, %v3383_v4  ;;  %v3386_v48 = vsel %vm3374_vm10, %v3364_v40, %v3367_v13  ;;  %v3380_v41 = vsel %vm3376_vm13, %v3364_v40, %v3379_v3  ;;  %v3387_v56 = vsel %vm3377_vm8, %v3373_v45, 1326507024 }
 0x341   : > { %v3385_v26 = vsel %vm3375_vm4, %v3382_v38, %v3384_v17  ;;  %vm3456_vm11 = vcmp.gt.s32.totalorder %v3455_v36, 0  ;;  %vm7143_vm12 = vcmp.lt.s32.totalorder %v7142_v0, 0  ;;  %v3388_v21 = vsel %vm3376_vm13, %v3370_v58, %v3387_v56 }
 0x342   : > { %v11976_v61 = vmul.u32.u64.low %v11903_v29, %v3385_v26  ;;  %v11977_v19 = vmul.u32.u64.high %v11903_v29, %v3385_v26, %v11976_v61  ;;  %v3310_v49 = vsel %vm7143_vm12, 0, %v7142_v0  ;;  %v3326_v47 = vsel %vm3241_vm2, %v3325_v59, %v3301_v5 }
 0x343   : > { %v3389_v40 = vsel %vm3375_vm4, %v3386_v48, %v3388_v21  ;;  %v3457_v35 = vsel %vm3456_vm11, %v3455_v36, 0  ;;  %vm3234_vm3 = vcmp.eq.s32.totalorder %v11901_v43, 2  ;;  %v3311_v13 = vsub.s32 32, %v3310_v49 }
 0x344   : > { %v3312_v10 = vshll.u32 %v11930_v8, %v3310_v49  ;;  %v3315_v39 = vsub.s32 4294967266, %v3310_v49  ;;  %v3381_v58 = vsel %vm3375_vm4, %v3378_v52, %v3380_v41  ;;  %v11990_v45 = vsel %vm13111_vm15, nan, %v3134_v32 }
 0x345   : > { %13498 = vst [vmem:[#allocation27_spill] sm:$0xff] %v11990_v45  ;;  %vm3231_vm10 = vcmp.eq.s32.totalorder %v11901_v43, 0  ;;  %v11994_v5 = vmul.u32.u64.low %v11903_v29, %v3389_v40  ;;  %v11995_v59 = vmul.u32.u64.high %v11903_v29, %v3389_v40, %v11994_v5  ;;  %v3459_v36 = vand.u32 31, %v3457_v35 }
 0x346   : > { %v3313_v18 = vshrl.u32 %v3295_v46, %v3311_v13  ;;  %v3316_v3 = vadd.s32 127, %v3315_v39  ;;  %v11999_v8 = vsel %vm11954_vm7, 0, %v3326_v47  ;;  %v3400_v14 = vadd.s32 1, %v11977_v19 }
 0x347   : > { %v12003_v38 = vand.u32 3, %v11999_v8  ;;  %v3397_v32 = vmul.u32 %v11903_v29, %v3381_v58  ;;  %v3460_v4 = vsub.s32 32, %v3459_v36  ;;  %v12006_v0 = vshll.u32 %v3453_v15, 8  ;;  %v12008_v52 = vpop.eup %7584 }
 0x348   : > { %v3314_v17 = vor.u32 %v3313_v18, %v3312_v10  ;;  %v3317_v48 = vshll.u32 %v3316_v3, 23  ;;  %v12010_v46 = vshrl.u32 %v3457_v35, 5  ;;  %v12013_v41 = vand.u32 3, %v11910_v33  ;;  %v12015_v26 = vpop.eup %7586 }
 0x349   : > { %vm3399_vm13 = vc.u32 %v11995_v59, %v11976_v61  ;;  %v3462_v56 = vshll.u32 %v13157_v11, %v3459_v36  ;;  %v3465_v29 = vshll.u32 %v13203_v63, %v3459_v36  ;;  %v3468_v15 = vshll.u32 %v13204_v25, %v3459_v36 }
 0x34a   : > { %v3318_v21 = vor.u32 4788187, %v3317_v48  ;;  %v3321_v49 = vcvt.s32.f32 %v3314_v17  ;;  %v3401_v47 = vsel %vm3399_vm13, %v3400_v14, %v11977_v19  ;;  %v3471_v40 = vshll.u32 %v13200_v7, %v3459_v36 }
 0x34b   : > { %v13115_v33 = vxor.u32 2147483648, %v12008_v52  ;;  %vm3344_vm4 = vcmp.lt.s32.totalorder %v13485_v51, 0  ;;  %v3402_v35 = vadd.s32 %v3401_v47, %v3397_v32  ;;  %v3463_v13 = vshrl.u32 %v13203_v63, %v3460_v4 }
 0x34c   : > { %v3466_v10 = vshrl.u32 %v13204_v25, %v3460_v4  ;;  %vm3230_vm8 = vcmp.lt.s32.totalorder %v11901_v43, 2  ;;  %v13117_v39 = vxor.u32 2147483648, %v12015_v26  ;;  %v3319_v58 = vand.u32 2147483647, %v3318_v21 }
 0x34d   : > { %v3469_v5 = vshrl.u32 %v13200_v7, %v3460_v4  ;;  %v3472_v19 = vshrl.u32 %v13201_v34, %v3460_v4  ;;  %v3403_v18 = vadd.s32 536870912, %v3402_v35  ;;  %v3461_v3 = vshrl.u32 %v13157_v11, %v3460_v4 }
 0x34e   : > { %v3474_v14 = vshll.u32 %v13201_v34, %v3459_v36  ;;  %vm3477_vm11 = vcmp.lt.s32.totalorder %v12010_v46, 1  ;;  %v3322_v32 = vmul.f32 %v3321_v49, %v3319_v58  ;;  %v13499_v63 = vand.u32 2147483647, %v13485_v51 }
 0x34f   : > { %v3464_v17 = vor.u32 %v3463_v13, %v3462_v56  ;;  %v3467_v48 = vor.u32 %v3466_v10, %v3465_v29  ;;  %v3473_v21 = vor.u32 %v3472_v19, %v3471_v40  ;;  %v3236_v11 = vsel %vm3234_vm3, %v13115_v33, %v12015_v26  ;;  %v13520_v33 = vld [vmem:[#allocation49_spill] sm:$0xff] }
 0x350   : > { %vm12037_vm12 = vcmp.le.f32.partialorder %v13499_v63, 0.7853982  ;;  %v3404_v7 = vshrl.u32 %v3403_v18, 30  ;;  %v3470_v34 = vor.u32 %v3469_v5, %v3468_v15  ;;  %v3475_v36 = vshrl.u32 %v13202_v37, %v3460_v4 }
 0x351   : > { %vm13113_vm13 = vweird.f32 %v13463_v62  ;;  %v3233_v56 = vsel %vm3231_vm10, %v12008_v52, %v13117_v39  ;;  %v3323_v29 = vxor.u32 2147483648, %v3322_v32  ;;  %vm3479_vm15 = vcmp.lt.s32.totalorder %v12010_v46, 3  ;;  %v13522_v39 = vld [vmem:[#allocation15_spill] sm:$0xff] }
 0x352   : > { %vm3480_vm14 = vcmp.lt.s32.totalorder %v12010_v46, 4  ;;  %v3405_v49 = vshll.u32 %v3404_v7, 30  ;;  %v3428_v47 = vsub.s32 4, %v3404_v7  ;;  %v3476_v40 = vor.u32 %v3475_v36, %v3474_v14 }
 0x353   : > { %v3482_v15 = vsel %vm3480_vm14, %v3470_v34, 2102212464  ;;  %v3324_v37 = vsel %vm3241_vm2, %v3323_v29, %v3322_v32  ;;  %vm3478_vm3 = vcmp.lt.s32.totalorder %v12010_v46, 2  ;;  %v3485_v4 = vsel %vm3477_vm11, %v3464_v17, %v3467_v48 }
 0x354   : > { %v3486_v13 = vsel %vm3480_vm14, %v3473_v21, 920167782  ;;  %v3327_v10 = vsel %vm11954_vm7, %v13473_v20, %v3324_v37  ;;  %v12067_v58 = vsub.s32 %v3402_v35, %v3405_v49  ;;  %v3481_v5 = vsel %vm3477_vm11, %v3461_v3, %v3464_v17 }
 0x355   : > { %v3483_v19 = vsel %vm3479_vm15, %v3467_v48, %v3482_v15  ;;  %7588 = vcosq.f32 %v3327_v10  ;;  %v3429_v18 = vsel %vm3344_vm4, %v3428_v47, %v3404_v7  ;;  %v3487_v14 = vsel %vm3479_vm15, %v3470_v34, %v3486_v13  ;;  %v13504_v47 = vld [vmem:[#allocation23_spill] sm:$0xff] }
 0x356   : > { %v3490_v32 = vsel %vm3480_vm14, %v3476_v40, 1326507024  ;;  %7590 = vsinq.f32 %v3327_v10  ;;  %v3408_v54 = vsub.s32 0, %v12067_v58  ;;  %v3488_v35 = vsel %vm3478_vm3, %v3485_v4, %v3487_v14  ;;  %v13506_v4 = vld [vmem:[#allocation31_spill] sm:$0xff] }
 0x357   : > { %v3489_v3 = vsel %vm3477_vm11, %v3467_v48, %v3470_v34  ;;  %v3398_v63 = vadd.s32 %v11976_v61, %v11995_v59  ;;  %v3491_v17 = vsel %vm3479_vm15, %v3473_v21, %v3490_v32  ;;  %v3237_v29 = vsel %vm3230_vm8, %v3233_v56, %v3236_v11  ;;  %v13502_v34 = vld [vmem:[#allocation29_spill] sm:$0xff] }
 0x358   : > { %v12089_v7 = vmul.u32.u64.low %v12006_v0, %v3488_v35  ;;  %v12090_v36 = vmul.u32.u64.high %v12006_v0, %v3488_v35, %v12089_v7  ;;  %vm3334_vm14 = vcmp.eq.s32.totalorder %v12003_v38, 0  ;;  %vm3337_vm2 = vcmp.eq.s32.totalorder %v12003_v38, 2  ;;  %v13509_v35 = vld [vmem:[#allocation20_spill] sm:$0xff] }
 0x359   : > { %v7145_v49 = vmin.u32 %v3408_v54, %v12067_v58  ;;  %v12099_v48 = vsel %vm12037_vm12, 0, %v3429_v18  ;;  %v3484_v61 = vsel %vm3478_vm3, %v3481_v5, %v3483_v19  ;;  %v3492_v59 = vsel %vm3478_vm3, %v3489_v3, %v3491_v17  ;;  %v13510_v17 = vld [vmem:[#allocation55_spill] sm:$0xff] }
 0x35a   : > { %vm3643_vm15 = vcmp.lt.s32.totalorder %v12013_v41, 2  ;;  %vm3644_vm7 = vcmp.eq.s32.totalorder %v12013_v41, 0  ;;  %vm3647_vm10 = vcmp.eq.s32.totalorder %v12013_v41, 2  ;;  %v13503_v56 = vxor.u32 2147483648, %v13502_v34  ;;  %v13507_v41 = vld [vmem:[#allocation48_spill] sm:$0xff] }
 0x35b   : > { %v3410_v43 = vclz %v7145_v49  ;;  %v12109_v21 = vmul.u32.u64.low %v12006_v0, %v3492_v59  ;;  %v12110_v11 = vmul.u32.u64.high %v12006_v0, %v3492_v59, %v12109_v21  ;;  %vm3333_vm8 = vcmp.lt.s32.totalorder %v12003_v38, 2  ;;  %v13519_v59 = vld [vmem:[#allocation56_spill] sm:$0xff] }
 0x35c   : > { %v3646_v40 = vsel %vm3644_vm7, %v13504_v47, %v13503_v56  ;;  %v3503_v46 = vadd.s32 1, %v12090_v36  ;;  %v13505_v15 = vxor.u32 2147483648, %v13504_v47  ;;  %v3745_v13 = vadd.s32 3, %v13506_v4 }
 0x35d   : > { %v3849_v10 = vadd.s32 3, %v13507_v41  ;;  %v12124_v5 = vsel %vm13113_vm13, nan, %v3237_v29  ;;  %v7146_v19 = vadd.s32 4294967294, %v3410_v43  ;;  %v12127_v18 = vand.u32 3, %v12099_v48 }
 0x35e   : > { %v3649_v37 = vsel %vm3647_vm10, %v13505_v15, %v13502_v34  ;;  %13508 = vst [vmem:[#allocation29_spill] sm:$0xff] %v12124_v5  ;;  %v3500_v32 = vmul.u32 %v12006_v0, %v3484_v61  ;;  %v3746_v54 = vand.u32 3, %v3745_v13  ;;  %v3953_v3 = vadd.s32 3, %v13509_v35  ;;  %v13512_v13 = vld [vmem:[#allocation14_spill] sm:$0xff]  ;;  %v13556_v5 = vld [vmem:[#allocation32_spill] sm:$0xff] }
 0x35f   : > { %v3650_v14 = vsel %vm3643_vm15, %v3646_v40, %v3649_v37  ;;  %v4057_v49 = vadd.s32 3, %v13510_v17  ;;  %vm7147_vm11 = vcmp.lt.s32.totalorder %v7146_v19, 0  ;;  %vm3502_vm3 = vc.u32 %v12110_v11, %v12089_v7  ;;  %v12137_v43 = vpop.eup %7588 }
 0x360   : > { %v12135_v21 = vsel %vm344_vm5, nan, %v3650_v14  ;;  %v3850_v29 = vand.u32 3, %v3849_v10  ;;  %v3413_v34 = vsel %vm7147_vm11, 0, %v7146_v19  ;;  %v3504_v56 = vsel %vm3502_vm3, %v3503_v46, %v12090_v36  ;;  %v12140_v0 = vpop.eup %7590  ;;  %v13514_v36 = vld [vmem:[#allocation30_spill] sm:$0xff] }
 0x361   : > { %vm3747_vm15 = vcmp.lt.s32.totalorder %v3746_v54, 2  ;;  %vm3748_vm7 = vcmp.eq.s32.totalorder %v3746_v54, 0  ;;  %vm3331_vm10 = vweird.f32 %v13473_v20  ;;  %v13116_v61 = vxor.u32 2147483648, %v12137_v43 }
 0x362   : > { %v3414_v47 = vsub.s32 32, %v3413_v34  ;;  %v3415_v40 = vshll.u32 %v12067_v58, %v3413_v34  ;;  %v3418_v15 = vsub.s32 4294967266, %v3413_v34  ;;  %vm3447_vm5 = vcmp.lt.s32.totalorder %v13492_v53, 0 }
 0x363   : > { %v13114_v37 = vxor.u32 2147483648, %v12140_v0  ;;  %v3505_v4 = vadd.s32 %v3504_v56, %v3500_v32  ;;  %v13513_v41 = vxor.u32 2147483648, %v13512_v13  ;;  %vm3751_vm11 = vcmp.eq.s32.totalorder %v3746_v54, 2 }
 0x364   : > { %v3416_v10 = vshrl.u32 %v3398_v63, %v3414_v47  ;;  %v3419_v19 = vadd.s32 127, %v3418_v15  ;;  %v13515_v14 = vand.u32 2147483647, %v13492_v53  ;;  %v13518_v58 = vxor.u32 2147483648, %v13514_v36 }
 0x365   : > { %v3750_v46 = vsel %vm3748_vm7, %v13514_v36, %v13513_v41  ;;  %v4161_v34 = vadd.s32 3, %v13519_v59  ;;  %v3336_v32 = vsel %vm3334_vm14, %v12137_v43, %v13114_v37  ;;  %v3339_v63 = vsel %vm3337_vm2, %v13116_v61, %v12140_v0 }
 0x366   : > { %vm12152_vm3 = vcmp.le.f32.partialorder %v13515_v14, 0.7853982  ;;  %v3753_v17 = vsel %vm3751_vm11, %v13518_v58, %v13512_v13  ;;  %v3506_v56 = vadd.s32 536870912, %v3505_v4  ;;  %v3954_v47 = vand.u32 3, %v3953_v3 }
 0x367   : > { %v3417_v15 = vor.u32 %v3416_v10, %v3415_v40  ;;  %v3420_v41 = vshll.u32 %v3419_v19, 23  ;;  %v12171_v13 = vadd.s32 %v12089_v7, %v12110_v11  ;;  %v3754_v36 = vsel %vm3747_vm15, %v3750_v46, %v3753_v17  ;;  %v13534_v46 = vld [vmem:[#allocation57_spill] sm:$0xff] }
 0x368   : > { %v3507_v14 = vshrl.u32 %v3506_v56, 30  ;;  %vm3851_vm7 = vcmp.lt.s32.totalorder %v3850_v29, 2  ;;  %vm3852_vm11 = vcmp.eq.s32.totalorder %v3850_v29, 0  ;;  %vm3855_vm13 = vcmp.eq.s32.totalorder %v3850_v29, 2 }
 0x369   : > { %v3340_v58 = vsel %vm3333_vm8, %v3336_v32, %v3339_v63  ;;  %v3421_v59 = vor.u32 4788187, %v3420_v41  ;;  %v3424_v37 = vcvt.s32.f32 %v3417_v15  ;;  %v13521_v61 = vxor.u32 2147483648, %v13520_v33  ;;  %v13527_v63 = vld [vmem:[#allocation50_spill] sm:$0xff] }
 0x36a   : > { %v3508_v40 = vshll.u32 %v3507_v14, 30  ;;  %v3531_v10 = vsub.s32 4, %v3507_v14  ;;  %v13523_v7 = vxor.u32 2147483648, %v13522_v39  ;;  %vm3955_vm14 = vcmp.lt.s32.totalorder %v3954_v47, 2 }
 0x36b   : > { %v3854_v3 = vsel %vm3852_vm11, %v13522_v39, %v13521_v61  ;;  %v3422_v54 = vand.u32 2147483647, %v3421_v59  ;;  %v12184_v19 = vsel %vm447_vm6, nan, %v3754_v36  ;;  %vm3956_vm2 = vcmp.eq.s32.totalorder %v3954_v47, 0  ;;  %v13525_v61 = vld [vmem:[#allocation53_spill] sm:$0xff] }
 0x36c   : > { %v3857_v11 = vsel %vm3855_vm13, %v13523_v7, %v13520_v33  ;;  %vm3959_vm8 = vcmp.eq.s32.totalorder %v3954_v47, 2  ;;  %v12186_v38 = vsub.s32 %v3505_v4, %v3508_v40  ;;  %v3532_v17 = vsel %vm3447_vm5, %v3531_v10, %v3507_v14 }
 0x36d   : > { %v13526_v32 = vxor.u32 2147483648, %v13525_v61  ;;  %v13528_v33 = vxor.u32 2147483648, %v13527_v63  ;;  %v3425_v15 = vmul.f32 %v3424_v37, %v3422_v54  ;;  %v3858_v41 = vsel %vm3851_vm7, %v3854_v3, %v3857_v11  ;;  %v13532_v11 = vld [vmem:[#allocation58_spill] sm:$0xff]  ;;  %v13542_v3 = vld [vmem:[#allocation60_spill] sm:$0xff] }
 0x36e   : > { %v4058_v59 = vand.u32 3, %v4057_v49  ;;  %v12199_v4 = vsel %vm3331_vm10, nan, %v3340_v58  ;;  %v3511_v47 = vsub.s32 0, %v12186_v38  ;;  %v12204_v14 = vsel %vm12152_vm3, 0, %v3532_v17 }
 0x36f   : > { %v3958_v56 = vsel %vm3956_vm2, %v13527_v63, %v13526_v32  ;;  %v3961_v39 = vsel %vm3959_vm8, %v13528_v33, %v13525_v61  ;;  %13529 = vst [vmem:[#allocation23_spill] sm:$0xff] %v12199_v4  ;;  %v4162_v40 = vand.u32 3, %v4161_v34  ;;  %v3426_v10 = vxor.u32 2147483648, %v3425_v15 }
 0x370   : > { %v3962_v36 = vsel %vm3955_vm14, %v3958_v56, %v3961_v39  ;;  %vm4059_vm6 = vcmp.lt.s32.totalorder %v4058_v59, 2  ;;  %vm4060_vm13 = vcmp.eq.s32.totalorder %v4058_v59, 0  ;;  %vm4063_vm15 = vcmp.eq.s32.totalorder %v4058_v59, 2  ;;  %v13536_v39 = vld [vmem:[#allocation22_spill] sm:$0xff]  ;;  %v13540_v59 = vld [vmem:[#allocation59_spill] sm:$0xff] }
 0x371   : > { %v7149_v29 = vmin.u32 %v3511_v47, %v12186_v38  ;;  %v12208_v37 = vand.u32 3, %v12204_v14  ;;  %v12212_v58 = vsel %vm550_vm0, nan, %v3858_v41  ;;  %v12216_v7 = vsel %vm653_vm1, nan, %v3962_v36  ;;  %v13538_v41 = vld [vmem:[#allocation61_spill] sm:$0xff] }
 0x372   : > { %v3427_v34 = vsel %vm3344_vm4, %v3426_v10, %v3425_v15  ;;  %v13533_v54 = vxor.u32 2147483648, %v13532_v11  ;;  %v13535_v61 = vxor.u32 2147483648, %v13534_v46  ;;  %vm4163_vm7 = vcmp.lt.s32.totalorder %v4162_v40, 2 }
 0x373   : > { %v3430_v63 = vsel %vm12037_vm12, %v13485_v51, %v3427_v34  ;;  %v3513_v56 = vclz %v7149_v29  ;;  %vm4164_vm0 = vcmp.eq.s32.totalorder %v4162_v40, 0  ;;  %vm13537_vm1 = vweird.f32 %v13536_v39 }
 0x374   : > { %v4062_v17 = vsel %vm4060_vm13, %v13534_v46, %v13533_v54  ;;  %v4065_v32 = vsel %vm4063_vm15, %v13535_v61, %v13532_v11  ;;  %7592 = vcosq.f32 %v3430_v63  ;;  %v13539_v36 = vxor.u32 2147483648, %v13538_v41  ;;  %v13543_v11 = vld [vmem:[#allocation67_spill] sm:$0xff]  ;;  %v13544_v46 = vld [vmem:[#allocation70_spill] sm:$0xff] }
 0x375   : > { %v4066_v33 = vsel %vm4059_vm6, %v4062_v17, %v4065_v32  ;;  %vm4167_vm4 = vcmp.eq.s32.totalorder %v4162_v40, 2  ;;  %7594 = vsinq.f32 %v3430_v63  ;;  %v7150_v10 = vadd.s32 4294967294, %v3513_v56  ;;  %v13545_v61 = vld [vmem:[#allocation71_spill] sm:$0xff]  ;;  %v13546_v40 = vld [vmem:[#allocation28_spill] sm:$0xff] }
 0x376   : > { %v12231_v15 = vsel %vm13537_vm1, nan, %v4066_v33  ;;  %v4166_v47 = vsel %vm4164_vm0, %v13540_v59, %v13539_v36  ;;  %v13541_v49 = vxor.u32 2147483648, %v13540_v59  ;;  %v4265_v29 = vadd.s32 3, %v13542_v3  ;;  %v13548_v33 = vld [vmem:[#allocation76_spill] sm:$0xff] }
 0x377   : > { %vm3440_vm12 = vcmp.eq.s32.totalorder %v12127_v18, 2  ;;  %v4369_v54 = vadd.s32 3, %v13543_v11  ;;  %v4473_v17 = vadd.s32 3, %v13544_v46  ;;  %v4577_v32 = vadd.s32 3, %v13545_v61  ;;  %v13549_v11 = vld [vmem:[#allocation63_spill] sm:$0xff] }
 0x378   : > { %v4169_v25 = vsel %vm4167_vm4, %v13541_v49, %v13538_v41  ;;  %vm3437_vm11 = vcmp.eq.s32.totalorder %v12127_v18, 0  ;;  %vm7151_vm14 = vcmp.lt.s32.totalorder %v7150_v10, 0  ;;  %vm13547_vm2 = vweird.f32 %v13546_v40  ;;  %v13553_v40 = vld [vmem:[#allocation34_spill] sm:$0xff] }
 0x379   : > { %v4170_v34 = vsel %vm4163_vm7, %v4166_v47, %v4169_v25  ;;  %v4266_v56 = vand.u32 3, %v4265_v29  ;;  %v4681_v39 = vadd.s32 3, %v13548_v33  ;;  %vm3436_vm8 = vcmp.lt.s32.totalorder %v12127_v18, 2  ;;  %v13555_v33 = vld [vmem:[#allocation69_spill] sm:$0xff] }
 0x37a   : > { %v12247_v63 = vsel %vm13547_vm2, nan, %v4170_v34  ;;  %v3516_v41 = vsel %vm7151_vm14, 0, %v7150_v10  ;;  %v4370_v36 = vand.u32 3, %v4369_v54  ;;  %v4474_v59 = vand.u32 3, %v4473_v17  ;;  %v13551_v10 = vld [vmem:[#allocation62_spill] sm:$0xff] }
 0x37b   : > { %v4578_v47 = vand.u32 3, %v4577_v32  ;;  %vm3434_vm6 = vweird.f32 %v13485_v51  ;;  %v3517_v49 = vsub.s32 32, %v3516_v41  ;;  %v3518_v25 = vshll.u32 %v12186_v38, %v3516_v41 }
 0x37c   : > { %v3521_v3 = vsub.s32 4294967266, %v3516_v41  ;;  %vm4267_vm13 = vcmp.lt.s32.totalorder %v4266_v56, 2  ;;  %vm4268_vm15 = vcmp.eq.s32.totalorder %v4266_v56, 0  ;;  %vm4271_vm7 = vcmp.eq.s32.totalorder %v4266_v56, 2 }
 0x37d   : > { %vm4371_vm0 = vcmp.lt.s32.totalorder %v4370_v36, 2  ;;  %vm4372_vm1 = vcmp.eq.s32.totalorder %v4370_v36, 0  ;;  %v3519_v29 = vshrl.u32 %v12171_v13, %v3517_v49  ;;  %v13550_v46 = vxor.u32 2147483648, %v13549_v11 }
 0x37e   : > { %v3522_v34 = vadd.s32 127, %v3521_v3  ;;  %v13552_v17 = vxor.u32 2147483648, %v13551_v10  ;;  %v13554_v38 = vxor.u32 2147483648, %v13553_v40  ;;  %vm4375_vm4 = vcmp.eq.s32.totalorder %v4370_v36, 2 }
 0x37f   : > { %v4270_v54 = vsel %vm4268_vm15, %v13551_v10, %v13550_v46  ;;  %vm4475_vm14 = vcmp.lt.s32.totalorder %v4474_v59, 2  ;;  %v3520_v56 = vor.u32 %v3519_v29, %v3518_v25  ;;  %vm13557_vm2 = vweird.f32 %v13556_v5  ;;  %v12270_v46 = vpop.eup %7592 }
 0x380   : > { %v4273_v61 = vsel %vm4271_vm7, %v13552_v17, %v13549_v11  ;;  %v4374_v41 = vsel %vm4372_vm1, %v13555_v33, %v13554_v38  ;;  %v3523_v4 = vshll.u32 %v3522_v34, 23  ;;  %v13558_v49 = vxor.u32 2147483648, %v13555_v33  ;;  %v12272_v10 = vpop.eup %7594  ;;  %v13559_v34 = vld [vmem:[#allocation17_spill] sm:$0xff] }
 0x381   : > { %v4274_v32 = vsel %vm4267_vm13, %v4270_v54, %v4273_v61  ;;  %vm4476_vm13 = vcmp.eq.s32.totalorder %v4474_v59, 0  ;;  %vm4479_vm15 = vcmp.eq.s32.totalorder %v4474_v59, 2  ;;  %vm4579_vm7 = vcmp.lt.s32.totalorder %v4578_v47, 2  ;;  %v13561_v17 = vld [vmem:[#allocation73_spill] sm:$0xff] }
 0x382   : > { %v12265_v13 = vsel %vm13557_vm2, nan, %v4274_v32  ;;  %v4377_v3 = vsel %vm4375_vm4, %v13558_v49, %v13553_v40  ;;  %v13118_v36 = vxor.u32 2147483648, %v12270_v46  ;;  %v3524_v25 = vor.u32 4788187, %v3523_v4  ;;  %v13563_v32 = vld [vmem:[#allocation72_spill] sm:$0xff]  ;;  %v13565_v49 = vld [vmem:[#allocation75_spill] sm:$0xff] }
 0x383   : > { %v4378_v11 = vsel %vm4371_vm0, %v4374_v41, %v4377_v3  ;;  %v3527_v29 = vcvt.s32.f32 %v3520_v56  ;;  %vm13560_vm1 = vweird.f32 %v13559_v34  ;;  %v13119_v54 = vxor.u32 2147483648, %v12272_v10 }
 0x384   : > { %v12277_v5 = vsel %vm13560_vm1, nan, %v4378_v11  ;;  %v13562_v61 = vxor.u32 2147483648, %v13561_v17  ;;  %v13564_v38 = vxor.u32 2147483648, %v13563_v32  ;;  %vm4580_vm0 = vcmp.eq.s32.totalorder %v4578_v47, 0  ;;  %v13567_v11 = vld [vmem:[#allocation74_spill] sm:$0xff] }
 0x385   : > { %v3442_v4 = vsel %vm3440_vm12, %v13118_v36, %v12272_v10  ;;  %v3525_v41 = vand.u32 2147483647, %v3524_v25  ;;  %v13566_v3 = vxor.u32 2147483648, %v13565_v49  ;;  %vm4583_vm2 = vcmp.eq.s32.totalorder %v4578_v47, 2 }
 0x386   : > { %v4478_v40 = vsel %vm4476_vm13, %v13563_v32, %v13562_v61  ;;  %v4481_v33 = vsel %vm4479_vm15, %v13564_v38, %v13561_v17  ;;  %v3439_v17 = vsel %vm3437_vm11, %v12270_v46, %v13119_v54  ;;  %v13568_v61 = vld [vmem:[#allocation19_spill] sm:$0xff]  ;;  %v4682_v38 = vand.u32 3, %v4681_v39 }
 0x387   : > { %v4482_v56 = vsel %vm4475_vm14, %v4478_v40, %v4481_v33  ;;  %v4582_v34 = vsel %vm4580_vm0, %v13567_v11, %v13566_v3  ;;  %vm13569_vm4 = vweird.f32 %v13568_v61  ;;  %v3443_v59 = vsel %vm3436_vm8, %v3439_v17, %v3442_v4  ;;  %v13571_v3 = vld [vmem:[#allocation80_spill] sm:$0xff]  ;;  %v13573_v39 = vld [vmem:[#allocation79_spill] sm:$0xff]  ;;  %v13575_v4 = vld [vmem:[#allocation78_spill] sm:$0xff] }
 0x388   : > { %v12302_v32 = vsel %vm13569_vm4, nan, %v4482_v56  ;;  %v3528_v25 = vmul.f32 %v3527_v29, %v3525_v41  ;;  %v13570_v40 = vxor.u32 2147483648, %v13567_v11  ;;  %v4785_v36 = vadd.s32 3, %v13571_v3 }
 0x389   : > { %v12312_v45 = vsel %vm3434_vm6, nan, %v3443_v59  ;;  %vm4683_vm12 = vcmp.lt.s32.totalorder %v4682_v38, 2  ;;  %vm4684_vm11 = vcmp.eq.s32.totalorder %v4682_v38, 0  ;;  %vm13572_vm14 = vweird.f32 %v13273_v28 }
 0x38a   : > { %v4585_v33 = vsel %vm4583_vm2, %v13570_v40, %v13565_v49  ;;  %v3529_v56 = vxor.u32 2147483648, %v3528_v25  ;;  %v13574_v29 = vxor.u32 2147483648, %v13573_v39  ;;  %vm4687_vm8 = vcmp.eq.s32.totalorder %v4682_v38, 2 }
 0x38b   : > { %v4586_v61 = vsel %vm4579_vm7, %v4582_v34, %v4585_v33  ;;  %v13576_v49 = vxor.u32 2147483648, %v13575_v4  ;;  %v4786_v17 = vand.u32 3, %v4785_v36  ;;  %v4889_v47 = vadd.s32 3, %v10290_v42  ;;  %v13577_v34 = vld [vmem:[#allocation87_spill] sm:$0xff]  ;;  %v13578_v33 = vld [vmem:[#allocation90_spill] sm:$0xff] }
 0x38c   : > { %v12317_v18 = vsel %vm13572_vm14, nan, %v4586_v61  ;;  %v4686_v41 = vsel %vm4684_vm11, %v13575_v4, %v13574_v29  ;;  %v4993_v59 = vadd.s32 3, %v13577_v34  ;;  %v3530_v40 = vsel %vm3447_vm5, %v3529_v56, %v3528_v25  ;;  %v13579_v61 = vld [vmem:[#allocation40_spill] sm:$0xff]  ;;  %v13580_v29 = vld [vmem:[#allocation21_spill] sm:$0xff]  ;;  %v13582_v42 = vld [vmem:[#allocation82_spill] sm:$0xff] }
 0x38d   : > { %v4689_v11 = vsel %vm4687_vm8, %v13576_v49, %v13573_v39  ;;  %v5097_v3 = vadd.s32 3, %v13578_v33  ;;  %v5201_v54 = vadd.s32 3, %v13579_v61  ;;  %v3533_v38 = vsel %vm12152_vm3, %v13492_v53, %v3530_v40  ;;  %v13584_v4 = vld [vmem:[#allocation37_spill] sm:$0xff] }
 0x38e   : > { %v4690_v28 = vsel %vm4683_vm12, %v4686_v41, %v4689_v11  ;;  %vm13581_vm13 = vweird.f32 %v13580_v29  ;;  %vm4787_vm15 = vcmp.lt.s32.totalorder %v4786_v17, 2  ;;  %vm4788_vm7 = vcmp.eq.s32.totalorder %v4786_v17, 0  ;;  %v13586_v40 = vld [vmem:[#allocation33_spill] sm:$0xff] }
 0x38f   : > { %v12336_v39 = vsel %vm13581_vm13, nan, %v4690_v28  ;;  %7596 = vcosq.f32 %v3533_v38  ;;  %v13583_v36 = vxor.u32 2147483648, %v13582_v42  ;;  %vm4791_vm5 = vcmp.eq.s32.totalorder %v4786_v17, 2  ;;  %v13588_v17 = vld [vmem:[#allocation86_spill] sm:$0xff]  ;;  %v13590_v33 = vld [vmem:[#allocation85_spill] sm:$0xff] }
 0x390   : > { %v4890_v56 = vand.u32 3, %v4889_v47  ;;  %7598 = vsinq.f32 %v3533_v38  ;;  %v13585_v41 = vxor.u32 2147483648, %v13584_v4  ;;  %v4994_v35 = vand.u32 3, %v4993_v59  ;;  %v13592_v29 = vld [vmem:[#allocation13_spill] sm:$0xff] }
 0x391   : > { %v4790_v25 = vsel %vm4788_vm7, %v13584_v4, %v13583_v36  ;;  %v5098_v11 = vand.u32 3, %v5097_v3  ;;  %vm3543_vm3 = vcmp.eq.s32.totalorder %v12208_v37, 2  ;;  %vm3540_vm2 = vcmp.eq.s32.totalorder %v12208_v37, 0  ;;  %v13594_v36 = vld [vmem:[#allocation89_spill] sm:$0xff] }
 0x392   : > { %v4793_v49 = vsel %vm4791_vm5, %v13585_v41, %v13582_v42  ;;  %vm4891_vm1 = vcmp.lt.s32.totalorder %v4890_v56, 2  ;;  %vm4892_vm0 = vcmp.eq.s32.totalorder %v4890_v56, 0  ;;  %vm4895_vm4 = vcmp.eq.s32.totalorder %v4890_v56, 2 }
 0x393   : > { %v4794_v34 = vsel %vm4787_vm15, %v4790_v25, %v4793_v49  ;;  %vm13587_vm12 = vweird.f32 %v13586_v40  ;;  %v13589_v47 = vxor.u32 2147483648, %v13588_v17  ;;  %v13591_v59 = vxor.u32 2147483648, %v13590_v33  ;;  %v13596_v25 = vld [vmem:[#allocation88_spill] sm:$0xff]  ;;  %v13598_v40 = vld [vmem:[#allocation94_spill] sm:$0xff] }
 0x394   : > { %v12348_v28 = vsel %vm13587_vm12, nan, %v4794_v34  ;;  %vm4995_vm11 = vcmp.lt.s32.totalorder %v4994_v35, 2  ;;  %vm3539_vm14 = vcmp.lt.s32.totalorder %v12208_v37, 2  ;;  %vm4996_vm8 = vcmp.eq.s32.totalorder %v4994_v35, 0 }
 0x395   : > { %v4894_v61 = vsel %vm4892_vm0, %v13590_v33, %v13589_v47  ;;  %v4897_v3 = vsel %vm4895_vm4, %v13591_v59, %v13588_v17  ;;  %vm4999_vm13 = vcmp.eq.s32.totalorder %v4994_v35, 2  ;;  %vm5099_vm15 = vcmp.lt.s32.totalorder %v5098_v11, 2  ;;  %v13600_v35 = vld [vmem:[#allocation93_spill] sm:$0xff] }
 0x396   : > { %v4898_v38 = vsel %vm4891_vm1, %v4894_v61, %v4897_v3  ;;  %vm3537_vm7 = vweird.f32 %v13492_v53  ;;  %vm13593_vm5 = vweird.f32 %v13592_v29  ;;  %v13595_v4 = vxor.u32 2147483648, %v13594_v36  ;;  %v13601_v61 = vld [vmem:[#allocation16_spill] sm:$0xff]  ;;  %v13702_v53 = vld [vmem:[#allocation91_spill] sm:$0xff] }
 0x397   : > { %v12360_v42 = vsel %vm13593_vm5, nan, %v4898_v38  ;;  %v13597_v41 = vxor.u32 2147483648, %v13596_v25  ;;  %vm5100_vm0 = vcmp.eq.s32.totalorder %v5098_v11, 0  ;;  %v13599_v17 = vxor.u32 2147483648, %v13598_v40 }
 0x398   : > { %v4998_v56 = vsel %vm4996_vm8, %v13596_v25, %v13595_v4  ;;  %vm5103_vm1 = vcmp.eq.s32.totalorder %v5098_v11, 2  ;;  %v5202_v33 = vand.u32 3, %v5201_v54  ;;  %vm13602_vm4 = vweird.f32 %v13601_v61  ;;  %v13609_v61 = vld [vmem:[#allocation35_spill] sm:$0xff] }
 0x399   : > { %v5001_v49 = vsel %vm4999_vm13, %v13597_v41, %v13594_v36  ;;  %v5102_v47 = vsel %vm5100_vm0, %v13600_v35, %v13599_v17  ;;  %v13603_v3 = vxor.u32 2147483648, %v13600_v35  ;;  %v5305_v29 = vadd.s32 3, %v10765_v27  ;;  %v12390_v27 = vpop.eup %7596  ;;  %v13608_v35 = vld [vmem:[#allocation104_spill] sm:$0xff] }
 0x39a   : > { %v5002_v34 = vsel %vm4995_vm11, %v4998_v56, %v5001_v49  ;;  %v5409_v36 = vadd.s32 3, %v10895_v30  ;;  %vm5203_vm12 = vcmp.lt.s32.totalorder %v5202_v33, 2  ;;  %vm5204_vm11 = vcmp.eq.s32.totalorder %v5202_v33, 0 }
 0x39b   : > { %v12373_v59 = vsel %vm13602_vm4, nan, %v5002_v34  ;;  %v5105_v38 = vsel %vm5103_vm1, %v13603_v3, %v13598_v40  ;;  %vm5207_vm8 = vcmp.eq.s32.totalorder %v5202_v33, 2  ;;  %vm13604_vm13 = vweird.f32 %v13327_v31  ;;  %v13607_v40 = vld [vmem:[#allocation102_spill] sm:$0xff]  ;;  %v12394_v31 = vpop.eup %7598 }
 0x39c   : > { %v5106_v4 = vsel %vm5099_vm15, %v5102_v47, %v5105_v38  ;;  %v13605_v54 = vxor.u32 2147483648, %v10641_v55  ;;  %v13606_v56 = vxor.u32 2147483648, %v10638_v60  ;;  %v5306_v49 = vand.u32 3, %v5305_v29  ;;  %v13613_v29 = vld [vmem:[#allocation96_spill] sm:$0xff] }
 0x39d   : > { %v12382_v11 = vsel %vm13604_vm13, nan, %v5106_v4  ;;  %v5410_v34 = vand.u32 3, %v5409_v36  ;;  %v5513_v17 = vadd.s32 3, %v13607_v40  ;;  %v5617_v47 = vadd.s32 3, %v13608_v35  ;;  %v13617_v40 = vld [vmem:[#allocation98_spill] sm:$0xff] }
 0x39e   : > { %v5206_v25 = vsel %vm5204_vm11, %v10638_v60, %v13605_v54  ;;  %v5209_v41 = vsel %vm5207_vm8, %v13606_v56, %v10641_v55  ;;  %v13120_v33 = vxor.u32 2147483648, %v12390_v27  ;;  %vm13610_vm15 = vweird.f32 %v13609_v61  ;;  %v13611_v55 = vld [vmem:[#allocation97_spill] sm:$0xff] }
 0x39f   : > { %v5210_v30 = vsel %vm5203_vm12, %v5206_v25, %v5209_v41  ;;  %vm5307_vm5 = vcmp.lt.s32.totalorder %v5306_v49, 2  ;;  %vm5308_vm0 = vcmp.eq.s32.totalorder %v5306_v49, 0  ;;  %v3541_v60 = vxor.u32 2147483648, %v12394_v31 }
 0x3a0   : > { %v12399_v3 = vsel %vm13610_vm15, nan, %v5210_v30  ;;  %v13612_v38 = vxor.u32 2147483648, %v13611_v55  ;;  %vm5311_vm1 = vcmp.eq.s32.totalorder %v5306_v49, 2  ;;  %vm5411_vm4 = vcmp.lt.s32.totalorder %v5410_v34, 2  ;;  %v13615_v49 = vld [vmem:[#allocation101_spill] sm:$0xff] }
 0x3a1   : > { %v3545_v4 = vsel %vm3543_vm3, %v13120_v33, %v12394_v31  ;;  %v13614_v54 = vxor.u32 2147483648, %v13613_v29  ;;  %vm5412_vm12 = vcmp.eq.s32.totalorder %v5410_v34, 0  ;;  %vm5415_vm11 = vcmp.eq.s32.totalorder %v5410_v34, 2 }
 0x3a2   : > { %v5310_v36 = vsel %vm5308_vm0, %v13613_v29, %v13612_v38  ;;  %v3542_v56 = vsel %vm3540_vm2, %v12390_v27, %v3541_v60  ;;  %v13616_v30 = vxor.u32 2147483648, %v13615_v49  ;;  %v13618_v61 = vxor.u32 2147483648, %v13617_v40  ;;  %v13619_v29 = vld [vmem:[#allocation36_spill] sm:$0xff] }
 0x3a3   : > { %v5313_v25 = vsel %vm5311_vm1, %v13614_v54, %v13611_v55  ;;  %v3546_v55 = vsel %vm3539_vm14, %v3542_v56, %v3545_v4  ;;  %vm13620_vm3 = vweird.f32 %v13619_v29  ;;  %v5514_v33 = vand.u32 3, %v5513_v17 }
 0x3a4   : > { %v5314_v41 = vsel %vm5307_vm5, %v5310_v36, %v5313_v25  ;;  %v5414_v35 = vsel %vm5412_vm12, %v13617_v40, %v13616_v30  ;;  %v5417_v38 = vsel %vm5415_vm11, %v13618_v61, %v13615_v49  ;;  %v12432_v36 = vsel %vm3537_vm7, nan, %v3546_v55  ;;  %v13624_v40 = vld [vmem:[#allocation106_spill] sm:$0xff] }
 0x3a5   : > { %v12428_v34 = vsel %vm13620_vm3, nan, %v5314_v41  ;;  %v5418_v54 = vsel %vm5411_vm4, %v5414_v35, %v5417_v38  ;;  %vm13621_vm2 = vweird.f32 %v13354_v44  ;;  %v5618_v30 = vand.u32 3, %v5617_v47  ;;  %v13626_v35 = vld [vmem:[#allocation105_spill] sm:$0xff] }
 0x3a6   : > { %v12436_v25 = vsel %vm13621_vm2, nan, %v5418_v54  ;;  %v5721_v49 = vadd.s32 3, %v11137_v6  ;;  %vm5515_vm8 = vcmp.lt.s32.totalorder %v5514_v33, 2  ;;  %vm5516_vm13 = vcmp.eq.s32.totalorder %v5514_v33, 0  ;;  %v13630_v54 = vld [vmem:[#allocation39_spill] sm:$0xff] }
 0x3a7   : > { %vm5519_vm14 = vcmp.eq.s32.totalorder %v5514_v33, 2  ;;  %v5825_v37 = vadd.s32 3, %v11153_v2  ;;  %v13622_v4 = vxor.u32 2147483648, %v10972_v57  ;;  %v13623_v56 = vxor.u32 2147483648, %v10952_v22  ;;  %v13627_v33 = vld [vmem:[#allocation38_spill] sm:$0xff] }
 0x3a8   : > { %vm5619_vm15 = vcmp.lt.s32.totalorder %v5618_v30, 2  ;;  %vm5620_vm5 = vcmp.eq.s32.totalorder %v5618_v30, 0  ;;  %v13625_v47 = vxor.u32 2147483648, %v13624_v40  ;;  %vm5623_vm0 = vcmp.eq.s32.totalorder %v5618_v30, 2  ;;  %v13632_v30 = vld [vmem:[#allocation110_spill] sm:$0xff] }
 0x3a9   : > { %v5518_v17 = vsel %vm5516_vm13, %v10952_v22, %v13622_v4  ;;  %v5521_v41 = vsel %vm5519_vm14, %v13623_v56, %v10972_v57  ;;  %v5722_v61 = vand.u32 3, %v5721_v49  ;;  %vm13628_vm1 = vweird.f32 %v13627_v33 }
 0x3aa   : > { %v5522_v44 = vsel %vm5515_vm8, %v5518_v17, %v5521_v41  ;;  %v5622_v6 = vsel %vm5620_vm5, %v13626_v35, %v13625_v47  ;;  %v13629_v38 = vxor.u32 2147483648, %v13626_v35  ;;  %v5826_v29 = vand.u32 3, %v5825_v37  ;;  %v13634_v17 = vld [vmem:[#allocation107_spill] sm:$0xff]  ;;  %v13637_v47 = vld [vmem:[#allocation113_spill] sm:$0xff] }
 0x3ab   : > { %v12451_v2 = vsel %vm13628_vm1, nan, %v5522_v44  ;;  %v5929_v22 = vadd.s32 3, %v11287_v12  ;;  %vm5723_vm4 = vcmp.lt.s32.totalorder %v5722_v61, 2  ;;  %vm5724_vm12 = vcmp.eq.s32.totalorder %v5722_v61, 0 }
 0x3ac   : > { %v5625_v55 = vsel %vm5623_vm0, %v13629_v38, %v13624_v40  ;;  %vm5727_vm11 = vcmp.eq.s32.totalorder %v5722_v61, 2  ;;  %vm13631_vm3 = vweird.f32 %v13630_v54  ;;  %v13633_v49 = vxor.u32 2147483648, %v13632_v30 }
 0x3ad   : > { %v5626_v57 = vsel %vm5619_vm15, %v5622_v6, %v5625_v55  ;;  %v13635_v41 = vxor.u32 2147483648, %v13634_v17  ;;  %vm5827_vm2 = vcmp.lt.s32.totalorder %v5826_v29, 2  ;;  %vm5828_vm8 = vcmp.eq.s32.totalorder %v5826_v29, 0  ;;  %v13639_v6 = vld [vmem:[#allocation112_spill] sm:$0xff] }
 0x3ae   : > { %v12459_v4 = vsel %vm13631_vm3, nan, %v5626_v57  ;;  %v5726_v56 = vsel %vm5724_vm12, %v13634_v17, %v13633_v49  ;;  %vm5831_vm13 = vcmp.eq.s32.totalorder %v5826_v29, 2  ;;  %v5930_v12 = vand.u32 3, %v5929_v22  ;;  %v13641_v29 = vld [vmem:[#allocation41_spill] sm:$0xff] }
 0x3af   : > { %v5729_v44 = vsel %vm5727_vm11, %v13635_v41, %v13632_v30  ;;  %vm13636_vm14 = vweird.f32 %v13389_v24  ;;  %v13638_v35 = vxor.u32 2147483648, %v13637_v47  ;;  %v13640_v33 = vxor.u32 2147483648, %v13639_v6  ;;  %v13643_v24 = vld [vmem:[#allocation116_spill] sm:$0xff]  ;;  %v13645_v30 = vld [vmem:[#allocation114_spill] sm:$0xff] }
 0x3b0   : > { %v5730_v37 = vsel %vm5723_vm4, %v5726_v56, %v5729_v44  ;;  %v6033_v55 = vadd.s32 3, %v11394_v1  ;;  %vm5931_vm15 = vcmp.lt.s32.totalorder %v5930_v12, 2  ;;  %vm5932_vm5 = vcmp.eq.s32.totalorder %v5930_v12, 0 }
 0x3b1   : > { %v12469_v40 = vsel %vm13636_vm14, nan, %v5730_v37  ;;  %v5830_v61 = vsel %vm5828_vm8, %v13639_v6, %v13638_v35  ;;  %v5833_v38 = vsel %vm5831_vm13, %v13640_v33, %v13637_v47  ;;  %vm5935_vm0 = vcmp.eq.s32.totalorder %v5930_v12, 2  ;;  %v13647_v37 = vld [vmem:[#allocation118_spill] sm:$0xff]  ;;  %v13649_v6 = vld [vmem:[#allocation123_spill] sm:$0xff] }
 0x3b2   : > { %v5834_v57 = vsel %vm5827_vm2, %v5830_v61, %v5833_v38  ;;  %vm13642_vm1 = vweird.f32 %v13641_v29  ;;  %v13644_v54 = vxor.u32 2147483648, %v13643_v24  ;;  %v13646_v17 = vxor.u32 2147483648, %v13645_v30  ;;  %v13648_v47 = vld [vmem:[#allocation122_spill] sm:$0xff]  ;;  %v13652_v38 = vld [vmem:[#allocation119_spill] sm:$0xff]  ;;  %v13654_v29 = vld [vmem:[#allocation117_spill] sm:$0xff] }
 0x3b3   : > { %v12480_v22 = vsel %vm13642_vm1, nan, %v5834_v57  ;;  %v6034_v41 = vand.u32 3, %v6033_v55  ;;  %v6137_v1 = vadd.s32 3, %v13647_v37  ;;  %v6241_v35 = vadd.s32 3, %v13648_v47  ;;  %v13650_v61 = vld [vmem:[#allocation42_spill] sm:$0xff]  ;;  %v13656_v47 = vld [vmem:[#allocation43_spill] sm:$0xff] }
 0x3b4   : > { %v5934_v49 = vsel %vm5932_vm5, %v13645_v30, %v13644_v54  ;;  %v5937_v56 = vsel %vm5935_vm0, %v13646_v17, %v13643_v24  ;;  %v6345_v12 = vadd.s32 3, %v13649_v6  ;;  %vm13651_vm4 = vweird.f32 %v13650_v61 }
 0x3b5   : > { %v5938_v44 = vsel %vm5931_vm15, %v5934_v49, %v5937_v56  ;;  %vm6035_vm12 = vcmp.lt.s32.totalorder %v6034_v41, 2  ;;  %vm6036_vm11 = vcmp.eq.s32.totalorder %v6034_v41, 0  ;;  %vm6039_vm3 = vcmp.eq.s32.totalorder %v6034_v41, 2  ;;  %v13658_v41 = vld [vmem:[#allocation10_spill] sm:$0xff] }
 0x3b6   : > { %v12493_v33 = vsel %vm13651_vm4, nan, %v5938_v44  ;;  %v13653_v57 = vxor.u32 2147483648, %v13652_v38  ;;  %v13655_v55 = vxor.u32 2147483648, %v13654_v29  ;;  %v6138_v30 = vand.u32 3, %v6137_v1  ;;  %v13662_v1 = vld [vmem:[#allocation24_spill] sm:$0xff] }
 0x3b7   : > { %v6242_v49 = vand.u32 3, %v6241_v35  ;;  %v6346_v56 = vand.u32 3, %v6345_v12  ;;  %v6449_v37 = vadd.s32 3, %v11800_v9  ;;  %v6553_v44 = vadd.s32 3, %v11898_v16  ;;  %v13664_v12 = vld [vmem:[#allocation121_spill] sm:$0xff] }
 0x3b8   : > { %v6038_v54 = vsel %vm6036_vm11, %v13654_v29, %v13653_v57  ;;  %v6041_v24 = vsel %vm6039_vm3, %v13655_v55, %v13652_v38  ;;  %vm13657_vm2 = vweird.f32 %v13656_v47  ;;  %vm6139_vm8 = vcmp.lt.s32.totalorder %v6138_v30, 2 }
 0x3b9   : > { %v6042_v17 = vsel %vm6035_vm12, %v6038_v54, %v6041_v24  ;;  %vm6140_vm13 = vcmp.eq.s32.totalorder %v6138_v30, 0  ;;  %vm6143_vm14 = vcmp.eq.s32.totalorder %v6138_v30, 2  ;;  %v13659_v61 = vand.u32 1, %v13658_v41  ;;  %v13666_v54 = vld [vmem:[#allocation125_spill] sm:$0xff]  ;;  %v13668_v24 = vld [vmem:[#allocation124_spill] sm:$0xff] }
 0x3ba   : > { %v12505_v6 = vsel %vm13657_vm2, nan, %v6042_v17  ;;  %v13663_v35 = vxor.u32 2147483648, %v13662_v1  ;;  %v13665_v16 = vxor.u32 2147483648, %v13664_v12  ;;  %vm6243_vm5 = vcmp.lt.s32.totalorder %v6242_v49, 2  ;;  %v13669_v17 = vld [vmem:[#allocation44_spill] sm:$0xff] }
 0x3bb   : > { %vm12509_vm15 = vcmp.eq.s32.totalorder %v13659_v61, 1  ;;  %vm6244_vm0 = vcmp.eq.s32.totalorder %v6242_v49, 0  ;;  %v13667_v55 = vxor.u32 2147483648, %v13666_v54  ;;  %vm6247_vm1 = vcmp.eq.s32.totalorder %v6242_v49, 2 }
 0x3bc   : > { %v6142_v9 = vsel %vm6140_vm13, %v13664_v12, %v13663_v35  ;;  %v6145_v57 = vsel %vm6143_vm14, %v13665_v16, %v13662_v1  ;;  %vm6347_vm4 = vcmp.lt.s32.totalorder %v6346_v56, 2  ;;  %vm13670_vm12 = vweird.f32 %v13669_v17  ;;  %v13673_v12 = vld [vmem:[#allocation127_spill] sm:$0xff] }
 0x3bd   : > { %v6146_v29 = vsel %vm6139_vm8, %v6142_v9, %v6145_v57  ;;  %v6246_v30 = vsel %vm6244_vm0, %v13668_v24, %v13667_v55  ;;  %v13671_v41 = vxor.u32 2147483648, %v13668_v24  ;;  %vm6348_vm11 = vcmp.eq.s32.totalorder %v6346_v56, 0 }
 0x3be   : > { %v12524_v47 = vsel %vm13670_vm12, nan, %v6146_v29  ;;  %vm6351_vm3 = vcmp.eq.s32.totalorder %v6346_v56, 2  ;;  %v13672_v35 = vxor.u32 2147483648, %v11755_v50  ;;  %v13674_v49 = vxor.u32 2147483648, %v13673_v12  ;;  %v13676_v56 = vld [vmem:[#allocation46_spill] sm:$0xff] }
 0x3bf   : > { %v6249_v61 = vsel %vm6247_vm1, %v13671_v41, %v13666_v54  ;;  %v6450_v57 = vand.u32 3, %v6449_v37  ;;  %v6554_v54 = vand.u32 3, %v6553_v44  ;;  %v6657_v17 = vadd.s32 3, %v11999_v8  ;;  %v13678_v41 = vld [vmem:[#allocation18_spill] sm:$0xff]  ;;  %v13680_v37 = vld [vmem:[#allocation129_spill] sm:$0xff] }
 0x3c0   : > { %v6250_v1 = vsel %vm6243_vm5, %v6246_v30, %v6249_v61  ;;  %v6350_v9 = vsel %vm6348_vm11, %v13673_v12, %v13672_v35  ;;  %v6353_v16 = vsel %vm6351_vm3, %v13674_v49, %v11755_v50  ;;  %vm13677_vm2 = vweird.f32 %v13676_v56 }
 0x3c1   : > { %v12538_v55 = vsel %vm2919_vm9, nan, %v6250_v1  ;;  %v6354_v24 = vsel %vm6347_vm4, %v6350_v9, %v6353_v16  ;;  %vm6451_vm8 = vcmp.lt.s32.totalorder %v6450_v57, 2  ;;  %vm6452_vm13 = vcmp.eq.s32.totalorder %v6450_v57, 0 }
 0x3c2   : > { %v12543_v30 = vsel %vm13677_vm2, nan, %v6354_v24  ;;  %vm6455_vm14 = vcmp.eq.s32.totalorder %v6450_v57, 2  ;;  %v13679_v50 = vxor.u32 2147483648, %v13678_v41  ;;  %v13681_v1 = vxor.u32 2147483648, %v13680_v37 }
 0x3c3   : > { %vm6555_vm9 = vcmp.lt.s32.totalorder %v6554_v54, 2  ;;  %vm6556_vm5 = vcmp.eq.s32.totalorder %v6554_v54, 0  ;;  %v13682_v44 = vxor.u32 2147483648, %v12015_v26  ;;  %vm6559_vm0 = vcmp.eq.s32.totalorder %v6554_v54, 2 }
 0x3c4   : > { %v6454_v61 = vsel %vm6452_vm13, %v13680_v37, %v13679_v50  ;;  %v6457_v35 = vsel %vm6455_vm14, %v13681_v1, %v13678_v41  ;;  %v6658_v9 = vand.u32 3, %v6657_v17  ;;  %vm13683_vm1 = vweird.f32 %v13450_v23 }
 0x3c5   : > { %v6458_v8 = vsel %vm6451_vm8, %v6454_v61, %v6457_v35  ;;  %v6558_v12 = vsel %vm6556_vm5, %v12008_v52, %v13682_v44  ;;  %v13684_v16 = vxor.u32 2147483648, %v12008_v52  ;;  %v6761_v29 = vadd.s32 3, %v12099_v48 }
 0x3c6   : > { %v12558_v49 = vsel %vm13683_vm1, nan, %v6458_v8  ;;  %v6865_v24 = vadd.s32 3, %v12204_v14  ;;  %vm6659_vm4 = vcmp.lt.s32.totalorder %v6658_v9, 2  ;;  %vm6660_vm12 = vcmp.eq.s32.totalorder %v6658_v9, 0  ;;  %v13688_v14 = vld [vmem:[#allocation51_spill] sm:$0xff]  ;;  %v13692_v8 = vld [vmem:[#allocation54_spill] sm:$0xff] }
 0x3c7   : > { %v6561_v57 = vsel %vm6559_vm0, %v13684_v16, %v12015_v26  ;;  %vm6663_vm11 = vcmp.eq.s32.totalorder %v6658_v9, 2  ;;  %vm13685_vm3 = vweird.f32 %v13463_v62  ;;  %v13686_v23 = vxor.u32 2147483648, %v12140_v0  ;;  %v13689_v62 = vld [vmem:[#allocation52_spill] sm:$0xff]  ;;  %v13695_v16 = vld [vmem:[#allocation65_spill] sm:$0xff] }
 0x3c8   : > { %v6562_v56 = vsel %vm6555_vm9, %v6558_v12, %v6561_v57  ;;  %v13687_v52 = vxor.u32 2147483648, %v12137_v43  ;;  %v6762_v41 = vand.u32 3, %v6761_v29  ;;  %v6866_v50 = vand.u32 3, %v6865_v24  ;;  %v13694_v9 = vld [vmem:[#allocation64_spill] sm:$0xff]  ;;  %v13696_v57 = vld [vmem:[#allocation66_spill] sm:$0xff] }
 0x3c9   : > { %v12567_v54 = vsel %vm13685_vm3, nan, %v6562_v56  ;;  %v6662_v17 = vsel %vm6660_vm12, %v12137_v43, %v13686_v23  ;;  %v6876_v37 = vsel %vm12509_vm15, %v13688_v14, %v12135_v21  ;;  %v6877_v61 = vsel %vm12509_vm15, %v13689_v62, %v12184_v19 }
 0x3ca   : > { %v6665_v26 = vsel %vm6663_vm11, %v13687_v52, %v12140_v0  ;;  %vm6763_vm2 = vcmp.lt.s32.totalorder %v6762_v41, 2  ;;  %vm6764_vm8 = vcmp.eq.s32.totalorder %v6762_v41, 0  ;;  %vm6767_vm13 = vcmp.eq.s32.totalorder %v6762_v41, 2  ;;  %6908 = vst [vmem:[%s12587_s14] sm:$0xff] %v6876_v37  ;;  %6909 = vst [vmem:[%s12587_s14 + $0x8] sm:$0xff] %v6877_v61  ;;  %v13703_v52 = vld [vmem:[#allocation92_spill] sm:$0xff]  ;;  %v13705_v41 = vld [vmem:[#allocation99_spill] sm:$0xff] }
 0x3cb   : > { %v6666_v48 = vsel %vm6659_vm4, %v6662_v17, %v6665_v26  ;;  %v13690_v21 = vxor.u32 2147483648, %v12272_v10  ;;  %v13691_v0 = vxor.u32 2147483648, %v12270_v46  ;;  %vm6868_vm14 = vcmp.eq.s32.totalorder %v6866_v50, 0  ;;  %v13704_v26 = vld [vmem:[#allocation95_spill] sm:$0xff]  ;;  %v13709_v37 = vld [vmem:[#allocation109_spill] sm:$0xff] }
 0x3cc   : > { %v12585_v1 = vsel %vm3331_vm10, nan, %v6666_v48  ;;  %vm6867_vm10 = vcmp.lt.s32.totalorder %v6866_v50, 2  ;;  %v6870_v35 = vsel %vm6868_vm14, %v12390_v27, %v3541_v60  ;;  %vm6871_vm9 = vcmp.eq.s32.totalorder %v6866_v50, 2 }
 0x3cd   : > { %v6766_v43 = vsel %vm6764_vm8, %v12270_v46, %v13690_v21  ;;  %v6769_v20 = vsel %vm6767_vm13, %v13691_v0, %v12272_v10  ;;  %v6878_v44 = vsel %vm12509_vm15, %v13692_v8, %v12212_v58  ;;  %v13693_v10 = vxor.u32 2147483648, %v12390_v27 }
 0x3ce   : > { %v6770_v19 = vsel %vm6763_vm2, %v6766_v43, %v6769_v20  ;;  %v6879_v60 = vsel %vm12509_vm15, %v13694_v9, %v12216_v7  ;;  %v6880_v58 = vsel %vm12509_vm15, %v13695_v16, %v12231_v15  ;;  %6910 = vst [vmem:[%s12587_s14 + $0x10] sm:$0xff] %v6878_v44  ;;  %v6881_v27 = vsel %vm12509_vm15, %v13696_v57, %v12247_v63  ;;  %v13698_v7 = vld [vmem:[#allocation77_spill] sm:$0xff]  ;;  %v13713_v43 = vld [vmem:[#allocation120_spill] sm:$0xff]  ;;  %v13715_v20 = vld [vmem:[#allocation126_spill] sm:$0xff] }
 0x3cf   : > { %v12606_v46 = vsel %vm3434_vm6, nan, %v6770_v19  ;;  %v6873_v12 = vsel %vm6871_vm9, %v13693_v10, %v12394_v31  ;;  %v13697_v31 = vld [vmem:[#allocation68_spill] sm:$0xff]  ;;  %v6883_v24 = vsel %vm12509_vm15, %v13698_v7, %v12277_v5  ;;  %6911 = vst [vmem:[%s12587_s14 + $0x18] sm:$0xff] %v6879_v60  ;;  %6912 = vst [vmem:[%s12587_s14 + $0x20] sm:$0xff] %v6880_v58  ;;  %v13699_v63 = vld [vmem:[#allocation81_spill] sm:$0xff]  ;;  %v6890_v48 = vsel %vm12509_vm15, %v13705_v41, %v12382_v11 }
 0x3d0   : > { %v6874_v51 = vsel %vm6867_vm10, %v6870_v35, %v6873_v12  ;;  %v6882_v29 = vsel %vm12509_vm15, %v13697_v31, %v12265_v13  ;;  %v6884_v56 = vsel %vm12509_vm15, %v13699_v63, %v12302_v32  ;;  %v13700_v13 = vld [vmem:[#allocation83_spill] sm:$0xff]  ;;  %v13701_v5 = vld [vmem:[#allocation84_spill] sm:$0xff]  ;;  %6913 = vst [vmem:[%s12587_s14 + $0x28] sm:$0xff] %v6881_v27  ;;  %6915 = vst [vmem:[%s12587_s14 + $0x38] sm:$0xff] %v6883_v24 }
 0x3d1   : > { %v6875_v15 = vsel %vm3537_vm7, nan, %v6874_v51  ;;  %v6885_v23 = vsel %vm12509_vm15, %v13700_v13, %v12317_v18  ;;  %v6886_v17 = vsel %vm12509_vm15, %v13701_v5, %v12336_v39  ;;  %6914 = vst [vmem:[%s12587_s14 + $0x30] sm:$0xff] %v6882_v29  ;;  %v6887_v32 = vsel %vm12509_vm15, %v13702_v53, %v12348_v28  ;;  %6916 = vst [vmem:[%s12587_s14 + $0x40] sm:$0xff] %v6884_v56  ;;  %v13706_v28 = vld [vmem:[#allocation100_spill] sm:$0xff]  ;;  %v13716_v19 = vld [vmem:[#allocation25_spill] sm:$0xff] }
 0x3d2   : > { %v6888_v18 = vsel %vm12509_vm15, %v13703_v52, %v12360_v42  ;;  %v6889_v39 = vsel %vm12509_vm15, %v13704_v26, %v12373_v59  ;;  %6917 = vst [vmem:[%s12587_s14 + $0x48] sm:$0xff] %v6885_v23  ;;  %6918 = vst [vmem:[%s12587_s14 + $0x50] sm:$0xff] %v6886_v17  ;;  %v6891_v42 = vsel %vm12509_vm15, %v13706_v28, %v12399_v3  ;;  %v13707_v59 = vld [vmem:[#allocation103_spill] sm:$0xff]  ;;  %v13708_v11 = vld [vmem:[#allocation108_spill] sm:$0xff] }
 0x3d3   : > { %v6892_v50 = vsel %vm12509_vm15, %v13707_v59, %v12428_v34  ;;  %v6893_v14 = vsel %vm12509_vm15, %v13708_v11, %v12436_v25  ;;  %v6894_v62 = vsel %vm12509_vm15, %v13709_v37, %v12451_v2  ;;  %6919 = vst [vmem:[%s12587_s14 + $0x58] sm:$0xff] %v6887_v32  ;;  %6920 = vst [vmem:[%s12587_s14 + $0x60] sm:$0xff] %v6888_v18  ;;  %v13710_v3 = vld [vmem:[#allocation111_spill] sm:$0xff]  ;;  %v13717_v35 = vld [vmem:[#allocation128_spill] sm:$0xff] }
 0x3d4   : > { %6921 = vst [vmem:[%s12587_s14 + $0x68] sm:$0xff] %v6889_v39  ;;  %6922 = vst [vmem:[%s12587_s14 + $0x70] sm:$0xff] %v6890_v48  ;;  %v6895_v34 = vsel %vm12509_vm15, %v13710_v3, %v12459_v4  ;;  %v13711_v25 = vld [vmem:[#allocation115_spill] sm:$0xff]  ;;  %v6898_v0 = vsel %vm12509_vm15, %v13713_v43, %v12493_v33  ;;  %v13714_v4 = vld [vmem:[#allocation26_spill] sm:$0xff]  ;;  %v6901_v33 = vsel %vm12509_vm15, %v13716_v19, %v12538_v55 }
 0x3d5   : > { %v6896_v61 = vsel %vm12509_vm15, %v13711_v25, %v12469_v40  ;;  %v13712_v2 = vld [vmem:[#allocation47_spill] sm:$0xff]  ;;  %6923 = vst [vmem:[%s12587_s14 + $0x78] sm:$0xff] %v6891_v42  ;;  %6924 = vst [vmem:[%s12587_s14 + $0x80] sm:$0xff] %v6892_v50  ;;  %v6899_v40 = vsel %vm12509_vm15, %v13714_v4, %v12505_v6  ;;  %v6902_v8 = vsel %vm12509_vm15, %v13717_v35, %v12543_v30  ;;  %v13719_v55 = vld [vmem:[#allocation29_spill] sm:$0xff] }
 0x3d6   : > { %v6897_v21 = vsel %vm12509_vm15, %v13712_v2, %v12480_v22  ;;  %6925 = vst [vmem:[%s12587_s14 + $0x88] sm:$0xff] %v6893_v14  ;;  %6926 = vst [vmem:[%s12587_s14 + $0x90] sm:$0xff] %v6894_v62  ;;  %v6900_v22 = vsel %vm12509_vm15, %v13715_v20, %v12524_v47  ;;  %v13718_v6 = vld [vmem:[#allocation27_spill] sm:$0xff]  ;;  %v6904_v30 = vsel %vm12509_vm15, %v13719_v55, %v12567_v54 }
 0x3d7   : > { %6927 = vst [vmem:[%s12587_s14 + $0x98] sm:$0xff] %v6895_v34  ;;  %6928 = vst [vmem:[%s12587_s14 + $0xa0] sm:$0xff] %v6896_v61  ;;  %v6903_v47 = vsel %vm12509_vm15, %v13718_v6, %v12558_v49  ;;  %v13720_v44 = vld [vmem:[#allocation23_spill] sm:$0xff]  ;;  %v6906_v12 = vsel %vm12509_vm15, %v12312_v45, %v12606_v46  ;;  %v6907_v49 = vsel %vm12509_vm15, %v12432_v36, %v6875_v15 }
 0x3d8   : > { %6929 = vst [vmem:[%s12587_s14 + $0xa8] sm:$0xff] %v6897_v21  ;;  %6930 = vst [vmem:[%s12587_s14 + $0xb0] sm:$0xff] %v6898_v0  ;;  %v6905_v10 = vsel %vm12509_vm15, %v13720_v44, %v12585_v1 }
 0x3d9   : > { %6931 = vst [vmem:[%s12587_s14 + $0xb8] sm:$0xff] %v6899_v40  ;;  %6932 = vst [vmem:[%s12587_s14 + $0xc0] sm:$0xff] %v6900_v22 }
 0x3da   : > { %6933 = vst [vmem:[%s12587_s14 + $0xc8] sm:$0xff] %v6901_v33  ;;  %6934 = vst [vmem:[%s12587_s14 + $0xd0] sm:$0xff] %v6902_v8 }
 0x3db   : > { %6935 = vst [vmem:[%s12587_s14 + $0xd8] sm:$0xff] %v6903_v47  ;;  %6936 = vst [vmem:[%s12587_s14 + $0xe0] sm:$0xff] %v6904_v30 }
 0x3dc   : > { %6937 = vst [vmem:[%s12587_s14 + $0xe8] sm:$0xff] %v6905_v10  ;;  %6938 = vst [vmem:[%s12587_s14 + $0xf0] sm:$0xff] %v6906_v12 }
 0x3dd   : > { %6939 = vst [vmem:[%s12587_s14 + $0xf8] sm:$0xff] %v6907_v49 }
 0x3de   : > { %7642 = shalt.err (!%p7639_p4)
}
 0x3df   : > { %s7643_s27 = scalar_lea.hbm %s12735_s21, 4096  ;;  %s7647_s30 = scalar_lea.hbm %s12811_s1, 8192 }
 0x3e0   : > { %p7644_p7 = scmp.ne.s32.totalorder %s12735_s21, %s7643_s27  ;;  %p7648_p13 = scmp.lt.u32.totalorder %s12735_s21, %s12811_s1 }
 0x3e1   : > { %p7649_p1 = scmp.lt.u32.totalorder %s7647_s30, %s7643_s27  ;;  %p7651_p5 = scmp.lt.u32.totalorder %s7643_s27, %s12735_s21 }
 0x3e2   : > { %p7645_p8 = pnand %p7644_p7, %p13721_p6 }
 0x3e3   : > { %p7650_p0 = por %p7649_p1, %p7648_p13 }
 0x3e4   : > { %p7646_p11 = pneg %p7645_p8 }
 0x3e5   : > { %p7652_p9 = por %p7651_p5, %p7650_p0 }
 0x3e7   : > { %p7653_p10 = pnand %p7652_p9, %p7646_p11 }
 0x3e9   : > { %7656 = shalt.err (!%p7653_p10)
}
 0x3ea   : > { %s7705_s4 = smov 128   ;;  %s7706_s5 = smov 8  }
 0x3eb   : > { %7418 = dma.vmem_to_hbm [thread:$0]  (%p13721_p6), %s12737_s19, 4096, %s12735_s21, %s12769_s22, %s7705_s4, %s7705_s4, %s7706_s5  }
 0x3ec PF: > { %p7430_p12 = scmp.ge.s32.totalorder %s7695_s9, 2  ;;  %s6969_s11 = sand.u32 1, %s7683_s6  }
 0x3ed   : > { %p13722_p2 = scmp.ne.s32.totalorder %s13122_s17, 0  ;;  %s6970_s13 = scalar_lea.sflag [#allocation4], %s6969_s11 }
 0x3ef   : > { %p7425_p3 = pnand %p7430_p12, %p13722_p2 }
 0x3f1   : > { %7678 = dma.done.wait (!%p7425_p3), %s6970_s13, 4096  }
 0x3f2   : > { %7680 = vsyncadd (!%p7425_p3), %s6970_s13, 4294963200  ;;  %p12_p4 = scmp.ge.s32.totalorder %s7742_s12, 4   ;;  %s13723_s6 = smov %s7687_s7 }
 0x3f3   : > { %s13724_s7 = smov %s7691_s8  ;;  %s13725_s8 = smov %s7753_s15 }
 0x3f4   : > { %s13726_s9 = smov %s7742_s12  ;;  %14 = sbr.rel (!%p12_p4) target bundleno = 4 (0x4), region = 61 }
 0x3fb   :  { %6975 = vsyncpa [#allocation3], 1 }
 0x3fc   :  { %6977 = vsyncpa [#allocation3 + $0x1], 1 }
 0x3fd   :  { %6978 = vsyncpa [#allocation4], 1 }
 0x3fe   :  { %6980 = vsyncpa [#allocation4 + $0x1], 1 }

</bundles_post_ra>
